<compile_context>
chip_gen: v5e
topology: v5e:2x2
jax: 0.10.0
libtpu: 0.0.40
codegen_flags: <defaults>
</compile_context>

<pallas_src>
import numpy as np
import jax
import jax.numpy as jnp
from jax.experimental import pallas as pl
from jax.experimental.pallas import tpu as pltpu

D_K = 64
D_V = 64
D_FF = 2048
N_HEADS = 8
N_LAYERS = 6
TIMESLOT = 30
N_SLOTS = 24 * (60 // TIMESLOT)  # 48 slots after split_time
LN_EPS = 1e-5                    # fresh nn.LayerNorm: gamma=1, beta=0, eps=1e-5
NEG_INF = -1e9                   # matches masked_fill_(-1000000000.0)


# ----------------------------- in-kernel building blocks -----------------------------

def _layernorm(x):
    """LayerNorm over last dim, gamma=1 / beta=0 (fresh nn.LayerNorm)."""
    mean = jnp.mean(x, axis=-1, keepdims=True)
    cen = x - mean
    var = jnp.mean(cen * cen, axis=-1, keepdims=True)
    return cen * jax.lax.rsqrt(var + LN_EPS)


def _mha_block(x_q, x_kv, mask, wqkv, wo, attn_store):
    """Fused multi-head attention sublayer for one batch element.

    x_q:  [Sq, D]  f32 (also the residual)
    x_kv: [Sk, D]  f32
    mask: [Sq, Sk] f32 (1.0 = masked)
    wqkv: [D, 3*H*dk] bf16 (W_Q | W_K | W_V concatenated along output dim)
    wo:   [H*dv, D]   bf16
    attn_store(h, attn_h): callback writing the per-head attention map to its output ref.
    Returns LayerNorm(out_proj(context) + x_q): [Sq, D] f32.
    """
    hdk = N_HEADS * D_K
    xq_b = x_q.astype(jnp.bfloat16)
    xkv_b = x_kv.astype(jnp.bfloat16)

    # Fused projections: one matmul for Q, one for K|V (K/V may use a different input).
    q = jnp.dot(xq_b, wqkv[:, :hdk], preferred_element_type=jnp.float32)     # [Sq, H*dk]
    kv = jnp.dot(xkv_b, wqkv[:, hdk:], preferred_element_type=jnp.float32)   # [Sk, 2*H*dk]

    # Fold 1/sqrt(d_k) into Q (cheaper than scaling the [Sq, Sk] scores).
    q = q * (1.0 / np.sqrt(D_K))
    qb = q.astype(jnp.bfloat16)
    kb = kv[:, :hdk].astype(jnp.bfloat16)                                    # [Sk, H*dk]
    vb = kv[:, hdk:].astype(jnp.bfloat16)                                    # [Sk, H*dv]
    masked = mask > 0.5

    ctx_parts = []
    for h in range(N_HEADS):  # unrolled: 8 small MXU ops per sublayer, all in VMEM
        qs = qb[:, h * D_K:(h + 1) * D_K]
        ks = kb[:, h * D_K:(h + 1) * D_K]
        vs = vb[:, h * D_V:(h + 1) * D_V]
        scores = jax.lax.dot_general(qs, ks, (((1,), (1,)), ((), ())),
                                     preferred_element_type=jnp.float32)     # [Sq, Sk]
        scores = jnp.where(masked, NEG_INF, scores)
        scores = scores - jnp.max(scores, axis=-1, keepdims=True)
        e = jnp.exp(scores)
        attn = e * pl.reciprocal(jnp.sum(e, axis=-1, keepdims=True), approx=True)
        attn_store(h, attn)
        ctx_parts.append(jnp.dot(attn.astype(jnp.bfloat16), vs,
                                 preferred_element_type=jnp.float32))        # [Sq, dv]

    ctx = jnp.concatenate(ctx_parts, axis=-1)                                # [Sq, H*dv]
    out = jnp.dot(ctx.astype(jnp.bfloat16), wo, preferred_element_type=jnp.float32)
    return _layernorm(out + x_q)


def _ffn_block(x, w1, w2):
    """Fused position-wise FFN + residual + LayerNorm. x: [S, D] f32."""
    h = jnp.dot(x.astype(jnp.bfloat16), w1, preferred_element_type=jnp.float32)
    h = jnp.maximum(h, 0.0)
    o = jnp.dot(h.astype(jnp.bfloat16), w2, preferred_element_type=jnp.float32)
    return _layernorm(o + x)


# ----------------------------- whole-stack Pallas kernels -----------------------------

def _encoder_stack_kernel(x0_ref, mask_ref, wqkv_ref, wo_ref, w1_ref, w2_ref,
                          out_ref, attn_ref, x_scr):
    """grid = (batch, layer).  Activations carried across layers in x_scr."""
    layer = pl.program_id(1)

    @pl.when(layer == 0)
    def _():
        x_scr[...] = x0_ref[0]

    x = x_scr[...]                          # [S, D] f32

    def store_attn(h, a):
        attn_ref[0, h] = a                  # [S, S] per head

    y = _mha_block(x, x, mask_ref[0], wqkv_ref[0], wo_ref[0], store_attn)
    y = _ffn_block(y, w1_ref[0], w2_ref[0])

    x_scr[...] = y
    out_ref[0] = y


def _decoder_stack_kernel(x0_ref, enc_ref, smask_ref, cmask_ref,
                          wqkv_s_ref, wo_s_ref, wqkv_c_ref, wo_c_ref,
                          w1_ref, w2_ref, wproj_ref,
                          logits_ref, sattn_ref, cattn_ref, x_scr):
    """grid = (batch, layer).  Self-attn, cross-attn, FFN fused per step; final
    vocab projection (lane-padded to 128) emitted at the last layer."""
    layer = pl.program_id(1)

    @pl.when(layer == 0)
    def _():
        x_scr[...] = x0_ref[0]

    x = x_scr[...]
    enc = enc_ref[0]

    def store_sattn(h, a):
        sattn_ref[0, h] = a

    def store_cattn(h, a):
        cattn_ref[0, h] = a

    y = _mha_block(x, x, smask_ref[0], wqkv_s_ref[0], wo_s_ref[0], store_sattn)
    y = _mha_block(y, enc, cmask_ref[0], wqkv_c_ref[0], wo_c_ref[0], store_cattn)
    y = _ffn_block(y, w1_ref[0], w2_ref[0])

    x_scr[...] = y

    @pl.when(layer == pl.num_programs(1) - 1)
    def _():
        logits_ref[0] = jnp.dot(y.astype(jnp.bfloat16), wproj_ref[...],
                                preferred_element_type=jnp.float32)


# ----------------------------- wrappers -----------------------------

_COMPILER_PARAMS = pltpu.CompilerParams(
    dimension_semantics=("parallel", "arbitrary"),   # batch parallel (v7x 2 TCs), layers sequential
    vmem_limit_bytes=32 * 1024 * 1024,
)


def run_encoder_stack(x0, mask, wqkv, wo, w1, w2):
    """x0: [B, S, D] f32, mask: [B, S, S] f32, weights stacked on layer axis (bf16)."""
    B, S, D = x0.shape
    L = wqkv.shape[0]
    H3 = wqkv.shape[2]
    out, attn = pl.pallas_call(
        _encoder_stack_kernel,
        grid=(B, L),
        in_specs=[
            pl.BlockSpec((1, S, D), lambda b, l: (b, 0, 0)),
            pl.BlockSpec((1, S, S), lambda b, l: (b, 0, 0)),
            pl.BlockSpec((1, D, H3), lambda b, l: (l, 0, 0)),
            pl.BlockSpec((1, N_HEADS * D_V, D), lambda b, l: (l, 0, 0)),
            pl.BlockSpec((1, D, D_FF), lambda b, l: (l, 0, 0)),
            pl.BlockSpec((1, D_FF, D), lambda b, l: (l, 0, 0)),
        ],
        out_specs=(
            pl.BlockSpec((1, S, D), lambda b, l: (b, 0, 0)),
            pl.BlockSpec((1, N_HEADS, S, S), lambda b, l: (l, b, 0, 0)),
        ),
        out_shape=(
            jax.ShapeDtypeStruct((B, S, D), jnp.float32),
            jax.ShapeDtypeStruct((L, B * N_HEADS, S, S), jnp.float32),
        ),
        scratch_shapes=[pltpu.VMEM((S, D), jnp.float32)],
        compiler_params=_COMPILER_PARAMS,
    )(x0, mask, wqkv, wo, w1, w2)
    return out, attn.reshape(L, B, N_HEADS, S, S)


def run_decoder_stack(x0, enc_out, smask, cmask,
                      wqkv_s, wo_s, wqkv_c, wo_c, w1, w2, wproj_pad):
    B, S, D = x0.shape
    L = wqkv_s.shape[0]
    H3 = wqkv_s.shape[2]
    Vpad = wproj_pad.shape[1]
    logits, sattn, cattn = pl.pallas_call(
        _decoder_stack_kernel,
        grid=(B, L),
        in_specs=[
            pl.BlockSpec((1, S, D), lambda b, l: (b, 0, 0)),
            pl.BlockSpec((1, S, D), lambda b, l: (b, 0, 0)),
            pl.BlockSpec((1, S, S), lambda b, l: (b, 0, 0)),
            pl.BlockSpec((1, S, S), lambda b, l: (b, 0, 0)),
            pl.BlockSpec((1, D, H3), lambda b, l: (l, 0, 0)),
            pl.BlockSpec((1, N_HEADS * D_V, D), lambda b, l: (l, 0, 0)),
            pl.BlockSpec((1, D, H3), lambda b, l: (l, 0, 0)),
            pl.BlockSpec((1, N_HEADS * D_V, D), lambda b, l: (l, 0, 0)),
            pl.BlockSpec((1, D, D_FF), lambda b, l: (l, 0, 0)),
            pl.BlockSpec((1, D_FF, D), lambda b, l: (l, 0, 0)),
            pl.BlockSpec((D, Vpad), lambda b, l: (0, 0)),
        ],
        out_specs=(
            pl.BlockSpec((1, S, Vpad), lambda b, l: (b, 0, 0)),
            pl.BlockSpec((1, N_HEADS, S, S), lambda b, l: (l, b, 0, 0)),
            pl.BlockSpec((1, N_HEADS, S, S), lambda b, l: (l, b, 0, 0)),
        ),
        out_shape=(
            jax.ShapeDtypeStruct((B, S, Vpad), jnp.float32),
            jax.ShapeDtypeStruct((L, B * N_HEADS, S, S), jnp.float32),
            jax.ShapeDtypeStruct((L, B * N_HEADS, S, S), jnp.float32),
        ),
        scratch_shapes=[pltpu.VMEM((S, D), jnp.float32)],
        compiler_params=_COMPILER_PARAMS,
    )(x0, enc_out, smask, cmask, wqkv_s, wo_s, wqkv_c, wo_c, w1, w2, wproj_pad)
    return (logits,
            sattn.reshape(L, B, N_HEADS, S, S),
            cattn.reshape(L, B, N_HEADS, S, S))


# ----------------------------- JAX glue (masks, split_time, packing) -----------------------------

def get_attn_pad_mask(seq_q, seq_k):
    B, Lq = seq_q.shape
    Lk = seq_k.shape[1]
    pad = (seq_k == 0).astype(jnp.float32)[:, None, :]
    return jnp.broadcast_to(pad, (B, Lq, Lk))


def get_attn_subsequence_mask(seq):
    B, L = seq.shape
    tri = jnp.triu(jnp.ones((L, L), jnp.float32), k=1)
    return jnp.broadcast_to(tri[None], (B, L, L))


def split_time(emb, ts, timeslot=TIMESLOT):
    """Average embeddings that fall into the same time-of-day slot; empty slots -> 0.
    emb: [B, L, D], ts: [B, L] (0 means padding)."""
    count = 24 * (60 // timeslot)
    # TODO(synk): get_slot_by_unix is not defined in the source module; we use
    # slot = (unix_ts mod 86400) // (timeslot*60) as the slot-of-day mapping.
    slot = ((ts % 86400) // (timeslot * 60)).astype(jnp.int32)
    valid = (ts != 0).astype(jnp.float32)
    onehot = jax.nn.one_hot(slot, count, dtype=jnp.float32) * valid[..., None]  # [B, L, count]
    sums = jnp.einsum("blc,bld->bcd", onehot, emb)                               # [B, count, D]
    counts = jnp.sum(onehot, axis=1)                                             # [B, count]
    return sums / jnp.maximum(counts, 1.0)[..., None]


def _pack_mha(layer_dicts):
    wqkv = jnp.stack([jnp.concatenate([d["wq"], d["wk"], d["wv"]], axis=1)
                      for d in layer_dicts]).astype(jnp.bfloat16)     # [L, D, 3*H*dk]
    wo = jnp.stack([d["wo"] for d in layer_dicts]).astype(jnp.bfloat16)  # [L, H*dv, D]
    return wqkv, wo


def _pack_ffn(layer_dicts):
    w1 = jnp.stack([d["w1"] for d in layer_dicts]).astype(jnp.bfloat16)  # [L, D, d_ff]
    w2 = jnp.stack([d["w2"] for d in layer_dicts]).astype(jnp.bfloat16)  # [L, d_ff, D]
    return w1, w2


def transformer_forward(params, enc_inputs, dec_inputs, input_ts, output_ts,
                        input_ts_pad, output_ts_pad):
    emb_table = params["embedding"]

    # ----- Encoder -----
    enc_emb = emb_table[enc_inputs]                      # [B, src_len, D]
    enc_x0 = split_time(enc_emb, input_ts)               # [B, 48, D]
    enc_mask = get_attn_pad_mask(input_ts_pad, input_ts_pad)

    e_wqkv, e_wo = _pack_mha([lp["attn"] for lp in params["encoder"]])
    e_w1, e_w2 = _pack_ffn([lp["ffn"] for lp in params["encoder"]])
    enc_outputs, enc_attn_all = run_encoder_stack(enc_x0, enc_mask, e_wqkv, e_wo, e_w1, e_w2)

    # ----- Decoder -----
    dec_emb = emb_table[dec_inputs]
    dec_x0 = split_time(dec_emb, output_ts)              # [B, 48, D]
    pad_m = get_attn_pad_mask(output_ts_pad, output_ts_pad)
    sub_m = get_attn_subsequence_mask(output_ts_pad)
    dec_self_mask = ((pad_m + sub_m) > 0).astype(jnp.float32)
    dec_enc_mask = get_attn_pad_mask(output_ts_pad, input_ts_pad)

    d_wqkv_s, d_wo_s = _pack_mha([lp["self_attn"] for lp in params["decoder"]])
    d_wqkv_c, d_wo_c = _pack_mha([lp["enc_attn"] for lp in params["decoder"]])
    d_w1, d_w2 = _pack_ffn([lp["ffn"] for lp in params["decoder"]])

    # Pad projection to a lane-dense 128-wide output; slice back afterwards.
    wproj = params["projection"]                         # [D, num_loc+2]
    vocab = wproj.shape[1]
    vpad = ((vocab + 127) // 128) * 128
    wproj_pad = jnp.zeros((wproj.shape[0], vpad), jnp.float32).at[:, :vocab].set(wproj)
    wproj_pad = wproj_pad.astype(jnp.bfloat16)

    logits_pad, dec_self_all, dec_enc_all = run_decoder_stack(
        dec_x0, enc_outputs, dec_self_mask, dec_enc_mask,
        d_wqkv_s, d_wo_s, d_wqkv_c, d_wo_c, d_w1, d_w2, wproj_pad)

    B, S, _ = logits_pad.shape
    logits = logits_pad[:, :, :vocab].reshape(B * S, vocab)

    enc_self_attns = [enc_attn_all[i] for i in range(enc_attn_all.shape[0])]
    dec_self_attns = [dec_self_all[i] for i in range(dec_self_all.shape[0])]
    dec_enc_attns = [dec_enc_all[i] for i in range(dec_enc_all.shape[0])]
    return logits, enc_self_attns, dec_self_attns, dec_enc_attns


# ----------------------------- deterministic parameters -----------------------------

def init_params(key, d_model, num_loc):
    keys = iter(jax.random.split(key, 128))

    def nrm(shape, scale=0.05):
        return scale * jax.random.normal(next(keys), shape, jnp.float32)

    def mha_params():
        return {"wq": nrm((d_model, D_K * N_HEADS)),
                "wk": nrm((d_model, D_K * N_HEADS)),
                "wv": nrm((d_model, D_V * N_HEADS)),
                "wo": nrm((N_HEADS * D_V, d_model))}

    def ffn_params():
        return {"w1": nrm((d_model, D_FF)),
                "w2": nrm((D_FF, d_model))}

    return {
        "embedding": nrm((num_loc, d_model)),
        "encoder": [{"attn": mha_params(), "ffn": ffn_params()} for _ in range(N_LAYERS)],
        "decoder": [{"self_attn": mha_params(), "enc_attn": mha_params(),
                     "ffn": ffn_params()} for _ in range(N_LAYERS)],
        "projection": nrm((d_model, num_loc + 2)),
    }


# ----------------------------- main -----------------------------

if __name__ == "__main__":
    B = 2
    d_model = 32      # embed_size
    num_loc = 16
    src_len = 12      # raw (pre-split_time) trajectory length
    tgt_len = 12

    key = jax.random.PRNGKey(0)
    kp, k1, k2, k3, k4 = jax.random.split(key, 5)
    params = init_params(kp, d_model, num_loc)

    enc_inputs = jax.random.randint(k1, (B, src_len), 0, num_loc)
    dec_inputs = jax.random.randint(k2, (B, tgt_len), 0, num_loc)
    # non-zero "unix-like" timestamps within a single day
    input_ts = jax.random.randint(k3, (B, src_len), 1, 86400).astype(jnp.int32)
    output_ts = jax.random.randint(k4, (B, tgt_len), 1, 86400).astype(jnp.int32)
    # pad indicators over the 48 slots produced by split_time (0 = padded slot)
    slot_ids = jnp.arange(N_SLOTS)
    input_ts_pad = jnp.broadcast_to((slot_ids < 40).astype(jnp.int32), (B, N_SLOTS))
    output_ts_pad = jnp.broadcast_to((slot_ids < 36).astype(jnp.int32), (B, N_SLOTS))

    logits, enc_attns, dec_self_attns, dec_enc_attns = transformer_forward(
        params, enc_inputs, dec_inputs, input_ts, output_ts, input_ts_pad, output_ts_pad)
    jax.block_until_ready(logits)
    assert logits.shape == (B * N_SLOTS, num_loc + 2)
    assert enc_attns[0].shape == (B, N_HEADS, N_SLOTS, N_SLOTS)
    assert dec_self_attns[0].shape == (B, N_HEADS, N_SLOTS, N_SLOTS)
    assert dec_enc_attns[0].shape == (B, N_HEADS, N_SLOTS, N_SLOTS)
    print("KERNEL_OK")
</pallas_src>

<mosaic_0001>
module attributes {stable_mosaic.version = 11 : i64} {
  func.func @_encoder_stack_kernel(%arg0: i32, %arg1: i32, %arg2: memref<1x48x32xf32, #tpu.memory_space<vmem>>, %arg3: memref<1x48x48xf32, #tpu.memory_space<vmem>>, %arg4: memref<1x32x1536xbf16, #tpu.memory_space<vmem>>, %arg5: memref<1x512x32xbf16, #tpu.memory_space<vmem>>, %arg6: memref<1x32x2048xbf16, #tpu.memory_space<vmem>>, %arg7: memref<1x2048x32xbf16, #tpu.memory_space<vmem>>, %arg8: memref<1x48x32xf32, #tpu.memory_space<vmem>>, %arg9: memref<1x8x48x48xf32, #tpu.memory_space<vmem>>, %arg10: memref<48x32xf32, #tpu.memory_space<vmem>>) attributes {dimension_semantics = [#tpu.dimension_semantics<parallel>, #tpu.dimension_semantics<arbitrary>], iteration_bounds = array<i64: 2, 6>, scalar_prefetch = 0 : i64, scratch_operands = 1 : i64, tpu.core_type = #tpu.core_type<tc>, window_params = [{transform_indices = @transform_0, window_bounds = array<i64: 1, 48, 32>}, {transform_indices = @transform_1, window_bounds = array<i64: 1, 48, 48>}, {transform_indices = @transform_2, window_bounds = array<i64: 1, 32, 1536>}, {transform_indices = @transform_3, window_bounds = array<i64: 1, 512, 32>}, {transform_indices = @transform_4, window_bounds = array<i64: 1, 32, 2048>}, {transform_indices = @transform_5, window_bounds = array<i64: 1, 2048, 32>}, {transform_indices = @transform_6, window_bounds = array<i64: 1, 48, 32>}, {transform_indices = @transform_7, window_bounds = array<i64: 1, 8, 48, 48>}]} {
    %c0_i32 = arith.constant 0 : i32
    %0 = arith.cmpi eq, %arg1, %c0_i32 : i32
    %1 = arith.extui %0 : i1 to i32
    %c0_i32_0 = arith.constant 0 : i32
    %2 = arith.cmpi ne, %1, %c0_i32_0 : i32
    scf.if %2 {
      %c0_104 = arith.constant 0 : index
      %c0_105 = arith.constant 0 : index
      %c0_106 = arith.constant 0 : index
      %244 = vector.load %arg2[%c0_104, %c0_105, %c0_106] : memref<1x48x32xf32, #tpu.memory_space<vmem>>, vector<1x48x32xf32>
      %245 = vector.shape_cast %244 : vector<1x48x32xf32> to vector<48x32xf32>
      %c0_107 = arith.constant 0 : index
      %c0_108 = arith.constant 0 : index
      %246 = vector.load %arg10[%c0_107, %c0_108] : memref<48x32xf32, #tpu.memory_space<vmem>>, vector<48x32xf32>
      tpu.vector_store %arg10[%c0_107, %c0_108], %245 {strides = array<i32>} : memref<48x32xf32, #tpu.memory_space<vmem>>, vector<48x32xf32>,
    } else {
    }
    %c0 = arith.constant 0 : index
    %c0_1 = arith.constant 0 : index
    %3 = vector.load %arg10[%c0, %c0_1] : memref<48x32xf32, #tpu.memory_space<vmem>>, vector<48x32xf32>
    %c0_2 = arith.constant 0 : index
    %c0_3 = arith.constant 0 : index
    %c0_4 = arith.constant 0 : index
    %4 = vector.load %arg3[%c0_2, %c0_3, %c0_4] : memref<1x48x48xf32, #tpu.memory_space<vmem>>, vector<1x48x48xf32>
    %5 = vector.shape_cast %4 : vector<1x48x48xf32> to vector<48x48xf32>
    %c0_5 = arith.constant 0 : index
    %c0_6 = arith.constant 0 : index
    %c0_7 = arith.constant 0 : index
    %6 = vector.load %arg4[%c0_5, %c0_6, %c0_7] : memref<1x32x1536xbf16, #tpu.memory_space<vmem>>, vector<1x32x1536xbf16>
    %7 = vector.shape_cast %6 : vector<1x32x1536xbf16> to vector<32x1536xbf16>
    %c0_8 = arith.constant 0 : index
    %c0_9 = arith.constant 0 : index
    %c0_10 = arith.constant 0 : index
    %8 = vector.load %arg5[%c0_8, %c0_9, %c0_10] : memref<1x512x32xbf16, #tpu.memory_space<vmem>>, vector<1x512x32xbf16>
    %9 = vector.shape_cast %8 : vector<1x512x32xbf16> to vector<512x32xbf16>
    %10 = arith.truncf %3 : vector<48x32xf32> to vector<48x32xbf16>
    %11 = arith.truncf %3 : vector<48x32xf32> to vector<48x32xbf16>
    %12 = vector.extract_strided_slice %7 {offsets = [0, 0], sizes = [32, 512], strides = [1, 1]} : vector<32x1536xbf16> to vector<32x512xbf16>
    %cst = arith.constant dense<0.000000e+00> : vector<48x512xf32>
    %13 = tpu.matmul %10, %12, %cst {dimension_numbers = #tpu.dot_dimension_numbers<[1], [0], [0], [1], [0, 0, 1, 1], [], []>} : vector<48x32xbf16>, vector<32x512xbf16>, vector<48x512xf32> -> vector<48x512xf32>
    %14 = vector.extract_strided_slice %7 {offsets = [0, 512], sizes = [32, 1024], strides = [1, 1]} : vector<32x1536xbf16> to vector<32x1024xbf16>
    %cst_11 = arith.constant dense<0.000000e+00> : vector<48x1024xf32>
    %15 = tpu.matmul %11, %14, %cst_11 {dimension_numbers = #tpu.dot_dimension_numbers<[1], [0], [0], [1], [0, 0, 1, 1], [], []>} : vector<48x32xbf16>, vector<32x1024xbf16>, vector<48x1024xf32> -> vector<48x1024xf32>
    %cst_12 = arith.constant 1.250000e-01 : f32
    %16 = vector.broadcast %cst_12 : f32 to vector<48x512xf32>
    %17 = arith.mulf %13, %16 : vector<48x512xf32>
    %18 = arith.truncf %17 : vector<48x512xf32> to vector<48x512xbf16>
    %19 = vector.extract_strided_slice %15 {offsets = [0, 0], sizes = [48, 512], strides = [1, 1]} : vector<48x1024xf32> to vector<48x512xf32>
    %20 = arith.truncf %19 : vector<48x512xf32> to vector<48x512xbf16>
    %21 = vector.extract_strided_slice %15 {offsets = [0, 512], sizes = [48, 512], strides = [1, 1]} : vector<48x1024xf32> to vector<48x512xf32>
    %22 = arith.truncf %21 : vector<48x512xf32> to vector<48x512xbf16>
    %cst_13 = arith.constant 5.000000e-01 : f32
    %23 = vector.broadcast %cst_13 : f32 to vector<48x48xf32>
    %24 = arith.cmpf ogt, %5, %23 : vector<48x48xf32>
    %25 = vector.extract_strided_slice %18 {offsets = [0, 0], sizes = [48, 64], strides = [1, 1]} : vector<48x512xbf16> to vector<48x64xbf16>
    %26 = vector.extract_strided_slice %20 {offsets = [0, 0], sizes = [48, 64], strides = [1, 1]} : vector<48x512xbf16> to vector<48x64xbf16>
    %27 = vector.extract_strided_slice %22 {offsets = [0, 0], sizes = [48, 64], strides = [1, 1]} : vector<48x512xbf16> to vector<48x64xbf16>
    %cst_14 = arith.constant dense<0.000000e+00> : vector<48x48xf32>
    %28 = tpu.matmul %25, %26, %cst_14 {dimension_numbers = #tpu.dot_dimension_numbers<[1], [1], [0], [0], [0, 0, 1, 0], [], []>} : vector<48x64xbf16>, vector<48x64xbf16>, vector<48x48xf32> -> vector<48x48xf32>
    %cst_15 = arith.constant -1.000000e+09 : f32
    %29 = vector.broadcast %cst_15 : f32 to vector<48x48xf32>
    %30 = arith.select %24, %29, %28 : vector<48x48xi1>, vector<48x48xf32>
    %cst_16 = arith.constant dense<0xFF800000> : vector<48xf32>
    %31 = vector.multi_reduction <maximumf>, %30, %cst_16 [1] : vector<48x48xf32> to vector<48xf32>
    %32 = vector.shape_cast %31 : vector<48xf32> to vector<48x1xf32>
    %33 = vector.broadcast %32 : vector<48x1xf32> to vector<48x48xf32>
    %34 = arith.subf %30, %33 : vector<48x48xf32>
    %35 = math.exp %34 : vector<48x48xf32>
    %cst_17 = arith.constant dense<0.000000e+00> : vector<48xf32>
    %36 = vector.multi_reduction <add>, %35, %cst_17 [1] : vector<48x48xf32> to vector<48xf32>
    %37 = vector.shape_cast %36 : vector<48xf32> to vector<48x1xf32>
    %38 = tpu.reciprocal %37 {approx = true} : vector<48x1xf32> -> vector<48x1xf32>
    %39 = vector.broadcast %38 : vector<48x1xf32> to vector<48x48xf32>
    %40 = arith.mulf %35, %39 : vector<48x48xf32>
    %c0_18 = arith.constant 0 : index
    %c0_19 = arith.constant 0 : index
    %c0_20 = arith.constant 0 : index
    %c0_21 = arith.constant 0 : index
    %41 = vector.load %arg9[%c0_18, %c0_19, %c0_20, %c0_21] : memref<1x8x48x48xf32, #tpu.memory_space<vmem>>, vector<1x1x48x48xf32>
    %42 = vector.shape_cast %41 : vector<1x1x48x48xf32> to vector<48x48xf32>
    %43 = vector.shape_cast %40 : vector<48x48xf32> to vector<1x1x48x48xf32>
    tpu.vector_store %arg9[%c0_18, %c0_19, %c0_20, %c0_21], %43 {strides = array<i32>} : memref<1x8x48x48xf32, #tpu.memory_space<vmem>>, vector<1x1x48x48xf32>,
    %44 = arith.truncf %40 : vector<48x48xf32> to vector<48x48xbf16>
    %cst_22 = arith.constant dense<0.000000e+00> : vector<48x64xf32>
    %45 = tpu.matmul %44, %27, %cst_22 {dimension_numbers = #tpu.dot_dimension_numbers<[1], [0], [0], [1], [0, 0, 1, 1], [], []>} : vector<48x48xbf16>, vector<48x64xbf16>, vector<48x64xf32> -> vector<48x64xf32>
    %46 = vector.extract_strided_slice %18 {offsets = [0, 64], sizes = [48, 64], strides = [1, 1]} : vector<48x512xbf16> to vector<48x64xbf16>
    %47 = vector.extract_strided_slice %20 {offsets = [0, 64], sizes = [48, 64], strides = [1, 1]} : vector<48x512xbf16> to vector<48x64xbf16>
    %48 = vector.extract_strided_slice %22 {offsets = [0, 64], sizes = [48, 64], strides = [1, 1]} : vector<48x512xbf16> to vector<48x64xbf16>
    %cst_23 = arith.constant dense<0.000000e+00> : vector<48x48xf32>
    %49 = tpu.matmul %46, %47, %cst_23 {dimension_numbers = #tpu.dot_dimension_numbers<[1], [1], [0], [0], [0, 0, 1, 0], [], []>} : vector<48x64xbf16>, vector<48x64xbf16>, vector<48x48xf32> -> vector<48x48xf32>
    %cst_24 = arith.constant -1.000000e+09 : f32
    %50 = vector.broadcast %cst_24 : f32 to vector<48x48xf32>
    %51 = arith.select %24, %50, %49 : vector<48x48xi1>, vector<48x48xf32>
    %cst_25 = arith.constant dense<0xFF800000> : vector<48xf32>
    %52 = vector.multi_reduction <maximumf>, %51, %cst_25 [1] : vector<48x48xf32> to vector<48xf32>
    %53 = vector.shape_cast %52 : vector<48xf32> to vector<48x1xf32>
    %54 = vector.broadcast %53 : vector<48x1xf32> to vector<48x48xf32>
    %55 = arith.subf %51, %54 : vector<48x48xf32>
    %56 = math.exp %55 : vector<48x48xf32>
    %cst_26 = arith.constant dense<0.000000e+00> : vector<48xf32>
    %57 = vector.multi_reduction <add>, %56, %cst_26 [1] : vector<48x48xf32> to vector<48xf32>
    %58 = vector.shape_cast %57 : vector<48xf32> to vector<48x1xf32>
    %59 = tpu.reciprocal %58 {approx = true} : vector<48x1xf32> -> vector<48x1xf32>
    %60 = vector.broadcast %59 : vector<48x1xf32> to vector<48x48xf32>
    %61 = arith.mulf %56, %60 : vector<48x48xf32>
    %c0_27 = arith.constant 0 : index
    %c1 = arith.constant 1 : index
    %c0_28 = arith.constant 0 : index
    %c0_29 = arith.constant 0 : index
    %62 = vector.load %arg9[%c0_27, %c1, %c0_28, %c0_29] : memref<1x8x48x48xf32, #tpu.memory_space<vmem>>, vector<1x1x48x48xf32>
    %63 = vector.shape_cast %62 : vector<1x1x48x48xf32> to vector<48x48xf32>
    %64 = vector.shape_cast %61 : vector<48x48xf32> to vector<1x1x48x48xf32>
    tpu.vector_store %arg9[%c0_27, %c1, %c0_28, %c0_29], %64 {strides = array<i32>} : memref<1x8x48x48xf32, #tpu.memory_space<vmem>>, vector<1x1x48x48xf32>,
    %65 = arith.truncf %61 : vector<48x48xf32> to vector<48x48xbf16>
    %cst_30 = arith.constant dense<0.000000e+00> : vector<48x64xf32>
    %66 = tpu.matmul %65, %48, %cst_30 {dimension_numbers = #tpu.dot_dimension_numbers<[1], [0], [0], [1], [0, 0, 1, 1], [], []>} : vector<48x48xbf16>, vector<48x64xbf16>, vector<48x64xf32> -> vector<48x64xf32>
    %67 = vector.extract_strided_slice %18 {offsets = [0, 128], sizes = [48, 64], strides = [1, 1]} : vector<48x512xbf16> to vector<48x64xbf16>
    %68 = vector.extract_strided_slice %20 {offsets = [0, 128], sizes = [48, 64], strides = [1, 1]} : vector<48x512xbf16> to vector<48x64xbf16>
    %69 = vector.extract_strided_slice %22 {offsets = [0, 128], sizes = [48, 64], strides = [1, 1]} : vector<48x512xbf16> to vector<48x64xbf16>
    %cst_31 = arith.constant dense<0.000000e+00> : vector<48x48xf32>
    %70 = tpu.matmul %67, %68, %cst_31 {dimension_numbers = #tpu.dot_dimension_numbers<[1], [1], [0], [0], [0, 0, 1, 0], [], []>} : vector<48x64xbf16>, vector<48x64xbf16>, vector<48x48xf32> -> vector<48x48xf32>
    %cst_32 = arith.constant -1.000000e+09 : f32
    %71 = vector.broadcast %cst_32 : f32 to vector<48x48xf32>
    %72 = arith.select %24, %71, %70 : vector<48x48xi1>, vector<48x48xf32>
    %cst_33 = arith.constant dense<0xFF800000> : vector<48xf32>
    %73 = vector.multi_reduction <maximumf>, %72, %cst_33 [1] : vector<48x48xf32> to vector<48xf32>
    %74 = vector.shape_cast %73 : vector<48xf32> to vector<48x1xf32>
    %75 = vector.broadcast %74 : vector<48x1xf32> to vector<48x48xf32>
    %76 = arith.subf %72, %75 : vector<48x48xf32>
    %77 = math.exp %76 : vector<48x48xf32>
    %cst_34 = arith.constant dense<0.000000e+00> : vector<48xf32>
    %78 = vector.multi_reduction <add>, %77, %cst_34 [1] : vector<48x48xf32> to vector<48xf32>
    %79 = vector.shape_cast %78 : vector<48xf32> to vector<48x1xf32>
    %80 = tpu.reciprocal %79 {approx = true} : vector<48x1xf32> -> vector<48x1xf32>
    %81 = vector.broadcast %80 : vector<48x1xf32> to vector<48x48xf32>
    %82 = arith.mulf %77, %81 : vector<48x48xf32>
    %c0_35 = arith.constant 0 : index
    %c2 = arith.constant 2 : index
    %c0_36 = arith.constant 0 : index
    %c0_37 = arith.constant 0 : index
    %83 = vector.load %arg9[%c0_35, %c2, %c0_36, %c0_37] : memref<1x8x48x48xf32, #tpu.memory_space<vmem>>, vector<1x1x48x48xf32>
    %84 = vector.shape_cast %83 : vector<1x1x48x48xf32> to vector<48x48xf32>
    %85 = vector.shape_cast %82 : vector<48x48xf32> to vector<1x1x48x48xf32>
    tpu.vector_store %arg9[%c0_35, %c2, %c0_36, %c0_37], %85 {strides = array<i32>} : memref<1x8x48x48xf32, #tpu.memory_space<vmem>>, vector<1x1x48x48xf32>,
    %86 = arith.truncf %82 : vector<48x48xf32> to vector<48x48xbf16>
    %cst_38 = arith.constant dense<0.000000e+00> : vector<48x64xf32>
    %87 = tpu.matmul %86, %69, %cst_38 {dimension_numbers = #tpu.dot_dimension_numbers<[1], [0], [0], [1], [0, 0, 1, 1], [], []>} : vector<48x48xbf16>, vector<48x64xbf16>, vector<48x64xf32> -> vector<48x64xf32>
    %88 = vector.extract_strided_slice %18 {offsets = [0, 192], sizes = [48, 64], strides = [1, 1]} : vector<48x512xbf16> to vector<48x64xbf16>
    %89 = vector.extract_strided_slice %20 {offsets = [0, 192], sizes = [48, 64], strides = [1, 1]} : vector<48x512xbf16> to vector<48x64xbf16>
    %90 = vector.extract_strided_slice %22 {offsets = [0, 192], sizes = [48, 64], strides = [1, 1]} : vector<48x512xbf16> to vector<48x64xbf16>
    %cst_39 = arith.constant dense<0.000000e+00> : vector<48x48xf32>
    %91 = tpu.matmul %88, %89, %cst_39 {dimension_numbers = #tpu.dot_dimension_numbers<[1], [1], [0], [0], [0, 0, 1, 0], [], []>} : vector<48x64xbf16>, vector<48x64xbf16>, vector<48x48xf32> -> vector<48x48xf32>
    %cst_40 = arith.constant -1.000000e+09 : f32
    %92 = vector.broadcast %cst_40 : f32 to vector<48x48xf32>
    %93 = arith.select %24, %92, %91 : vector<48x48xi1>, vector<48x48xf32>
    %cst_41 = arith.constant dense<0xFF800000> : vector<48xf32>
    %94 = vector.multi_reduction <maximumf>, %93, %cst_41 [1] : vector<48x48xf32> to vector<48xf32>
    %95 = vector.shape_cast %94 : vector<48xf32> to vector<48x1xf32>
    %96 = vector.broadcast %95 : vector<48x1xf32> to vector<48x48xf32>
    %97 = arith.subf %93, %96 : vector<48x48xf32>
    %98 = math.exp %97 : vector<48x48xf32>
    %cst_42 = arith.constant dense<0.000000e+00> : vector<48xf32>
    %99 = vector.multi_reduction <add>, %98, %cst_42 [1] : vector<48x48xf32> to vector<48xf32>
    %100 = vector.shape_cast %99 : vector<48xf32> to vector<48x1xf32>
    %101 = tpu.reciprocal %100 {approx = true} : vector<48x1xf32> -> vector<48x1xf32>
    %102 = vector.broadcast %101 : vector<48x1xf32> to vector<48x48xf32>
    %103 = arith.mulf %98, %102 : vector<48x48xf32>
    %c0_43 = arith.constant 0 : index
    %c3 = arith.constant 3 : index
    %c0_44 = arith.constant 0 : index
    %c0_45 = arith.constant 0 : index
    %104 = vector.load %arg9[%c0_43, %c3, %c0_44, %c0_45] : memref<1x8x48x48xf32, #tpu.memory_space<vmem>>, vector<1x1x48x48xf32>
    %105 = vector.shape_cast %104 : vector<1x1x48x48xf32> to vector<48x48xf32>
    %106 = vector.shape_cast %103 : vector<48x48xf32> to vector<1x1x48x48xf32>
    tpu.vector_store %arg9[%c0_43, %c3, %c0_44, %c0_45], %106 {strides = array<i32>} : memref<1x8x48x48xf32, #tpu.memory_space<vmem>>, vector<1x1x48x48xf32>,
    %107 = arith.truncf %103 : vector<48x48xf32> to vector<48x48xbf16>
    %cst_46 = arith.constant dense<0.000000e+00> : vector<48x64xf32>
    %108 = tpu.matmul %107, %90, %cst_46 {dimension_numbers = #tpu.dot_dimension_numbers<[1], [0], [0], [1], [0, 0, 1, 1], [], []>} : vector<48x48xbf16>, vector<48x64xbf16>, vector<48x64xf32> -> vector<48x64xf32>
    %109 = vector.extract_strided_slice %18 {offsets = [0, 256], sizes = [48, 64], strides = [1, 1]} : vector<48x512xbf16> to vector<48x64xbf16>
    %110 = vector.extract_strided_slice %20 {offsets = [0, 256], sizes = [48, 64], strides = [1, 1]} : vector<48x512xbf16> to vector<48x64xbf16>
    %111 = vector.extract_strided_slice %22 {offsets = [0, 256], sizes = [48, 64], strides = [1, 1]} : vector<48x512xbf16> to vector<48x64xbf16>
    %cst_47 = arith.constant dense<0.000000e+00> : vector<48x48xf32>
    %112 = tpu.matmul %109, %110, %cst_47 {dimension_numbers = #tpu.dot_dimension_numbers<[1], [1], [0], [0], [0, 0, 1, 0], [], []>} : vector<48x64xbf16>, vector<48x64xbf16>, vector<48x48xf32> -> vector<48x48xf32>
    %cst_48 = arith.constant -1.000000e+09 : f32
    %113 = vector.broadcast %cst_48 : f32 to vector<48x48xf32>
    %114 = arith.select %24, %113, %112 : vector<48x48xi1>, vector<48x48xf32>
    %cst_49 = arith.constant dense<0xFF800000> : vector<48xf32>
    %115 = vector.multi_reduction <maximumf>, %114, %cst_49 [1] : vector<48x48xf32> to vector<48xf32>
    %116 = vector.shape_cast %115 : vector<48xf32> to vector<48x1xf32>
    %117 = vector.broadcast %116 : vector<48x1xf32> to vector<48x48xf32>
    %118 = arith.subf %114, %117 : vector<48x48xf32>
    %119 = math.exp %118 : vector<48x48xf32>
    %cst_50 = arith.constant dense<0.000000e+00> : vector<48xf32>
    %120 = vector.multi_reduction <add>, %119, %cst_50 [1] : vector<48x48xf32> to vector<48xf32>
    %121 = vector.shape_cast %120 : vector<48xf32> to vector<48x1xf32>
    %122 = tpu.reciprocal %121 {approx = true} : vector<48x1xf32> -> vector<48x1xf32>
    %123 = vector.broadcast %122 : vector<48x1xf32> to vector<48x48xf32>
    %124 = arith.mulf %119, %123 : vector<48x48xf32>
    %c0_51 = arith.constant 0 : index
    %c4 = arith.constant 4 : index
    %c0_52 = arith.constant 0 : index
    %c0_53 = arith.constant 0 : index
    %125 = vector.load %arg9[%c0_51, %c4, %c0_52, %c0_53] : memref<1x8x48x48xf32, #tpu.memory_space<vmem>>, vector<1x1x48x48xf32>
    %126 = vector.shape_cast %125 : vector<1x1x48x48xf32> to vector<48x48xf32>
    %127 = vector.shape_cast %124 : vector<48x48xf32> to vector<1x1x48x48xf32>
    tpu.vector_store %arg9[%c0_51, %c4, %c0_52, %c0_53], %127 {strides = array<i32>} : memref<1x8x48x48xf32, #tpu.memory_space<vmem>>, vector<1x1x48x48xf32>,
    %128 = arith.truncf %124 : vector<48x48xf32> to vector<48x48xbf16>
    %cst_54 = arith.constant dense<0.000000e+00> : vector<48x64xf32>
    %129 = tpu.matmul %128, %111, %cst_54 {dimension_numbers = #tpu.dot_dimension_numbers<[1], [0], [0], [1], [0, 0, 1, 1], [], []>} : vector<48x48xbf16>, vector<48x64xbf16>, vector<48x64xf32> -> vector<48x64xf32>
    %130 = vector.extract_strided_slice %18 {offsets = [0, 320], sizes = [48, 64], strides = [1, 1]} : vector<48x512xbf16> to vector<48x64xbf16>
    %131 = vector.extract_strided_slice %20 {offsets = [0, 320], sizes = [48, 64], strides = [1, 1]} : vector<48x512xbf16> to vector<48x64xbf16>
    %132 = vector.extract_strided_slice %22 {offsets = [0, 320], sizes = [48, 64], strides = [1, 1]} : vector<48x512xbf16> to vector<48x64xbf16>
    %cst_55 = arith.constant dense<0.000000e+00> : vector<48x48xf32>
    %133 = tpu.matmul %130, %131, %cst_55 {dimension_numbers = #tpu.dot_dimension_numbers<[1], [1], [0], [0], [0, 0, 1, 0], [], []>} : vector<48x64xbf16>, vector<48x64xbf16>, vector<48x48xf32> -> vector<48x48xf32>
    %cst_56 = arith.constant -1.000000e+09 : f32
    %134 = vector.broadcast %cst_56 : f32 to vector<48x48xf32>
    %135 = arith.select %24, %134, %133 : vector<48x48xi1>, vector<48x48xf32>
    %cst_57 = arith.constant dense<0xFF800000> : vector<48xf32>
    %136 = vector.multi_reduction <maximumf>, %135, %cst_57 [1] : vector<48x48xf32> to vector<48xf32>
    %137 = vector.shape_cast %136 : vector<48xf32> to vector<48x1xf32>
    %138 = vector.broadcast %137 : vector<48x1xf32> to vector<48x48xf32>
    %139 = arith.subf %135, %138 : vector<48x48xf32>
    %140 = math.exp %139 : vector<48x48xf32>
    %cst_58 = arith.constant dense<0.000000e+00> : vector<48xf32>
    %141 = vector.multi_reduction <add>, %140, %cst_58 [1] : vector<48x48xf32> to vector<48xf32>
    %142 = vector.shape_cast %141 : vector<48xf32> to vector<48x1xf32>
    %143 = tpu.reciprocal %142 {approx = true} : vector<48x1xf32> -> vector<48x1xf32>
    %144 = vector.broadcast %143 : vector<48x1xf32> to vector<48x48xf32>
    %145 = arith.mulf %140, %144 : vector<48x48xf32>
    %c0_59 = arith.constant 0 : index
    %c5 = arith.constant 5 : index
    %c0_60 = arith.constant 0 : index
    %c0_61 = arith.constant 0 : index
    %146 = vector.load %arg9[%c0_59, %c5, %c0_60, %c0_61] : memref<1x8x48x48xf32, #tpu.memory_space<vmem>>, vector<1x1x48x48xf32>
    %147 = vector.shape_cast %146 : vector<1x1x48x48xf32> to vector<48x48xf32>
    %148 = vector.shape_cast %145 : vector<48x48xf32> to vector<1x1x48x48xf32>
    tpu.vector_store %arg9[%c0_59, %c5, %c0_60, %c0_61], %148 {strides = array<i32>} : memref<1x8x48x48xf32, #tpu.memory_space<vmem>>, vector<1x1x48x48xf32>,
    %149 = arith.truncf %145 : vector<48x48xf32> to vector<48x48xbf16>
    %cst_62 = arith.constant dense<0.000000e+00> : vector<48x64xf32>
    %150 = tpu.matmul %149, %132, %cst_62 {dimension_numbers = #tpu.dot_dimension_numbers<[1], [0], [0], [1], [0, 0, 1, 1], [], []>} : vector<48x48xbf16>, vector<48x64xbf16>, vector<48x64xf32> -> vector<48x64xf32>
    %151 = vector.extract_strided_slice %18 {offsets = [0, 384], sizes = [48, 64], strides = [1, 1]} : vector<48x512xbf16> to vector<48x64xbf16>
    %152 = vector.extract_strided_slice %20 {offsets = [0, 384], sizes = [48, 64], strides = [1, 1]} : vector<48x512xbf16> to vector<48x64xbf16>
    %153 = vector.extract_strided_slice %22 {offsets = [0, 384], sizes = [48, 64], strides = [1, 1]} : vector<48x512xbf16> to vector<48x64xbf16>
    %cst_63 = arith.constant dense<0.000000e+00> : vector<48x48xf32>
    %154 = tpu.matmul %151, %152, %cst_63 {dimension_numbers = #tpu.dot_dimension_numbers<[1], [1], [0], [0], [0, 0, 1, 0], [], []>} : vector<48x64xbf16>, vector<48x64xbf16>, vector<48x48xf32> -> vector<48x48xf32>
    %cst_64 = arith.constant -1.000000e+09 : f32
    %155 = vector.broadcast %cst_64 : f32 to vector<48x48xf32>
    %156 = arith.select %24, %155, %154 : vector<48x48xi1>, vector<48x48xf32>
    %cst_65 = arith.constant dense<0xFF800000> : vector<48xf32>
    %157 = vector.multi_reduction <maximumf>, %156, %cst_65 [1] : vector<48x48xf32> to vector<48xf32>
    %158 = vector.shape_cast %157 : vector<48xf32> to vector<48x1xf32>
    %159 = vector.broadcast %158 : vector<48x1xf32> to vector<48x48xf32>
    %160 = arith.subf %156, %159 : vector<48x48xf32>
    %161 = math.exp %160 : vector<48x48xf32>
    %cst_66 = arith.constant dense<0.000000e+00> : vector<48xf32>
    %162 = vector.multi_reduction <add>, %161, %cst_66 [1] : vector<48x48xf32> to vector<48xf32>
    %163 = vector.shape_cast %162 : vector<48xf32> to vector<48x1xf32>
    %164 = tpu.reciprocal %163 {approx = true} : vector<48x1xf32> -> vector<48x1xf32>
    %165 = vector.broadcast %164 : vector<48x1xf32> to vector<48x48xf32>
    %166 = arith.mulf %161, %165 : vector<48x48xf32>
    %c0_67 = arith.constant 0 : index
    %c6 = arith.constant 6 : index
    %c0_68 = arith.constant 0 : index
    %c0_69 = arith.constant 0 : index
    %167 = vector.load %arg9[%c0_67, %c6, %c0_68, %c0_69] : memref<1x8x48x48xf32, #tpu.memory_space<vmem>>, vector<1x1x48x48xf32>
    %168 = vector.shape_cast %167 : vector<1x1x48x48xf32> to vector<48x48xf32>
    %169 = vector.shape_cast %166 : vector<48x48xf32> to vector<1x1x48x48xf32>
    tpu.vector_store %arg9[%c0_67, %c6, %c0_68, %c0_69], %169 {strides = array<i32>} : memref<1x8x48x48xf32, #tpu.memory_space<vmem>>, vector<1x1x48x48xf32>,
    %170 = arith.truncf %166 : vector<48x48xf32> to vector<48x48xbf16>
    %cst_70 = arith.constant dense<0.000000e+00> : vector<48x64xf32>
    %171 = tpu.matmul %170, %153, %cst_70 {dimension_numbers = #tpu.dot_dimension_numbers<[1], [0], [0], [1], [0, 0, 1, 1], [], []>} : vector<48x48xbf16>, vector<48x64xbf16>, vector<48x64xf32> -> vector<48x64xf32>
    %172 = vector.extract_strided_slice %18 {offsets = [0, 448], sizes = [48, 64], strides = [1, 1]} : vector<48x512xbf16> to vector<48x64xbf16>
    %173 = vector.extract_strided_slice %20 {offsets = [0, 448], sizes = [48, 64], strides = [1, 1]} : vector<48x512xbf16> to vector<48x64xbf16>
    %174 = vector.extract_strided_slice %22 {offsets = [0, 448], sizes = [48, 64], strides = [1, 1]} : vector<48x512xbf16> to vector<48x64xbf16>
    %cst_71 = arith.constant dense<0.000000e+00> : vector<48x48xf32>
    %175 = tpu.matmul %172, %173, %cst_71 {dimension_numbers = #tpu.dot_dimension_numbers<[1], [1], [0], [0], [0, 0, 1, 0], [], []>} : vector<48x64xbf16>, vector<48x64xbf16>, vector<48x48xf32> -> vector<48x48xf32>
    %cst_72 = arith.constant -1.000000e+09 : f32
    %176 = vector.broadcast %cst_72 : f32 to vector<48x48xf32>
    %177 = arith.select %24, %176, %175 : vector<48x48xi1>, vector<48x48xf32>
    %cst_73 = arith.constant dense<0xFF800000> : vector<48xf32>
    %178 = vector.multi_reduction <maximumf>, %177, %cst_73 [1] : vector<48x48xf32> to vector<48xf32>
    %179 = vector.shape_cast %178 : vector<48xf32> to vector<48x1xf32>
    %180 = vector.broadcast %179 : vector<48x1xf32> to vector<48x48xf32>
    %181 = arith.subf %177, %180 : vector<48x48xf32>
    %182 = math.exp %181 : vector<48x48xf32>
    %cst_74 = arith.constant dense<0.000000e+00> : vector<48xf32>
    %183 = vector.multi_reduction <add>, %182, %cst_74 [1] : vector<48x48xf32> to vector<48xf32>
    %184 = vector.shape_cast %183 : vector<48xf32> to vector<48x1xf32>
    %185 = tpu.reciprocal %184 {approx = true} : vector<48x1xf32> -> vector<48x1xf32>
    %186 = vector.broadcast %185 : vector<48x1xf32> to vector<48x48xf32>
    %187 = arith.mulf %182, %186 : vector<48x48xf32>
    %c0_75 = arith.constant 0 : index
    %c7 = arith.constant 7 : index
    %c0_76 = arith.constant 0 : index
    %c0_77 = arith.constant 0 : index
    %188 = vector.load %arg9[%c0_75, %c7, %c0_76, %c0_77] : memref<1x8x48x48xf32, #tpu.memory_space<vmem>>, vector<1x1x48x48xf32>
    %189 = vector.shape_cast %188 : vector<1x1x48x48xf32> to vector<48x48xf32>
    %190 = vector.shape_cast %187 : vector<48x48xf32> to vector<1x1x48x48xf32>
    tpu.vector_store %arg9[%c0_75, %c7, %c0_76, %c0_77], %190 {strides = array<i32>} : memref<1x8x48x48xf32, #tpu.memory_space<vmem>>, vector<1x1x48x48xf32>,
    %191 = arith.truncf %187 : vector<48x48xf32> to vector<48x48xbf16>
    %cst_78 = arith.constant dense<0.000000e+00> : vector<48x64xf32>
    %192 = tpu.matmul %191, %174, %cst_78 {dimension_numbers = #tpu.dot_dimension_numbers<[1], [0], [0], [1], [0, 0, 1, 1], [], []>} : vector<48x48xbf16>, vector<48x64xbf16>, vector<48x64xf32> -> vector<48x64xf32>
    %193 = tpu.concatenate %45, %66, %87, %108, %129, %150, %171, %192 in 1 : vector<48x64xf32>, vector<48x64xf32>, vector<48x64xf32>, vector<48x64xf32>, vector<48x64xf32>, vector<48x64xf32>, vector<48x64xf32>, vector<48x64xf32> -> vector<48x512xf32>
    %194 = arith.truncf %193 : vector<48x512xf32> to vector<48x512xbf16>
    %cst_79 = arith.constant dense<0.000000e+00> : vector<48x32xf32>
    %195 = tpu.matmul %194, %9, %cst_79 {dimension_numbers = #tpu.dot_dimension_numbers<[1], [0], [0], [1], [0, 0, 1, 1], [], []>} : vector<48x512xbf16>, vector<512x32xbf16>, vector<48x32xf32> -> vector<48x32xf32>
    %196 = arith.addf %195, %3 : vector<48x32xf32>
    %cst_80 = arith.constant dense<0.000000e+00> : vector<48xf32>
    %197 = vector.multi_reduction <add>, %196, %cst_80 [1] : vector<48x32xf32> to vector<48xf32>
    %198 = vector.shape_cast %197 : vector<48xf32> to vector<48x1xf32>
    %cst_81 = arith.constant 3.200000e+01 : f32
    %199 = vector.broadcast %cst_81 : f32 to vector<48x1xf32>
    %200 = arith.divf %198, %199 : vector<48x1xf32>
    %201 = vector.broadcast %200 : vector<48x1xf32> to vector<48x32xf32>
    %202 = arith.subf %196, %201 : vector<48x32xf32>
    %203 = arith.mulf %202, %202 : vector<48x32xf32>
    %cst_82 = arith.constant dense<0.000000e+00> : vector<48xf32>
    %204 = vector.multi_reduction <add>, %203, %cst_82 [1] : vector<48x32xf32> to vector<48xf32>
    %205 = vector.shape_cast %204 : vector<48xf32> to vector<48x1xf32>
    %cst_83 = arith.constant 3.200000e+01 : f32
    %206 = vector.broadcast %cst_83 : f32 to vector<48x1xf32>
    %207 = arith.divf %205, %206 : vector<48x1xf32>
    %cst_84 = arith.constant 9.99999974E-6 : f32
    %208 = vector.broadcast %cst_84 : f32 to vector<48x1xf32>
    %209 = arith.addf %207, %208 : vector<48x1xf32>
    %210 = math.rsqrt %209 : vector<48x1xf32>
    %211 = vector.broadcast %210 : vector<48x1xf32> to vector<48x32xf32>
    %212 = arith.mulf %202, %211 : vector<48x32xf32>
    %c0_85 = arith.constant 0 : index
    %c0_86 = arith.constant 0 : index
    %c0_87 = arith.constant 0 : index
    %213 = vector.load %arg6[%c0_85, %c0_86, %c0_87] : memref<1x32x2048xbf16, #tpu.memory_space<vmem>>, vector<1x32x2048xbf16>
    %214 = vector.shape_cast %213 : vector<1x32x2048xbf16> to vector<32x2048xbf16>
    %c0_88 = arith.constant 0 : index
    %c0_89 = arith.constant 0 : index
    %c0_90 = arith.constant 0 : index
    %215 = vector.load %arg7[%c0_88, %c0_89, %c0_90] : memref<1x2048x32xbf16, #tpu.memory_space<vmem>>, vector<1x2048x32xbf16>
    %216 = vector.shape_cast %215 : vector<1x2048x32xbf16> to vector<2048x32xbf16>
    %217 = arith.truncf %212 : vector<48x32xf32> to vector<48x32xbf16>
    %cst_91 = arith.constant dense<0.000000e+00> : vector<48x2048xf32>
    %218 = tpu.matmul %217, %214, %cst_91 {dimension_numbers = #tpu.dot_dimension_numbers<[1], [0], [0], [1], [0, 0, 1, 1], [], []>} : vector<48x32xbf16>, vector<32x2048xbf16>, vector<48x2048xf32> -> vector<48x2048xf32>
    %cst_92 = arith.constant 0.000000e+00 : f32
    %219 = vector.broadcast %cst_92 : f32 to vector<48x2048xf32>
    %220 = arith.maximumf %218, %219 : vector<48x2048xf32>
    %221 = arith.truncf %220 : vector<48x2048xf32> to vector<48x2048xbf16>
    %cst_93 = arith.constant dense<0.000000e+00> : vector<48x32xf32>
    %222 = tpu.matmul %221, %216, %cst_93 {dimension_numbers = #tpu.dot_dimension_numbers<[1], [0], [0], [1], [0, 0, 1, 1], [], []>} : vector<48x2048xbf16>, vector<2048x32xbf16>, vector<48x32xf32> -> vector<48x32xf32>
    %223 = arith.addf %222, %212 : vector<48x32xf32>
    %cst_94 = arith.constant dense<0.000000e+00> : vector<48xf32>
    %224 = vector.multi_reduction <add>, %223, %cst_94 [1] : vector<48x32xf32> to vector<48xf32>
    %225 = vector.shape_cast %224 : vector<48xf32> to vector<48x1xf32>
    %cst_95 = arith.constant 3.200000e+01 : f32
    %226 = vector.broadcast %cst_95 : f32 to vector<48x1xf32>
    %227 = arith.divf %225, %226 : vector<48x1xf32>
    %228 = vector.broadcast %227 : vector<48x1xf32> to vector<48x32xf32>
    %229 = arith.subf %223, %228 : vector<48x32xf32>
    %230 = arith.mulf %229, %229 : vector<48x32xf32>
    %cst_96 = arith.constant dense<0.000000e+00> : vector<48xf32>
    %231 = vector.multi_reduction <add>, %230, %cst_96 [1] : vector<48x32xf32> to vector<48xf32>
    %232 = vector.shape_cast %231 : vector<48xf32> to vector<48x1xf32>
    %cst_97 = arith.constant 3.200000e+01 : f32
    %233 = vector.broadcast %cst_97 : f32 to vector<48x1xf32>
    %234 = arith.divf %232, %233 : vector<48x1xf32>
    %cst_98 = arith.constant 9.99999974E-6 : f32
    %235 = vector.broadcast %cst_98 : f32 to vector<48x1xf32>
    %236 = arith.addf %234, %235 : vector<48x1xf32>
    %237 = math.rsqrt %236 : vector<48x1xf32>
    %238 = vector.broadcast %237 : vector<48x1xf32> to vector<48x32xf32>
    %239 = arith.mulf %229, %238 : vector<48x32xf32>
    %c0_99 = arith.constant 0 : index
    %c0_100 = arith.constant 0 : index
    %240 = vector.load %arg10[%c0_99, %c0_100] : memref<48x32xf32, #tpu.memory_space<vmem>>, vector<48x32xf32>
    tpu.vector_store %arg10[%c0_99, %c0_100], %239 {strides = array<i32>} : memref<48x32xf32, #tpu.memory_space<vmem>>, vector<48x32xf32>,
    %c0_101 = arith.constant 0 : index
    %c0_102 = arith.constant 0 : index
    %c0_103 = arith.constant 0 : index
    %241 = vector.load %arg8[%c0_101, %c0_102, %c0_103] : memref<1x48x32xf32, #tpu.memory_space<vmem>>, vector<1x48x32xf32>
    %242 = vector.shape_cast %241 : vector<1x48x32xf32> to vector<48x32xf32>
    %243 = vector.shape_cast %239 : vector<48x32xf32> to vector<1x48x32xf32>
    tpu.vector_store %arg8[%c0_101, %c0_102, %c0_103], %243 {strides = array<i32>} : memref<1x48x32xf32, #tpu.memory_space<vmem>>, vector<1x48x32xf32>,
    return
  }
  func.func @transform_0(%arg0: i32, %arg1: i32) -> (i32, i32, i32) {
    %c0_i32 = arith.constant 0 : i32
    %c0_i32_0 = arith.constant 0 : i32
    %c0_i32_1 = arith.constant 0 : i32
    return %arg0, %c0_i32, %c0_i32_0 : i32, i32, i32
  }
  func.func @transform_1(%arg0: i32, %arg1: i32) -> (i32, i32, i32) {
    %c0_i32 = arith.constant 0 : i32
    %c0_i32_0 = arith.constant 0 : i32
    %c0_i32_1 = arith.constant 0 : i32
    return %arg0, %c0_i32, %c0_i32_0 : i32, i32, i32
  }
  func.func @transform_2(%arg0: i32, %arg1: i32) -> (i32, i32, i32) {
    %c0_i32 = arith.constant 0 : i32
    %c0_i32_0 = arith.constant 0 : i32
    %c0_i32_1 = arith.constant 0 : i32
    return %arg1, %c0_i32, %c0_i32_0 : i32, i32, i32
  }
  func.func @transform_3(%arg0: i32, %arg1: i32) -> (i32, i32, i32) {
    %c0_i32 = arith.constant 0 : i32
    %c0_i32_0 = arith.constant 0 : i32
    %c0_i32_1 = arith.constant 0 : i32
    return %arg1, %c0_i32, %c0_i32_0 : i32, i32, i32
  }
  func.func @transform_4(%arg0: i32, %arg1: i32) -> (i32, i32, i32) {
    %c0_i32 = arith.constant 0 : i32
    %c0_i32_0 = arith.constant 0 : i32
    %c0_i32_1 = arith.constant 0 : i32
    return %arg1, %c0_i32, %c0_i32_0 : i32, i32, i32
  }
  func.func @transform_5(%arg0: i32, %arg1: i32) -> (i32, i32, i32) {
    %c0_i32 = arith.constant 0 : i32
    %c0_i32_0 = arith.constant 0 : i32
    %c0_i32_1 = arith.constant 0 : i32
    return %arg1, %c0_i32, %c0_i32_0 : i32, i32, i32
  }
  func.func @transform_6(%arg0: i32, %arg1: i32) -> (i32, i32, i32) {
    %c0_i32 = arith.constant 0 : i32
    %c0_i32_0 = arith.constant 0 : i32
    %c0_i32_1 = arith.constant 0 : i32
    return %arg0, %c0_i32, %c0_i32_0 : i32, i32, i32
  }
  func.func @transform_7(%arg0: i32, %arg1: i32) -> (i32, i32, i32, i32) {
    %c0_i32 = arith.constant 0 : i32
    %c0_i32_0 = arith.constant 0 : i32
    %c0_i32_1 = arith.constant 0 : i32
    return %arg1, %arg0, %c0_i32, %c0_i32_0 : i32, i32, i32, i32
  }
}

</mosaic_0001>

<bundles_post_ra>
// kernel: tpu_custom_call.1
= control target key start
LH: loop header
LB: loop body
LE: loop exit
PB: predicated region body
PF: predicated region fallthrough
CT: control target
= control target key end

     0   :  { %s9634_s0 = inlined_call_operand.vmem [shape: f32[2,48,32], index: 0, kind: input, shape index: {}]   ;;  %s9635_s1 = inlined_call_operand.vmem [shape: f32[2,48,48], index: 1, kind: input, shape index: {}]   ;;  %s9636_s2 = inlined_call_operand.vmem [shape: bf16[6,32,1536], index: 2, kind: input, shape index: {}]   ;;  %s9637_s3 = inlined_call_operand.vmem [shape: bf16[6,512,32], index: 3, kind: input, shape index: {}]   ;;  %s9638_s4 = inlined_call_operand.vmem [shape: bf16[6,32,2048], index: 4, kind: input, shape index: {}]   ;;  %s9639_s5 = inlined_call_operand.vmem [shape: bf16[6,2048,32], index: 5, kind: input, shape index: {}]   ;;  %s9640_s6 = inlined_call_operand.vmem [shape: f32[2,48,32], index: 6, kind: output, shape index: {0}]   ;;  %s9641_s7 = inlined_call_operand.hbm [shape: f32[6,16,48,48], index: 7, kind: output, shape index: {1}]  }
   0x1   :  { %9655 = sst [smem:[#allocation18_spill]] %s9634_s0 }
   0x2   :  { %9656 = sst [smem:[#allocation19_spill]] %s9635_s1 }
   0x3   :  { %9657 = sst [smem:[#allocation20_spill]] %s9637_s3 }
   0x4   :  { %13 = vsyncpa [#allocation4], 0 }
   0x5   :  { %15 = vsyncpa [#allocation4 + $0x1], 0  ;;  %s7320_s24 = smov 0   ;;  %s7322_s25 = smov 0  }
   0x6   :  { %s7324_s26 = smov 0   ;;  %s7326_s27 = smov 0  }
   0x7   :  { %s7328_s28 = smov 0   ;;  %s7330_s29 = smov 0  }
   0x8   :  { %s7332_s30 = smov 0   ;;  %s7334_s8 = smov 0  }
   0x9 LB: > { %9658 = sst [smem:[#allocation6_spill]] %s7246_s24  ;;  %s5538_s9 = sadd.s32 4294967295, %s7274_s8   ;;  %s7274_s8 = sphi %s7334_s8, %s21_s8   ;;  %s7270_s30 = sphi %s7332_s30, %s9691_s30   ;;  %s7266_s29 = sphi %s7330_s29, %s9686_s29   ;;  %s7262_s28 = sphi %s7328_s28, %s9685_s28   ;;  %s7258_s27 = sphi %s7326_s27, %s9684_s27   ;;  %s7254_s26 = sphi %s7324_s26, %s9690_s26   ;;  %s7250_s25 = sphi %s7322_s25, %s9689_s25   ;;  %s7246_s24 = sphi %s7320_s24, %s9688_s24  }
   0xa   : > { %9659 = sst [smem:[#allocation7_spill]] %s7254_s26  ;;  %s5539_s10 = sadd.s32 4294967294, %s7274_s8  }
   0xb   : > { %9660 = sst [smem:[#allocation8_spill]] %s7266_s29  ;;  %s30_s11 = sadd.s32 1, %s7266_s29 }
   0xc   : > { %9661 = sst [smem:[#allocation9_spill]] %s7270_s30  ;;  %p31_p0 = scmp.ge.s32.totalorder %s30_s11, 6 }
   0xd   : > { %9662 = sst [smem:[#allocation10_spill]] %s7274_s8  ;;  %s33_s12 = sadd.s32 1, %s7270_s30 }
   0xe   : > { %p234_p1 = scmp.ne.s32.totalorder %s7254_s26, %s7250_s25  ;;  %p235_p2 = scmp.eq.s32.totalorder %s5538_s9, 11 }
   0xf   : > { %s9693_s11 = smov (%p31_p0, %s30_s11), 0  ;;  %s9695_s12 = smov (!%p31_p0, %s33_s12), %s7270_s30 }
  0x10   : > { %9663 = sst [smem:[#allocation11_spill]] %s9693_s11  ;;  %s219_s13 = ssub.s32 %s7266_s29, %s9693_s11 }
  0x11   : > { %p7371_p3 = por %p235_p2, %p234_p1  ;;  %p35_p4 = scmp.ge.s32.totalorder %s9695_s12, 2 }
  0x12   : > { %p240_p5 = scmp.ne.s32.totalorder %s7250_s25, %s7246_s24  ;;  %p241_p6 = scmp.eq.s32.totalorder %s5539_s10, 11 }
  0x13   : > { %p5542_p7 = scmp.ge.s32.totalorder %s7274_s8, 1  ;;  %s9697_s12 = smov (%p35_p4, %s9695_s12), 0 }
  0x14   : > { %9665 = sst [smem:[#allocation12_spill]] %s9697_s12  ;;  %p7380_p8 = por %p241_p6, %p240_p5 }
  0x15   : > { %p307_p9 = scmp.lt.s32.totalorder %s7274_s8, 13  ;;  %s220_s16 = ssub.s32 %s7270_s30, %s9697_s12 }
  0x16   : > { %s9666_s15 = scalar_select %p7380_p8, 1, 0 }
  0x17   : > { %s224_s17 = sadd.s32 1, %s7254_s26  ;;  %s221_s18 = sor.u32 %s220_s16, %s219_s13 }
  0x18   : > { %9667 = sst [smem:[#allocation13_spill]] %s9666_s15  ;;  %p308_p10 = pnand %p5542_p7, %p307_p9 }
  0x19   : > { %p222_p11 = scmp.eq.s32.totalorder %s221_s18, 0 }
  0x1a   : > { %311 = sbr.rel (%p308_p10) target bundleno = 2522 (0x9da), region = 44 }
  0x1b   : > { %s7389_s19 = scalar_select %p222_p11, %s7254_s26, %s224_s17  }
  0x1d   : > { %9668 = sst [smem:[#allocation14_spill]] %s7389_s19 }
  0x1f   : > { %s9647_s20 = sand.u32 1, %s7250_s25   ;;  %p369_p12 = scmp.lt.s32.totalorder %s7262_s28, 1 }
  0x20   : > { %s6816_s21 = smul.u32 384, %s9647_s20  ;;  %p379_p13 = scmp.lt.s32.totalorder %s7258_s27, 5 }
  0x21   : > { %s370_s22 = scalar_select %p369_p12, %s7262_s28, 1 }
  0x22   : > { %s380_s9 = scalar_select %p379_p13, %s7258_s27, 5 }
  0x23   : > { %s6817_s23 = smul.u32 48, %s370_s22  ;;  %s9669_s0 = sld [smem:[#allocation18_spill]] }
  0x24   : > { %s9670_s1 = sld [smem:[#allocation19_spill]]  ;;  %s6818_s11 = smul.u32 192, %s380_s9 }
  0x25   : > { %s6597_s30 = sshll.u32 %s380_s9, 8  ;;  %s9671_s3 = sld [smem:[#allocation20_spill]] }
  0x26   : > { %s7414_s22 = scalar_lea.vmem %s9638_s4, %s6597_s30  ;;  %s7419_s13 = scalar_lea.vmem %s9636_s2, %s6818_s11 }
  0x27   : > { %s6599_s17 = sshll.u32 %s380_s9, 10  ;;  %s7429_s19 = scalar_lea.vmem %s9640_s6, %s6817_s23 }
  0x28   : > { %p5553_p0 = scmp.ne.s32.totalorder %s7258_s27, 0 }
  0x29   : > { %s373_s16 = scalar_lea.vmem %s9669_s0, %s6817_s23 }
  0x2a   : > { %s7404_s12 = scalar_lea.vmem %s9670_s1, %s6817_s23  ;;  %s7424_s1 = scalar_lea.vmem %s9639_s5, %s6599_s17 }
  0x2b   : > { %s7409_s26 = scalar_lea.vmem %s9671_s3, %s6597_s30  ;;  %s7431_s3 = scalar_lea.vmem [#allocation3], %s6816_s21 }
  0x2c   : > { %409 = sbr.rel (%p5553_p0) target bundleno = 56 (0x38), region = 48 }
  0x31   : > { %v410_v0 = vld [vmem:[%s373_s16] sm:$0xff]  ;;  %vm416_vm0 = vcmask 261120   ;;  %v411_v1 = vld [vmem:[%s373_s16 + $0x8] sm:$0xff]  ;;  %v412_v2 = vld [vmem:[%s373_s16 + $0x10] sm:$0xff] }
  0x32   : > { %417 = vst.msk [vmem:[#allocation2] sm:$0xff] %vm416_vm0, %v410_v0  ;;  %v413_v3 = vld [vmem:[%s373_s16 + $0x18] sm:$0xff]  ;;  %v414_v4 = vld [vmem:[%s373_s16 + $0x20] sm:$0xff]  ;;  %v415_v5 = vld [vmem:[%s373_s16 + $0x28] sm:$0xff] }
  0x33   : > { %418 = vst.msk [vmem:[#allocation2 + $0x8] sm:$0xff] %vm416_vm0, %v411_v1 }
  0x34   : > { %419 = vst.msk [vmem:[#allocation2 + $0x10] sm:$0xff] %vm416_vm0, %v412_v2 }
  0x35   : > { %420 = vst.msk [vmem:[#allocation2 + $0x18] sm:$0xff] %vm416_vm0, %v413_v3 }
  0x36   : > { %421 = vst.msk [vmem:[#allocation2 + $0x20] sm:$0xff] %vm416_vm0, %v414_v4 }
  0x37   : > { %422 = vst.msk [vmem:[#allocation2 + $0x28] sm:$0xff] %vm416_vm0, %v415_v5 }
  0x38 PF: > { %v5572_v6 = vld [vmem:[%s7419_s13 + $0x60] sm:$0xf]  ;;  %v6618_v7 = vld [vmem:[%s7419_s13 + $0x8c] sm:$0xf0]  ;;  %v6612_v8 = vld [vmem:[%s7419_s13 + $0x64] sm:$0xf] }
  0x39   : > { %v5573_v9 = vor.u32 %v6618_v7, %v5572_v6  ;;  %v5574_v10 = vld [vmem:[%s7419_s13 + $0x90] sm:$0xf0]  ;;  %v5580_v11 = vld [vmem:[%s7419_s13 + $0x68] sm:$0xf]  ;;  %v6619_v12 = vld [vmem:[%s7419_s13 + $0x94] sm:$0xf0] }
  0x3a   : > { %v5577_v13 = vor.u32 %v6612_v8, %v5574_v10  ;;  %v5581_v14 = vor.u32 %v6619_v12, %v5580_v11  ;;  %v6613_v15 = vld [vmem:[%s7419_s13 + $0x6c] sm:$0xf]  ;;  %v5582_v16 = vld [vmem:[%s7419_s13 + $0x98] sm:$0xf0]  ;;  %v5556_v17 = vld [vmem:[%s7419_s13] sm:$0xf] }
  0x3b   : > { %582 = vmatpush.bf16.msra.mxu0 %v5573_v9  ;;  %v5585_v18 = vor.u32 %v6613_v15, %v5582_v16  ;;  %v6606_v19 = vld [vmem:[%s7419_s13 + $0x2c] sm:$0xf0]  ;;  %v6600_v20 = vld [vmem:[%s7419_s13 + $0x4] sm:$0xf]  ;;  %v5558_v21 = vld [vmem:[%s7419_s13 + $0x30] sm:$0xf0] }
  0x3c   : > { %606 = vmatpush.bf16.msra.mxu1 %v5577_v13  ;;  %630 = vmatpush.bf16.msra.mxu2 %v5581_v14  ;;  %v5557_v22 = vor.u32 %v6606_v19, %v5556_v17  ;;  %v5561_v23 = vor.u32 %v6600_v20, %v5558_v21  ;;  %v5564_v24 = vld [vmem:[%s7419_s13 + $0x8] sm:$0xf]  ;;  %v6607_v25 = vld [vmem:[%s7419_s13 + $0x34] sm:$0xf0]  ;;  %v6601_v26 = vld [vmem:[%s7419_s13 + $0xc] sm:$0xf] }
  0x3d   : > { %654 = vmatpush.bf16.msra.mxu3 %v5585_v18  ;;  %v5565_v27 = vor.u32 %v6607_v25, %v5564_v24  ;;  %v5566_v28 = vld [vmem:[%s7419_s13 + $0x38] sm:$0xf0]  ;;  %v423_v29 = vld [vmem:[#allocation2] sm:$0xff]  ;;  %v424_v30 = vld [vmem:[#allocation2 + $0x8] sm:$0xff]  ;;  %vm566_vm1 = vcmask 261120   ;;  %s7276_s0 = smov 64  }
  0x3e   : > { %v5569_v31 = vor.u32 %v6601_v26, %v5566_v28  ;;  %v7450_v32 = vpack.c.bf16 %v424_v30, %v423_v29  ;;  %v5632_v33 = vld [vmem:[%s7419_s13 + $0x70] sm:$0xf]  ;;  %v6620_v34 = vld [vmem:[%s7419_s13 + $0x9c] sm:$0xf0]  ;;  %v6614_v35 = vld [vmem:[%s7419_s13 + $0x74] sm:$0xf] }
  0x3f   : > { %583 = vmatpush.bf16.msra.mxu0 %v5557_v22  ;;  %v5634_v36 = vld [vmem:[%s7419_s13 + $0xa0] sm:$0xf0]  ;;  %v5633_v37 = vor.u32 %v6620_v34, %v5632_v33  ;;  %v5640_v39 = vld [vmem:[%s7419_s13 + $0x78] sm:$0xf]  ;;  %v6621_v40 = vld [vmem:[%s7419_s13 + $0xa4] sm:$0xf0] }
  0x40   : > { %607 = vmatpush.bf16.msra.mxu1 %v5561_v23  ;;  %631 = vmatpush.bf16.msra.mxu2 %v5565_v27  ;;  %v5637_v38 = vor.u32 %v6614_v35, %v5634_v36  ;;  %v6615_v41 = vld [vmem:[%s7419_s13 + $0x7c] sm:$0xf]  ;;  %v5641_v42 = vor.u32 %v6621_v40, %v5640_v39  ;;  %v5642_v43 = vld [vmem:[%s7419_s13 + $0xa8] sm:$0xf0]  ;;  %v5600_v44 = vld [vmem:[%s7419_s13 + $0x10] sm:$0xf] }
  0x41   : > { %655 = vmatpush.bf16.msra.mxu3 %v5569_v31  ;;  %v6608_v45 = vld [vmem:[%s7419_s13 + $0x3c] sm:$0xf0]  ;;  %v5645_v46 = vor.u32 %v6615_v41, %v5642_v43  ;;  %v6602_v48 = vld [vmem:[%s7419_s13 + $0x14] sm:$0xf]  ;;  %v5602_v49 = vld [vmem:[%s7419_s13 + $0x40] sm:$0xf0] }
  0x42   : > { %5586 = vmatmul.msk.bf16.vlgmr.msra.gmra.mxu0 %vm566_vm1, %v7450_v32  ;;  %v5601_v47 = vor.u32 %v6608_v45, %v5600_v44  ;;  %v5608_v50 = vld [vmem:[%s7419_s13 + $0x18] sm:$0xf]  ;;  %v5605_v51 = vor.u32 %v6602_v48, %v5602_v49  ;;  %v6609_v52 = vld [vmem:[%s7419_s13 + $0x44] sm:$0xf0]  ;;  %v6603_v53 = vld [vmem:[%s7419_s13 + $0x1c] sm:$0xf] }
  0x43   : > { %5589 = vmatmul.msk.bf16.vlgmr.msra.gmra.mxu1 %vm566_vm1, %v7450_v32  ;;  %5592 = vmatmul.msk.bf16.vlgmr.msra.gmra.mxu2 %vm566_vm1, %v7450_v32  ;;  %v5610_v54 = vld [vmem:[%s7419_s13 + $0x48] sm:$0xf0]  ;;  %v5609_v55 = vor.u32 %v6609_v52, %v5608_v50  ;;  %v425_v57 = vld [vmem:[#allocation2 + $0x10] sm:$0xff]  ;;  %v426_v58 = vld [vmem:[#allocation2 + $0x18] sm:$0xff]  ;;  %vm1040_vm2 = vcmask 523264   ;;  %vm1089_vm4 = vcmask 392192  }
  0x44   : > { %782 = vmatpush.bf16.msrb.mxu1 %v5637_v38  ;;  %5595 = vmatmul.msk.bf16.vlgmr.msra.gmra.mxu3 %vm566_vm1, %v7450_v32  ;;  %v5613_v56 = vor.u32 %v6603_v53, %v5610_v54  ;;  %v7476_v59 = vpack.c.bf16 %v426_v58, %v425_v57  ;;  %v427_v60 = vld [vmem:[#allocation2 + $0x20] sm:$0xff]  ;;  %v428_v61 = vld [vmem:[#allocation2 + $0x28] sm:$0xff]  ;;  %v6622_v0 = vld [vmem:[%s7419_s13 + $0xac] sm:$0xf0]  ;;  %s6820_s24 = smul.u32 96, %s7258_s27  ;;  %s5374_s15 = sshll.u32 %s7431_s3, 4  ;;  %s5375_s15 = int_to_ptr.vmem [resolvable:$true] %s5374_s15 }
  0x45   : > { %758 = vmatpush.bf16.msrb.mxu0 %v5633_v37  ;;  %806 = vmatpush.bf16.msrb.mxu2 %v5641_v42  ;;  %v7486_v62 = vpack.c.bf16 %v428_v61, %v427_v60  ;;  %v5648_v63 = vld [vmem:[%s7419_s13 + $0x80] sm:$0xf]  ;;  %v6616_v1 = vld [vmem:[%s7419_s13 + $0x84] sm:$0xf]  ;;  %v5650_v3 = vld [vmem:[%s7419_s13 + $0xb0] sm:$0xf0] }
  0x46   : > { %830 = vmatpush.bf16.msrb.mxu3 %v5645_v46  ;;  %v5649_v2 = vor.u32 %v6622_v0, %v5648_v63  ;;  %v5653_v4 = vor.u32 %v6616_v1, %v5650_v3  ;;  %v5616_v5 = vld [vmem:[%s7419_s13 + $0x20] sm:$0xf]  ;;  %v6610_v6 = vld [vmem:[%s7419_s13 + $0x4c] sm:$0xf0]  ;;  %v6604_v7 = vld [vmem:[%s7419_s13 + $0x24] sm:$0xf] }
  0x47   : > { %v5617_v8 = vor.u32 %v6610_v6, %v5616_v5  ;;  %v5618_v9 = vld [vmem:[%s7419_s13 + $0x50] sm:$0xf0]  ;;  %v5656_v11 = vld [vmem:[%s7419_s13 + $0x88] sm:$0xf]  ;;  %v6623_v12 = vld [vmem:[%s7419_s13 + $0xb4] sm:$0xf0] }
  0x48   : > { %783 = vmatpush.bf16.msrb.mxu1 %v5605_v51  ;;  %v5621_v10 = vor.u32 %v6604_v7, %v5618_v9  ;;  %v6617_v13 = vld [vmem:[%s7419_s13 + $0x8c] sm:$0xf]  ;;  %v5657_v14 = vor.u32 %v6623_v12, %v5656_v11  ;;  %v5658_v15 = vld [vmem:[%s7419_s13 + $0xb8] sm:$0xf0]  ;;  %v5624_v17 = vld [vmem:[%s7419_s13 + $0x28] sm:$0xf] }
  0x49   : > { %759 = vmatpush.bf16.msrb.mxu0 %v5601_v47  ;;  %807 = vmatpush.bf16.msrb.mxu2 %v5609_v55  ;;  %v5661_v16 = vor.u32 %v6617_v13, %v5658_v15  ;;  %v6611_v18 = vld [vmem:[%s7419_s13 + $0x54] sm:$0xf0]  ;;  %v6605_v19 = vld [vmem:[%s7419_s13 + $0x2c] sm:$0xf]  ;;  %v5626_v21 = vld [vmem:[%s7419_s13 + $0x58] sm:$0xf0] }
  0x4a   : > { %831 = vmatpush.bf16.msrb.mxu3 %v5613_v56  ;;  %v5625_v20 = vor.u32 %v6611_v18, %v5624_v17  ;;  %v5629_v23 = vor.u32 %v6605_v19, %v5626_v21  ;;  %s9678_s21 = sand.u32 1, %s7250_s25  }
  0x4b   : > { %s5356_s23 = scalar_lea.sflag [#allocation4], %s9678_s21 }
  0x4c   : > { %878 = vmatpush.bf16.msra.mxu1 %v5653_v4 }
  0x4d   : > { %854 = vmatpush.bf16.msra.mxu0 %v5649_v2  ;;  %902 = vmatpush.bf16.msra.mxu2 %v5657_v14 }
  0x4e   : > { %926 = vmatpush.bf16.msra.mxu3 %v5661_v16 }
  0x50   : > { %879 = vmatpush.bf16.msra.mxu1 %v5621_v10 }
  0x51   : > { %855 = vmatpush.bf16.msra.mxu0 %v5617_v8  ;;  %903 = vmatpush.bf16.msra.mxu2 %v5625_v20 }
  0x52   : > { %5587 = vmatmul.msk.bf16.gmra.mxu0 %vm566_vm1, %v7476_v59  ;;  %927 = vmatpush.bf16.msra.mxu3 %v5629_v23 }
  0x53   : > { %5590 = vmatmul.msk.bf16.gmra.mxu1 %vm566_vm1, %v7476_v59  ;;  %5593 = vmatmul.msk.bf16.gmra.mxu2 %vm566_vm1, %v7476_v59 }
  0x54   : > { %5596 = vmatmul.msk.bf16.gmra.mxu3 %vm566_vm1, %v7476_v59 }
  0x62   : > { %5588 = vmatmul.msk.bf16.gmra.mxu0 %vm566_vm1, %v7486_v62 }
  0x63   : > { %5591 = vmatmul.msk.bf16.gmra.mxu1 %vm566_vm1, %v7486_v62  ;;  %5594 = vmatmul.msk.bf16.gmra.mxu2 %vm566_vm1, %v7486_v62 }
  0x64   : > { %5597 = vmatmul.msk.bf16.gmra.mxu3 %vm566_vm1, %v7486_v62 }
  0x72   : > { %5662 = vmatmul.msk.bf16.vlgmr.msrb.gmra.mxu0 %vm566_vm1, %v7450_v32 }
  0x73   : > { %5665 = vmatmul.msk.bf16.vlgmr.msrb.gmra.mxu1 %vm566_vm1, %v7450_v32  ;;  %5668 = vmatmul.msk.bf16.vlgmr.msrb.gmra.mxu2 %vm566_vm1, %v7450_v32 }
  0x74   : > { %5671 = vmatmul.msk.bf16.vlgmr.msrb.gmra.mxu3 %vm566_vm1, %v7450_v32 }
  0x82   : > { %5663 = vmatmul.msk.bf16.gmra.mxu0 %vm566_vm1, %v7476_v59 }
  0x83   : > { %5666 = vmatmul.msk.bf16.gmra.mxu1 %vm566_vm1, %v7476_v59  ;;  %5669 = vmatmul.msk.bf16.gmra.mxu2 %vm566_vm1, %v7476_v59 }
  0x84   : > { %5672 = vmatmul.msk.bf16.gmra.mxu3 %vm566_vm1, %v7476_v59 }
  0x92   : > { %5664 = vmatmul.msk.bf16.gmra.mxu0 %vm566_vm1, %v7486_v62 }
  0x93   : > { %5667 = vmatmul.msk.bf16.gmra.mxu1 %vm566_vm1, %v7486_v62  ;;  %5670 = vmatmul.msk.bf16.gmra.mxu2 %vm566_vm1, %v7486_v62 }
  0x94   : > { %5673 = vmatmul.msk.bf16.gmra.mxu3 %vm566_vm1, %v7486_v62 }
  0xa2   : > { %5674 = vmatmul.msk.bf16.vlgmr.msra.gmra.mxu0 %vm566_vm1, %v7450_v32 }
  0xa3   : > { %5677 = vmatmul.msk.bf16.vlgmr.msra.gmra.mxu1 %vm566_vm1, %v7450_v32  ;;  %5680 = vmatmul.msk.bf16.vlgmr.msra.gmra.mxu2 %vm566_vm1, %v7450_v32 }
  0xa4   : > { %5683 = vmatmul.msk.bf16.vlgmr.msra.gmra.mxu3 %vm566_vm1, %v7450_v32 }
  0xb2   : > { %5675 = vmatmul.msk.bf16.gmra.mxu0 %vm566_vm1, %v7476_v59 }
  0xb3   : > { %5678 = vmatmul.msk.bf16.gmra.mxu1 %vm566_vm1, %v7476_v59  ;;  %5681 = vmatmul.msk.bf16.gmra.mxu2 %vm566_vm1, %v7476_v59 }
  0xb4   : > { %5684 = vmatmul.msk.bf16.gmra.mxu3 %vm566_vm1, %v7476_v59 }
  0xbf   : > { %v7544_v22 = vpop.f32.mrf.mxu0 }
  0xc0   : > { %v7546_v24 = vpop.f32.mrf.mxu1 }
  0xc1   : > { %v945_v12 = vmul.f32 0.125, %v7546_v24 }
  0xc2   : > { %5676 = vmatmul.msk.bf16.gmra.mxu0 %vm566_vm1, %v7486_v62 }
  0xc3   : > { %5679 = vmatmul.msk.bf16.gmra.mxu1 %vm566_vm1, %v7486_v62  ;;  %5682 = vmatmul.msk.bf16.gmra.mxu2 %vm566_vm1, %v7486_v62 }
  0xc4   : > { %5685 = vmatmul.msk.bf16.gmra.mxu3 %vm566_vm1, %v7486_v62  ;;  %v944_v62 = vmul.f32 0.125, %v7544_v22 }
  0xc6   : > { %v633_v25 = vpop.f32.mrf.mxu2  ;;  %v7600_v23 = vpack.c.bf16 %v945_v12, %v944_v62 }
  0xc7   : > { %v587_v26 = vpop.f32.mrf.mxu0  ;;  %v946_v27 = vmul.f32 0.125, %v633_v25  ;;  %v657_v28 = vpop.f32.mrf.mxu3 }
  0xc8   : > { %v611_v29 = vpop.f32.mrf.mxu1  ;;  %v947_v30 = vmul.f32 0.125, %v657_v28  ;;  %v948_v9 = vmul.f32 0.125, %v587_v26 }
  0xc9   : > { %v949_v10 = vmul.f32 0.125, %v611_v29 }
  0xca   : > { %v7556_v31 = vpack.c.bf16 %v947_v30, %v946_v27  ;;  %v1016_v30 = vunpack.c.l.b16 %v7600_v23 }
  0xcb   : > { %v7594_v18 = vpack.c.bf16 %v949_v10, %v948_v9 }
  0xcd   : > { %v1017_v28 = vunpack.c.l.b16 %v7594_v18 }
  0xce   : > { %v7558_v33 = vpop.f32.mrf.mxu2 }
  0xcf   : > { %v590_v34 = vpop.f32.mrf.mxu0  ;;  %v7560_v35 = vpop.f32.mrf.mxu3 }
  0xd0   : > { %v614_v32 = vpop.f32.mrf.mxu1  ;;  %v952_v36 = vmul.f32 0.125, %v590_v34 }
  0xd1   : > { %v953_v37 = vmul.f32 0.125, %v614_v32  ;;  %v7610_v32 = vpack.c.b16 %v1017_v28, %v1016_v30 }
  0xd3   : > { %v7566_v45 = vpack.c.bf16 %v953_v37, %v952_v36 }
  0xd5   : > { %v1018_v49 = vunpack.c.l.b16 %v7566_v45 }
  0xd6   : > { %v638_v38 = vpop.f32.mrf.mxu2 }
  0xd7   : > { %v592_v39 = vpop.f32.mrf.mxu0  ;;  %v954_v40 = vmul.f32 0.125, %v638_v38  ;;  %v662_v41 = vpop.f32.mrf.mxu3 }
  0xd8   : > { %v956_v42 = vmul.f32 0.125, %v592_v39  ;;  %v616_v43 = vpop.f32.mrf.mxu1  ;;  %v955_v44 = vmul.f32 0.125, %v662_v41 }
  0xd9   : > { %v957_v46 = vmul.f32 0.125, %v616_v43 }
  0xda   : > { %v7568_v47 = vpack.c.bf16 %v955_v44, %v954_v40 }
  0xdb   : > { %v7570_v48 = vpack.c.bf16 %v957_v46, %v956_v42 }
  0xdd   : > { %v1019_v50 = vunpack.c.l.b16 %v7570_v48 }
  0xde   : > { %v7574_v51 = vpop.f32.mrf.mxu2 }
  0xdf   : > { %v595_v52 = vpop.f32.mrf.mxu0  ;;  %v7576_v53 = vpop.f32.mrf.mxu3  ;;  %v7578_v54 = vpack.c.b16 %v1019_v50, %v1018_v49  ;;  %v958_v62 = vmul.f32 0.125, %v7574_v51 }
  0xe0   : > { %v960_v55 = vmul.f32 0.125, %v595_v52  ;;  %v619_v56 = vpop.f32.mrf.mxu1  ;;  %v959_v12 = vmul.f32 0.125, %v7576_v53 }
  0xe1   : > { %v961_v57 = vmul.f32 0.125, %v619_v56  ;;  %1218 = vrot.lane.b32.xlu2 %v7578_v54, %s7276_s0 }
  0xe3   : > { %v7582_v58 = vpack.c.bf16 %v961_v57, %v960_v55 }
  0xe6   : > { %v643_v59 = vpop.f32.mrf.mxu2 }
  0xe7   : > { %v7588_v60 = vpop.f32.mrf.mxu0  ;;  %v667_v61 = vpop.f32.mrf.mxu3  ;;  %v962_v36 = vmul.f32 0.125, %v643_v59 }
  0xe8   : > { %v7590_v63 = vpop.f32.mrf.mxu1  ;;  %v963_v37 = vmul.f32 0.125, %v667_v61 }
  0xea   : > { %v7618_v52 = vpack.c.bf16 %v963_v37, %v962_v36  ;;  %v1767_v36 = vunpack.c.l.b16 %v7568_v47 }
  0xee   : > { %v645_v0 = vpop.f32.mrf.mxu2 }
  0xef   : > { %v669_v1 = vpop.f32.mrf.mxu3  ;;  %v761_v2 = vpop.f32.mrf.mxu0  ;;  %v966_v38 = vmul.f32 0.125, %v645_v0 }
  0xf0   : > { %v785_v3 = vpop.f32.mrf.mxu1  ;;  %v967_v40 = vmul.f32 0.125, %v669_v1  ;;  %v2146_v1 = vunpack.c.h.b16 %v7618_v52 }
  0xf1   : > { %v980_v5 = vpack.c.bf16 %v785_v3, %v761_v2 }
  0xf2   : > { %v7620_v55 = vpack.c.bf16 %v967_v40, %v966_v38 }
  0xf3   : > { %v1031_v13 = vunpack.c.l.b16 %v980_v5  ;;  %v1403_v14 = vunpack.c.h.b16 %v980_v5 }
  0xf4   : > { %v2147_v2 = vunpack.c.h.b16 %v7620_v55 }
  0xf6   : > { %v809_v4 = vpop.f32.mrf.mxu2  ;;  %v7635_v9 = vpack.c.b16 %v2147_v2, %v2146_v1 }
  0xf7   : > { %v763_v6 = vpop.f32.mrf.mxu0  ;;  %v833_v7 = vpop.f32.mrf.mxu3 }
  0xf8   : > { %v787_v8 = vpop.f32.mrf.mxu1  ;;  %v981_v17 = vpack.c.bf16 %v833_v7, %v809_v4  ;;  %v1396_v7 = vunpack.c.h.b16 %v7566_v45 }
  0xf9   : > { %v982_v11 = vpack.c.bf16 %v787_v8, %v763_v6  ;;  %v1397_v6 = vunpack.c.h.b16 %v7570_v48 }
  0xfa   : > { %v1780_v25 = vunpack.c.l.b16 %v981_v17  ;;  %v2151_v41 = vunpack.c.h.b16 %v981_v17 }
  0xfb   : > { %v1404_v15 = vunpack.c.h.b16 %v982_v11  ;;  %v1032_v16 = vunpack.c.l.b16 %v982_v11  ;;  %v7637_v11 = vpack.c.b16 %v1397_v6, %v1396_v7  ;;  %v1020_v6 = vunpack.c.l.b16 %v7582_v58 }
  0xfd   : > { %v7596_v19 = vpack.c.b16 %v1404_v15, %v1403_v14  ;;  %v7598_v20 = vpack.c.b16 %v1032_v16, %v1031_v13 }
  0xfe   : > { %v811_v21 = vpop.f32.mrf.mxu2 }
  0xff   : > { %1587 = vrot.lane.b32.xlu2 %v7596_v19, %s7276_s0  ;;  %1222 = vrot.lane.b32.xlu1 %v7598_v20, %s7276_s0  ;;  %v766_v22 = vpop.f32.mrf.mxu0  ;;  %v835_v24 = vpop.f32.mrf.mxu3 }
 0x100   : > { %v790_v26 = vpop.f32.mrf.mxu1  ;;  %v983_v27 = vpack.c.bf16 %v835_v24, %v811_v21 }
 0x101   : > { %v7612_v42 = vpack.c.bf16 %v790_v26, %v766_v22  ;;  %v975_v22 = vpack.c.bf16 %v959_v12, %v958_v62 }
 0x102   : > { %v1781_v29 = vunpack.c.l.b16 %v983_v27  ;;  %v2152_v43 = vunpack.c.h.b16 %v983_v27 }
 0x103   : > { %v1405_v56 = vunpack.c.h.b16 %v7612_v42  ;;  %v1768_v37 = vunpack.c.l.b16 %v975_v22 }
 0x104   : > { %v7608_v34 = vpack.c.b16 %v1781_v29, %v1780_v25  ;;  %v7623_v59 = vpack.c.b16 %v2152_v43, %v2151_v41  ;;  %v1033_v43 = vunpack.c.l.b16 %v7612_v42 }
 0x106   : > { %v814_v39 = vpop.f32.mrf.mxu2 }
 0x107   : > { %1970 = vrot.lane.b32.xlu2 %v7608_v34, %s7276_s0  ;;  %1216 = vrot.lane.b32.xlu1 %v7610_v32, %s7276_s0  ;;  %v768_v44 = vpop.f32.mrf.mxu0  ;;  %v838_v46 = vpop.f32.mrf.mxu3 }
 0x108   : > { %v792_v49 = vpop.f32.mrf.mxu1  ;;  %v985_v8 = vpack.c.bf16 %v838_v46, %v814_v39  ;;  %v964_v46 = vmul.f32 0.125, %v7588_v60 }
 0x109   : > { %v986_v50 = vpack.c.bf16 %v792_v49, %v768_v44  ;;  %v965_v49 = vmul.f32 0.125, %v7590_v63 }
 0x10a   : > { %v1782_v15 = vunpack.c.l.b16 %v985_v8 }
 0x10b   : > { %v1406_v57 = vunpack.c.h.b16 %v986_v50  ;;  %v1034_v38 = vunpack.c.l.b16 %v986_v50  ;;  %v978_v1 = vpack.c.bf16 %v965_v49, %v964_v46  ;;  %v1769_v46 = vunpack.c.l.b16 %v7618_v52 }
 0x10c   : > { %v1770_v49 = vunpack.c.l.b16 %v7620_v55  ;;  %v1799_v52 = vsel %vm1040_vm2, %v7608_v34, 0 }
 0x10d   : > { %v7625_v61 = vpack.c.b16 %v1406_v57, %v1405_v56  ;;  %v7662_v56 = vpack.c.b16 %v1768_v37, %v1767_v36  ;;  %v1038_v57 = vpack.c.b16 %v1034_v38, %v1033_v43  ;;  %v1021_v60 = vunpack.c.l.b16 %v978_v1 }
 0x10e   : > { %v816_v0 = vpop.f32.mrf.mxu2 }
 0x10f   : > { %2335 = vrot.lane.b32.xlu2 %v7623_v59, %s7276_s0  ;;  %1589 = vrot.lane.b32.xlu1 %v7625_v61, %s7276_s0  ;;  %v771_v3 = vpop.f32.mrf.mxu0  ;;  %v840_v4 = vpop.f32.mrf.mxu3  ;;  %v1054_v42 = vsel %vm1040_vm2, %v1038_v57, 0  ;;  %v7672_v7 = vpack.c.b16 %v1021_v60, %v1020_v6 }
 0x110   : > { %v795_v5 = vpop.f32.mrf.mxu1  ;;  %v987_v10 = vpack.c.bf16 %v840_v4, %v816_v0  ;;  %v2153_v4 = vunpack.c.h.b16 %v985_v8 }
 0x111   : > { %v988_v13 = vpack.c.bf16 %v795_v5, %v771_v3 }
 0x112   : > { %v1783_v48 = vunpack.c.l.b16 %v987_v10  ;;  %v2154_v5 = vunpack.c.h.b16 %v987_v10  ;;  %v1051_v10 = vsel %vm1040_vm2, %v7598_v20, 0 }
 0x113   : > { %v1035_v24 = vunpack.c.l.b16 %v988_v13  ;;  %v1407_v25 = vunpack.c.h.b16 %v988_v13  ;;  %v2144_v13 = vunpack.c.h.b16 %v7568_v47  ;;  %v1425_v47 = vsel %vm1040_vm2, %v7625_v61, 0 }
 0x114   : > { %v7645_v26 = vpack.c.b16 %v1783_v48, %v1782_v15  ;;  %v7669_v63 = vpack.c.b16 %v2154_v5, %v2153_v4  ;;  %v1395_v15 = vunpack.c.h.b16 %v7594_v18  ;;  %v950_v18 = vmul.f32 0.125, %v7558_v33 }
 0x115   : > { %v1422_v61 = vsel %vm1040_vm2, %v7596_v19, 0  ;;  %v2142_v4 = vunpack.c.h.b16 %v7556_v31 }
 0x116   : > { %v819_v14 = vpop.f32.mrf.mxu2  ;;  %v1802_v19 = vsel %vm1040_vm2, %v7645_v26, 0 }
 0x117   : > { %2333 = vrot.lane.b32.xlu2 %v7635_v9, %s7276_s0  ;;  %1583 = vrot.lane.b32.xlu1 %v7637_v11, %s7276_s0  ;;  %v773_v45 = vpop.f32.mrf.mxu0  ;;  %v843_v16 = vpop.f32.mrf.mxu3 }
 0x118   : > { %v797_v17 = vpop.f32.mrf.mxu1  ;;  %v7647_v29 = vpack.c.bf16 %v843_v16, %v819_v14  ;;  %v2145_v14 = vunpack.c.h.b16 %v975_v22  ;;  %v1398_v22 = vunpack.c.h.b16 %v7582_v58  ;;  %v1765_v58 = vunpack.c.l.b16 %v7556_v31 }
 0x119   : > { %v990_v21 = vpack.c.bf16 %v797_v17, %v773_v45  ;;  %v1394_v45 = vunpack.c.h.b16 %v7600_v23  ;;  %v951_v23 = vmul.f32 0.125, %v7560_v35 }
 0x11a   : > { %v1784_v44 = vunpack.c.l.b16 %v7647_v29  ;;  %v7684_v48 = vpack.c.b16 %v2145_v14, %v2144_v13  ;;  %v2155_v33 = vunpack.c.h.b16 %v7647_v29 }
 0x11b   : > { %v1408_v51 = vunpack.c.h.b16 %v990_v21  ;;  %v1036_v53 = vunpack.c.l.b16 %v990_v21  ;;  %v7686_v16 = vpack.c.b16 %v1395_v15, %v1394_v45  ;;  %v1399_v21 = vunpack.c.h.b16 %v978_v1 }
 0x11d   : > { %v1411_v27 = vpack.c.b16 %v1408_v51, %v1407_v25  ;;  %v1039_v28 = vpack.c.b16 %v1036_v53, %v1035_v24  ;;  %v971_v24 = vpack.c.bf16 %v951_v23, %v950_v18  ;;  %v7699_v25 = vpack.c.b16 %v1399_v21, %v1398_v22 }
 0x11e   : > { %v821_v30 = vpop.f32.mrf.mxu2 }
 0x11f   : > { %1972 = vrot.lane.b32.xlu1 %v7645_v26, %s7276_s0  ;;  %1591 = vrot.lane.b32.xlu2 %v1411_v27, %s7276_s0  ;;  %v1057_v39 = vsel %vm1040_vm2, %v1039_v28, 0  ;;  %v845_v40 = vpop.f32.mrf.mxu3  ;;  %v857_v2 = vpop.f32.mrf.mxu0  ;;  %v1428_v12 = vsel %vm1040_vm2, %v1411_v27, 0  ;;  %v1766_v27 = vunpack.c.l.b16 %v971_v24  ;;  %v7723_v26 = vpack.c.b16 %v1770_v49, %v1769_v46 }
 0x120   : > { %1226 = vrot.lane.b32.xlu0 %v1039_v28, %s7276_s0  ;;  %1064 = vmatpush.bf16.xpose.msrb.mxu0 %v1057_v39  ;;  %v7655_v41 = vpack.c.bf16 %v845_v40, %v821_v30  ;;  %v881_v3 = vpop.f32.mrf.mxu1  ;;  %v2143_v5 = vunpack.c.h.b16 %v971_v24 }
 0x121   : > { %v992_v28 = vpack.c.bf16 %v881_v3, %v857_v2  ;;  %v7709_v37 = vpack.c.b16 %v1766_v27, %v1765_v58 }
 0x122   : > { %v1785_v50 = vunpack.c.l.b16 %v7655_v41  ;;  %v2156_v35 = vunpack.c.h.b16 %v7655_v41 }
 0x123   : > { %v1171_v29 = vunpack.c.l.b16 %v992_v28 }
 0x124   : > { %v1788_v0 = vpack.c.b16 %v1785_v50, %v1784_v44  ;;  %v2159_v36 = vpack.c.b16 %v2156_v35, %v2155_v33  ;;  %v2173_v33 = vsel %vm1040_vm2, %v7669_v63, 0 }
 0x126   : > { %v905_v38 = vpop.f32.mrf.mxu2 }
 0x127   : > { %1966 = vrot.lane.b32.xlu1 %v7662_v56, %s7276_s0  ;;  %1974 = vrot.lane.b32.xlu2 %v1788_v0, %s7276_s0  ;;  %v859_v62 = vpop.f32.mrf.mxu0  ;;  %v929_v41 = vpop.f32.mrf.mxu3 }
 0x128   : > { %1224 = vrot.lane.b32.xlu0 %v1038_v57, %s7276_s0  ;;  %1065 = vmatpush.bf16.xpose.msrb.mxu0 %v1054_v42  ;;  %v883_v8 = vpop.f32.mrf.mxu1  ;;  %v7718_v44 = vpack.c.bf16 %v929_v41, %v905_v38 }
 0x129   : > { %v994_v30 = vpack.c.bf16 %v883_v8, %v859_v62  ;;  %v7734_v8 = vpack.c.b16 %v2143_v5, %v2142_v4 }
 0x12b   : > { %v1172_v40 = vunpack.c.l.b16 %v994_v30 }
 0x12e   : > { %v7725_v50 = vpop.f32.mrf.mxu2 }
 0x12f   : > { %2337 = vrot.lane.b32.xlu1 %v7669_v63, %s7276_s0  ;;  %v862_v17 = vpop.f32.mrf.mxu0  ;;  %2339 = vrot.lane.b32.xlu2 %v2159_v36, %s7276_s0  ;;  %v2170_v63 = vsel %vm1040_vm2, %v7623_v59, 0 }
 0x130   : > { %1220 = vrot.lane.b32.xlu0 %v7672_v7, %s7276_s0  ;;  %1066 = vmatpush.bf16.xpose.msrb.mxu0 %v1051_v10  ;;  %v886_v20 = vpop.f32.mrf.mxu1  ;;  %v1536_v10 = vunpack.c.h.b16 %v992_v28 }
 0x131   : > { %v996_v60 = vpack.c.bf16 %v886_v20, %v862_v17 }
 0x133   : > { %v1173_v31 = vunpack.c.l.b16 %v996_v60  ;;  %v1538_v23 = vunpack.c.h.b16 %v996_v60 }
 0x136   : > { %v910_v13 = vpop.f32.mrf.mxu2 }
 0x137   : > { %2331 = vrot.lane.b32.xlu1 %v7684_v48, %s7276_s0  ;;  %5686 = vmatmul.msk.bf16.vlgmr.msrb.gmra.mxu0 %vm1040_vm2, %v7610_v32  ;;  %v864_v51 = vpop.f32.mrf.mxu0  ;;  %v1805_v32 = vsel %vm1040_vm2, %v1788_v0, 0  ;;  %v7727_v0 = vpop.f32.mrf.mxu3 }
 0x138   : > { %1435 = vmatpush.bf16.xpose.msra.mxu0 %v1428_v12  ;;  %1581 = vrot.lane.b32.xlu0 %v7686_v16, %s7276_s0  ;;  %v888_v53 = vpop.f32.mrf.mxu1  ;;  %v1537_v12 = vunpack.c.h.b16 %v994_v30 }
 0x139   : > { %v998_v6 = vpack.c.bf16 %v888_v53, %v864_v51  ;;  %v2176_v51 = vsel %vm1040_vm2, %v2159_v36, 0 }
 0x13a   : > { %v1542_v45 = vpack.c.b16 %v1537_v12, %v1536_v10 }
 0x13b   : > { %v1174_v14 = vunpack.c.l.b16 %v998_v6  ;;  %v1539_v21 = vunpack.c.h.b16 %v998_v6  ;;  %v7756_v35 = vpop.permute.xlu2 %1218  ;;  %v7789_v6 = vld [vmem:[%s7404_s12] sm:$0xff] }
 0x13c   : > { %1717 = vrot.lane.b32.xlu2 %v1542_v45, %s7276_s0  ;;  %vm1004_vm3 = vcmp.gt.f32.partialorder %v7789_v6, 0.5 }
 0x13d   : > { %v1178_v17 = vpack.c.b16 %v1174_v14, %v1173_v31  ;;  %v1543_v24 = vpack.c.b16 %v1539_v21, %v1538_v23  ;;  %v7807_v14 = vld [vmem:[%s7404_s12 + $0x8] sm:$0xff] }
 0x13e   : > { %v7744_v20 = vpop.f32.mrf.mxu2  ;;  %vm1005_vm5 = vcmp.gt.f32.partialorder %v7807_v14, 0.5 }
 0x13f   : > { %v867_v43 = vpop.f32.mrf.mxu0  ;;  %v934_v34 = vpop.f32.mrf.mxu3 }
 0x140   : > { %1436 = vmatpush.bf16.xpose.msra.mxu0 %v1425_v47  ;;  %1585 = vrot.lane.b32.xlu0 %v7699_v25, %s7276_s0  ;;  %v891_v39 = vpop.f32.mrf.mxu1  ;;  %v7741_v15 = vpack.c.bf16 %v934_v34, %v910_v13 }
 0x141   : > { %v1000_v1 = vpack.c.bf16 %v891_v39, %v867_v43 }
 0x143   : > { %v1540_v55 = vunpack.c.h.b16 %v1000_v1  ;;  %v1175_v47 = vunpack.c.l.b16 %v1000_v1 }
 0x146   : > { %v915_v53 = vpop.f32.mrf.mxu2 }
 0x147   : > { %5687 = vmatmul.msk.bf16.gmra.mxu0 %vm1040_vm2, %v7578_v54  ;;  %v1177_v54 = vpack.c.b16 %v1172_v40, %v1171_v29  ;;  %v869_v2 = vpop.f32.mrf.mxu0  ;;  %v7746_v18 = vpop.f32.mrf.mxu3 }
 0x148   : > { %1437 = vmatpush.bf16.xpose.msra.mxu0 %v1422_v61  ;;  %1964 = vrot.lane.b32.xlu0 %v7709_v37, %s7276_s0  ;;  %v893_v57 = vpop.f32.mrf.mxu1 }
 0x149   : > { %1352 = vrot.lane.b32.xlu1 %v1177_v54, %s7276_s0  ;;  %v1002_v3 = vpack.c.bf16 %v893_v57, %v869_v2 }
 0x14b   : > { %v1541_v42 = vunpack.c.h.b16 %v1002_v3 }
 0x14d   : > { %v1544_v62 = vpack.c.b16 %v1541_v42, %v1540_v55 }
 0x14e   : > { %v917_v58 = vpop.f32.mrf.mxu2 }
 0x150   : > { %1812 = vmatpush.bf16.xpose.msrb.mxu0 %v1805_v32  ;;  %1968 = vrot.lane.b32.xlu0 %v7723_v26, %s7276_s0  ;;  %v939_v32 = vpop.f32.mrf.mxu3 }
 0x151   : > { %1721 = vrot.lane.b32.xlu1 %v1544_v62, %s7276_s0  ;;  %v1001_v61 = vpack.c.bf16 %v939_v32, %v915_v53 }
 0x153   : > { %v1923_v28 = vunpack.c.l.b16 %v1001_v61  ;;  %v2288_v30 = vunpack.c.h.b16 %v1001_v61 }
 0x157   : > { %5688 = vmatmul.msk.bf16.gmra.mxu0 %vm1040_vm2, %v7672_v7  ;;  %v1176_v7 = vunpack.c.l.b16 %v1002_v3 }
 0x158   : > { %1813 = vmatpush.bf16.xpose.msrb.mxu0 %v1802_v19  ;;  %2329 = vrot.lane.b32.xlu0 %v7734_v8, %s7276_s0  ;;  %v941_v27 = vpop.f32.mrf.mxu3 }
 0x159   : > { %v1179_v22 = vpack.c.b16 %v1176_v7, %v1175_v47  ;;  %v1003_v36 = vpack.c.bf16 %v941_v27, %v917_v58  ;;  %v1588_v29 = vpop.permute.xlu2 %1587  ;;  %v7839_v58 = vld [vmem:[%s7404_s12 + $0x18] sm:$0xff] }
 0x15a   : > { %v1603_v13 = vsel %vm1040_vm2, %v1588_v29, 0  ;;  %vm1007_vm7 = vcmp.gt.f32.partialorder %v7839_v58, 0.5 }
 0x15b   : > { %1356 = vrot.lane.b32.xlu2 %v1179_v22, %s7276_s0  ;;  %1197 = vmatpush.bf16.msrb.mxu1 %v1179_v22  ;;  %v2289_v38 = vunpack.c.h.b16 %v1003_v36  ;;  %v7822_v22 = vld [vmem:[%s7404_s12 + $0x10] sm:$0xff] }
 0x15c   : > { %vm1006_vm6 = vcmp.gt.f32.partialorder %v7822_v22, 0.5 }
 0x15d   : > { %v7758_v39 = vpack.c.b16 %v2289_v38, %v2288_v30 }
 0x15f   : > { %1198 = vmatpush.bf16.msrb.mxu1 %v1178_v17 }
 0x160   : > { %1814 = vmatpush.bf16.xpose.msrb.mxu0 %v1799_v52  ;;  %1354 = vrot.lane.b32.xlu0 %v1178_v17, %s7276_s0 }
 0x161   : > { %v1971_v41 = vpop.permute.xlu2 %1970 }
 0x163   : > { %1199 = vmatpush.bf16.msrb.mxu1 %v1177_v54 }
 0x167   : > { %5704 = vmatmul.msk.bf16.vlgmr.msra.gmra.mxu0 %vm1040_vm2, %v7686_v16  ;;  %1562 = vmatpush.bf16.msra.mxu1 %v1544_v62  ;;  %v1924_v16 = vunpack.c.l.b16 %v1003_v36 }
 0x168   : > { %2183 = vmatpush.bf16.xpose.msra.mxu0 %v2176_v51  ;;  %1719 = vrot.lane.b32.xlu0 %v1543_v24, %s7276_s0 }
 0x169   : > { %v7760_v19 = vpack.c.b16 %v1924_v16, %v1923_v28  ;;  %v7770_v46 = vpop.permute.xlu2 %2335 }
 0x16b   : > { %1563 = vmatpush.bf16.msra.mxu1 %v1543_v24 }
 0x16f   : > { %1564 = vmatpush.bf16.msra.mxu1 %v1542_v45 }
 0x170   : > { %2184 = vmatpush.bf16.xpose.msra.mxu0 %v2173_v33  ;;  %2104 = vrot.lane.b32.xlu0 %v7760_v19, %s7276_s0  ;;  %v1986_v33 = vsel %vm1040_vm2, %v1971_v41, 0 }
 0x171   : > { %v1223_v40 = vpop.permute.xlu1 %1222  ;;  %v7773_v1 = vpop.permute.xlu2 %2333 }
 0x172   : > { %v1238_v52 = vsel %vm1040_vm2, %v1223_v40, 0 }
 0x177   : > { %5705 = vmatmul.msk.bf16.gmra.mxu0 %vm1040_vm2, %v7637_v11 }
 0x178   : > { %2185 = vmatpush.bf16.xpose.msra.mxu0 %v2170_v63 }
 0x179   : > { %v1217_v43 = vpop.permute.xlu1 %1216 }
 0x181   : > { %v1590_v49 = vpop.permute.xlu1 %1589 }
 0x182   : > { %v1606_v42 = vsel %vm1040_vm2, %v1590_v49, 0 }
 0x187   : > { %5706 = vmatmul.msk.bf16.gmra.mxu0 %vm1040_vm2, %v7699_v25  ;;  %v1592_v25 = vpop.permute.xlu2 %1591 }
 0x188   : > { %v1609_v55 = vsel %vm1040_vm2, %v1592_v25, 0 }
 0x189   : > { %v7778_v2 = vpop.permute.xlu1 %1583 }
 0x18f   : > { %v1975_v5 = vpop.permute.xlu2 %1974 }
 0x190   : > { %v1992_v12 = vsel %vm1040_vm2, %v1975_v5, 0 }
 0x191   : > { %v1973_v4 = vpop.permute.xlu1 %1972 }
 0x192   : > { %v1227_v54 = vpop.permute.xlu0 %1226  ;;  %v1989_v23 = vsel %vm1040_vm2, %v1973_v4, 0 }
 0x193   : > { %v1244_v57 = vsel %vm1040_vm2, %v1227_v54, 0 }
 0x194   : > { %1251 = vmatpush.bf16.xpose.msrb.mxu2 %v1244_v57 }
 0x197   : > { %5728 = vmatmul.msk.bf16.vlgmr.msrb.gmra.mxu0 %vm1040_vm2, %v7709_v37  ;;  %v2340_v60 = vpop.permute.xlu2 %2339 }
 0x198   : > { %v2357_v49 = vsel %vm1040_vm2, %v2340_v60, 0 }
 0x199   : > { %v7791_v62 = vpop.permute.xlu1 %1966 }
 0x19a   : > { %v1225_v59 = vpop.permute.xlu0 %1224 }
 0x19b   : > { %v1241_v11 = vsel %vm1040_vm2, %v1225_v59, 0 }
 0x19c   : > { %1252 = vmatpush.bf16.xpose.msrb.mxu2 %v1241_v11 }
 0x19f   : > { %v1718_v45 = vpop.permute.xlu2 %1717 }
 0x1a1   : > { %v2338_v17 = vpop.permute.xlu1 %2337 }
 0x1a2   : > { %v1221_v3 = vpop.permute.xlu0 %1220  ;;  %v2354_v11 = vsel %vm1040_vm2, %v2338_v17, 0 }
 0x1a4   : > { %1253 = vmatpush.bf16.xpose.msrb.mxu2 %v1238_v52 }
 0x1a7   : > { %5729 = vmatmul.msk.bf16.gmra.mxu0 %vm1040_vm2, %v7662_v56 }
 0x1a9   : > { %v7827_v53 = vpop.permute.xlu1 %2331 }
 0x1aa   : > { %v7784_v37 = vpop.permute.xlu0 %1581 }
 0x1ab   : > { %5692 = vmatmul.msk.bf16.vlgmr.msrb.gmra.mxu2 %vm1040_vm2, %v1217_v43  ;;  %v7864_v43 = vld [vmem:[%s7404_s12 + $0x28] sm:$0xff] }
 0x1ac   : > { %1616 = vmatpush.bf16.xpose.msra.mxu2 %v1609_v55  ;;  %vm1009_vm9 = vcmp.gt.f32.partialorder %v7864_v43, 0.5  ;;  %v2351_v55 = vsel %vm1040_vm2, %v7770_v46, 0 }
 0x1b2   : > { %v7793_v10 = vpop.permute.xlu0 %1585 }
 0x1b4   : > { %1617 = vmatpush.bf16.xpose.msra.mxu2 %v1606_v42  ;;  %v1068_v56 = vpop.f32.mrf.mxu0 }
 0x1b5   : > { %v7800_v34 = vsel %vm1004_vm3, -1e+09, %v1068_v56  ;;  %v1357_v24 = vpop.permute.xlu2 %1356 }
 0x1b6   : > { %v1090_v31 = vsel %vm1089_vm4, %v7800_v34, -inf  ;;  %1375 = vmatpush.bf16.msrb.mxu3 %v1357_v24 }
 0x1b7   : > { %5730 = vmatmul.msk.bf16.gmra.mxu0 %vm1040_vm2, %v7723_v26  ;;  %1091 = vmax.xlane.f32.xlu2 %v1090_v31 }
 0x1ba   : > { %v7809_v47 = vpop.permute.xlu0 %1964 }
 0x1bb   : > { %5693 = vmatmul.msk.bf16.gmra.mxu2 %vm1040_vm2, %v7756_v35  ;;  %v1353_v30 = vpop.permute.xlu1 %1352 }
 0x1bc   : > { %1618 = vmatpush.bf16.xpose.msra.mxu2 %v1603_v13  ;;  %v1070_v21 = vpop.f32.mrf.mxu0 }
 0x1bd   : > { %v7817_v7 = vsel %vm1005_vm5, -1e+09, %v1070_v21 }
 0x1be   : > { %v1093_v26 = vsel %vm1089_vm4, %v7817_v7, -inf }
 0x1bf   : > { %1094 = vmax.xlane.f32.xlu0 %v1093_v26 }
 0x1c2   : > { %v7824_v51 = vpop.permute.xlu0 %1968 }
 0x1c3   : > { %v1722_v41 = vpop.permute.xlu1 %1721 }
 0x1c4   : > { %1999 = vmatpush.bf16.xpose.msrb.mxu2 %v1992_v12  ;;  %v1073_v32 = vpop.f32.mrf.mxu0 }
 0x1c5   : > { %v7831_v61 = vsel %vm1006_vm6, -1e+09, %v1073_v32 }
 0x1c6   : > { %v1096_v35 = vsel %vm1089_vm4, %v7831_v61, -inf }
 0x1c7   : > { %5752 = vmatmul.msk.bf16.vlgmr.msra.gmra.mxu0 %vm1040_vm2, %v7734_v8  ;;  %1097 = vmax.xlane.f32.xlu1 %v1096_v35  ;;  %v7852_v8 = vld [vmem:[%s7404_s12 + $0x20] sm:$0xff] }
 0x1c8   : > { %vm1008_vm8 = vcmp.gt.f32.partialorder %v7852_v8, 0.5 }
 0x1ca   : > { %v7841_v27 = vpop.permute.xlu0 %2329 }
 0x1cb   : > { %5694 = vmatmul.msk.bf16.gmra.mxu2 %vm1040_vm2, %v1221_v3 }
 0x1cc   : > { %2000 = vmatpush.bf16.xpose.msrb.mxu2 %v1989_v23  ;;  %v1075_v28 = vpop.f32.mrf.mxu0 }
 0x1cd   : > { %v7847_v36 = vsel %vm1007_vm7, -1e+09, %v1075_v28 }
 0x1ce   : > { %v1099_v16 = vsel %vm1089_vm4, %v7847_v36, -inf }
 0x1cf   : > { %1100 = vmax.xlane.f32.xlu1 %v1099_v16 }
 0x1d2   : > { %v1355_v38 = vpop.permute.xlu0 %1354 }
 0x1d3   : > { %1376 = vmatpush.bf16.msrb.mxu3 %v1355_v38 }
 0x1d4   : > { %2001 = vmatpush.bf16.xpose.msrb.mxu2 %v1986_v33  ;;  %v1078_v29 = vpop.f32.mrf.mxu0 }
 0x1d5   : > { %v7857_v63 = vsel %vm1008_vm8, -1e+09, %v1078_v29 }
 0x1d6   : > { %v1102_v40 = vsel %vm1089_vm4, %v7857_v63, -inf }
 0x1d7   : > { %5753 = vmatmul.msk.bf16.gmra.mxu0 %vm1040_vm2, %v7684_v48  ;;  %1103 = vmax.xlane.f32.xlu2 %v1102_v40 }
 0x1d8   : > { %1377 = vmatpush.bf16.msrb.mxu3 %v1353_v30 }
 0x1da   : > { %v1720_v54 = vpop.permute.xlu0 %1719 }
 0x1db   : > { %5716 = vmatmul.msk.bf16.vlgmr.msra.gmra.mxu2 %vm1040_vm2, %v7784_v37 }
 0x1dc   : > { %1740 = vmatpush.bf16.msra.mxu3 %v1722_v41  ;;  %2364 = vmatpush.bf16.xpose.msra.mxu2 %v2357_v49  ;;  %v1080_v57 = vpop.f32.mrf.mxu0 }
 0x1dd   : > { %v7872_v59 = vsel %vm1009_vm9, -1e+09, %v1080_v57 }
 0x1de   : > { %v1105_v48 = vsel %vm1089_vm4, %v7872_v59, -inf }
 0x1df   : > { %1106 = vmax.xlane.f32.xlu0 %v1105_v48 }
 0x1e0   : > { %1741 = vmatpush.bf16.msra.mxu3 %v1720_v54 }
 0x1e2   : > { %v7937_v33 = vpop.permute.xlu0 %2104 }
 0x1e4   : > { %1742 = vmatpush.bf16.msra.mxu3 %v1718_v45  ;;  %2365 = vmatpush.bf16.xpose.msra.mxu2 %v2354_v11  ;;  %v1439_v25 = vpop.f32.mrf.mxu0 }
 0x1e5   : > { %v7879_v3 = vsel %vm1004_vm3, -1e+09, %v1439_v25 }
 0x1e6   : > { %v1460_v52 = vsel %vm1089_vm4, %v7879_v3, -inf }
 0x1e7   : > { %5754 = vmatmul.msk.bf16.gmra.mxu0 %vm1040_vm2, %v7635_v9  ;;  %1461 = vmax.xlane.f32.xlu0 %v1460_v52 }
 0x1eb   : > { %5717 = vmatmul.msk.bf16.gmra.mxu2 %vm1040_vm2, %v7778_v2 }
 0x1ec   : > { %2366 = vmatpush.bf16.xpose.msra.mxu2 %v2351_v55  ;;  %v1441_v4 = vpop.f32.mrf.mxu0 }
 0x1ed   : > { %v7891_v5 = vsel %vm1005_vm5, -1e+09, %v1441_v4 }
 0x1ee   : > { %v1463_v37 = vsel %vm1089_vm4, %v7891_v5, -inf }
 0x1ef   : > { %1464 = vmax.xlane.f32.xlu2 %v1463_v37 }
 0x1f4   : > { %v1444_v42 = vpop.f32.mrf.mxu0 }
 0x1f5   : > { %v7897_v9 = vsel %vm1006_vm6, -1e+09, %v1444_v42 }
 0x1f6   : > { %v1466_v2 = vsel %vm1089_vm4, %v7897_v9, -inf }
 0x1f7   : > { %1467 = vmax.xlane.f32.xlu2 %v1466_v2 }
 0x1fb   : > { %5718 = vmatmul.msk.bf16.gmra.mxu2 %vm1040_vm2, %v7793_v10 }
 0x1fc   : > { %v1446_v46 = vpop.f32.mrf.mxu0 }
 0x1fd   : > { %v7905_v60 = vsel %vm1007_vm7, -1e+09, %v1446_v46 }
 0x1fe   : > { %v1469_v12 = vsel %vm1089_vm4, %v7905_v60, -inf }
 0x1ff   : > { %1470 = vmax.xlane.f32.xlu2 %v1469_v12 }
 0x204   : > { %v1449_v56 = vpop.f32.mrf.mxu0 }
 0x205   : > { %v7911_v13 = vsel %vm1008_vm8, -1e+09, %v1449_v56 }
 0x206   : > { %v1472_v31 = vsel %vm1089_vm4, %v7911_v13, -inf }
 0x207   : > { %1473 = vmax.xlane.f32.xlu1 %v1472_v31 }
 0x20b   : > { %5740 = vmatmul.msk.bf16.vlgmr.msrb.gmra.mxu2 %vm1040_vm2, %v7809_v47 }
 0x20c   : > { %v1451_v10 = vpop.f32.mrf.mxu0 }
 0x20d   : > { %v7919_v45 = vsel %vm1009_vm9, -1e+09, %v1451_v10 }
 0x20e   : > { %v1475_v17 = vsel %vm1089_vm4, %v7919_v45, -inf }
 0x20f   : > { %1476 = vmax.xlane.f32.xlu0 %v1475_v17 }
 0x214   : > { %v1816_v23 = vpop.f32.mrf.mxu0 }
 0x215   : > { %v7925_v21 = vsel %vm1004_vm3, -1e+09, %v1816_v23 }
 0x216   : > { %v1837_v26 = vsel %vm1089_vm4, %v7925_v21, -inf }
 0x217   : > { %1838 = vmax.xlane.f32.xlu1 %v1837_v26 }
 0x21b   : > { %5741 = vmatmul.msk.bf16.gmra.mxu2 %vm1040_vm2, %v7791_v62 }
 0x21c   : > { %v1818_v47 = vpop.f32.mrf.mxu0 }
 0x21d   : > { %v7933_v24 = vsel %vm1005_vm5, -1e+09, %v1818_v47 }
 0x21e   : > { %v1840_v32 = vsel %vm1089_vm4, %v7933_v24, -inf }
 0x21f   : > { %1841 = vmax.xlane.f32.xlu2 %v1840_v32 }
 0x22a   : > { %v1092_v35 = vpop.xlane.xlu2 %1091 }
 0x22b   : > { %5742 = vmatmul.msk.bf16.gmra.mxu2 %vm1040_vm2, %v7824_v51  ;;  %v1108_v28 = vsub.f32 %v7800_v34, %v1092_v35 }
 0x22d   : > { %v1114_v30 = vmul.f32 1.442695, %v1108_v28 }
 0x22e   : > { %v1255_v16 = vpop.f32.mrf.mxu2 }
 0x22f   : > { %6956 = vpow2.f32 %v1114_v30  ;;  %v7944_v62 = vsel %vm1004_vm3, -1e+09, %v1255_v16 }
 0x230   : > { %v1276_v38 = vsel %vm1089_vm4, %v7944_v62, -inf }
 0x231   : > { %1277 = vmax.xlane.f32.xlu0 %v1276_v38 }
 0x232   : > { %v1095_v29 = vpop.xlane.xlu0 %1094 }
 0x233   : > { %v1109_v40 = vsub.f32 %v7817_v7, %v1095_v29 }
 0x235   : > { %v7949_v41 = vpop.eup %6956  ;;  %v1116_v49 = vmul.f32 1.442695, %v1109_v40 }
 0x236   : > { %v1257_v51 = vpop.f32.mrf.mxu2  ;;  %v1126_v34 = vsel %vm1089_vm4, %v7949_v41, 0.0 }
 0x237   : > { %6958 = vpow2.f32 %v1116_v49  ;;  %1127 = vadd.xlane.f32.xlu2 %v1126_v34  ;;  %v7955_v54 = vsel %vm1005_vm5, -1e+09, %v1257_v51 }
 0x238   : > { %v1279_v57 = vsel %vm1089_vm4, %v7955_v54, -inf }
 0x239   : > { %1280 = vmax.xlane.f32.xlu1 %v1279_v57 }
 0x23a   : > { %v1098_v48 = vpop.xlane.xlu1 %1097 }
 0x23b   : > { %5764 = vmatmul.msk.bf16.vlgmr.msra.gmra.mxu2 %vm1040_vm2, %v7841_v27  ;;  %v1110_v7 = vsub.f32 %v7831_v61, %v1098_v48 }
 0x23d   : > { %v7962_v11 = vpop.eup %6958  ;;  %v1118_v25 = vmul.f32 1.442695, %v1110_v7 }
 0x23e   : > { %v1260_v52 = vpop.f32.mrf.mxu2  ;;  %v1129_v55 = vsel %vm1089_vm4, %v7962_v11, 0.0 }
 0x23f   : > { %6960 = vpow2.f32 %v1118_v25  ;;  %v7968_v4 = vsel %vm1006_vm6, -1e+09, %v1260_v52 }
 0x240   : > { %v1282_v37 = vsel %vm1089_vm4, %v7968_v4, -inf }
 0x241   : > { %1130 = vadd.xlane.f32.xlu1 %v1129_v55  ;;  %1283 = vmax.xlane.f32.xlu2 %v1282_v37 }
 0x242   : > { %v1101_v27 = vpop.xlane.xlu1 %1100 }
 0x243   : > { %v1111_v61 = vsub.f32 %v7847_v36, %v1101_v27 }
 0x245   : > { %v7973_v42 = vpop.eup %6960  ;;  %v1120_v2 = vmul.f32 1.442695, %v1111_v61 }
 0x246   : > { %v1262_v46 = vpop.f32.mrf.mxu2  ;;  %v1132_v12 = vsel %vm1089_vm4, %v7973_v42, 0.0 }
 0x247   : > { %6962 = vpow2.f32 %v1120_v2  ;;  %v7984_v36 = vsel %vm1007_vm7, -1e+09, %v1262_v46 }
 0x248   : > { %v1285_v26 = vsel %vm1089_vm4, %v7984_v36, -inf }
 0x249   : > { %1133 = vadd.xlane.f32.xlu2 %v1132_v12 }
 0x24a   : > { %v1104_v56 = vpop.xlane.xlu2 %1103 }
 0x24b   : > { %5765 = vmatmul.msk.bf16.gmra.mxu2 %vm1040_vm2, %v7827_v53  ;;  %v1112_v10 = vsub.f32 %v7857_v63, %v1104_v56 }
 0x24d   : > { %v7979_v31 = vpop.eup %6962  ;;  %v1122_v47 = vmul.f32 1.442695, %v1112_v10 }
 0x24e   : > { %v1265_v17 = vpop.f32.mrf.mxu2  ;;  %v1135_v23 = vsel %vm1089_vm4, %v7979_v31, 0.0 }
 0x24f   : > { %1136 = vadd.xlane.f32.xlu0 %v1135_v23  ;;  %v7992_v53 = vsel %vm1008_vm8, -1e+09, %v1265_v17  ;;  %6964 = vpow2.f32 %v1122_v47 }
 0x250   : > { %v1288_v30 = vsel %vm1089_vm4, %v7992_v53, -inf }
 0x251   : > { %1286 = vmax.xlane.f32.xlu2 %v1285_v26 }
 0x252   : > { %v1107_v32 = vpop.xlane.xlu0 %1106 }
 0x253   : > { %v1113_v63 = vsub.f32 %v7872_v59, %v1107_v32 }
 0x255   : > { %v1124_v35 = vmul.f32 1.442695, %v1113_v63  ;;  %v8003_v40 = vpop.eup %6964  ;;  %v1821_v63 = vpop.f32.mrf.mxu0 }
 0x256   : > { %v1267_v28 = vpop.f32.mrf.mxu2  ;;  %v1138_v57 = vsel %vm1089_vm4, %v8003_v40, 0.0 }
 0x257   : > { %6966 = vpow2.f32 %v1124_v35  ;;  %1289 = vmax.xlane.f32.xlu0 %v1288_v30  ;;  %v7999_v16 = vsel %vm1009_vm9, -1e+09, %v1267_v28  ;;  %v8055_v28 = vsel %vm1006_vm6, -1e+09, %v1821_v63 }
 0x258   : > { %v1291_v38 = vsel %vm1089_vm4, %v7999_v16, -inf  ;;  %9672 = vst [vmem:[#allocation15_spill] sm:$0xff] %v8055_v28 }
 0x259   : > { %1292 = vmax.xlane.f32.xlu1 %v1291_v38 }
 0x25a   : > { %v1462_v29 = vpop.xlane.xlu0 %1461 }
 0x25b   : > { %5766 = vmatmul.msk.bf16.gmra.mxu2 %vm1040_vm2, %v7773_v1  ;;  %v1478_v59 = vsub.f32 %v7879_v3, %v1462_v29  ;;  %v1843_v29 = vsel %vm1089_vm4, %v8055_v28, -inf }
 0x25d   : > { %v8008_v49 = vpop.eup %6966  ;;  %v1484_v51 = vmul.f32 1.442695, %v1478_v59 }
 0x25e   : > { %v1620_v34 = vpop.f32.mrf.mxu2  ;;  %v1141_v48 = vsel %vm1089_vm4, %v8008_v49, 0.0 }
 0x25f   : > { %6968 = vpow2.f32 %v1484_v51  ;;  %1139 = vadd.xlane.f32.xlu0 %v1138_v57  ;;  %v8019_v1 = vsel %vm1004_vm3, -1e+09, %v1620_v34  ;;  %v1823_v51 = vpop.f32.mrf.mxu0 }
 0x260   : > { %v1641_v27 = vsel %vm1089_vm4, %v8019_v1, -inf  ;;  %v8067_v34 = vsel %vm1007_vm7, -1e+09, %v1823_v51 }
 0x261   : > { %1142 = vadd.xlane.f32.xlu1 %v1141_v48  ;;  %9673 = vst [vmem:[#allocation16_spill] sm:$0xff] %v8067_v34 }
 0x262   : > { %v1465_v7 = vpop.xlane.xlu2 %1464 }
 0x263   : > { %v1479_v25 = vsub.f32 %v7891_v5, %v1465_v7 }
 0x265   : > { %v8015_v52 = vpop.eup %6968  ;;  %v1486_v3 = vmul.f32 1.442695, %v1479_v25 }
 0x266   : > { %v1622_v55 = vpop.f32.mrf.mxu2  ;;  %v1496_v37 = vsel %vm1089_vm4, %v8015_v52, 0.0 }
 0x267   : > { %6970 = vpow2.f32 %v1486_v3  ;;  %1497 = vadd.xlane.f32.xlu2 %v1496_v37  ;;  %v8027_v5 = vsel %vm1005_vm5, -1e+09, %v1622_v55  ;;  %v1846_v3 = vsel %vm1089_vm4, %v8067_v34, -inf }
 0x268   : > { %v1644_v46 = vsel %vm1089_vm4, %v8027_v5, -inf }
 0x269   : > { %1642 = vmax.xlane.f32.xlu1 %v1641_v27 }
 0x26a   : > { %v8073_v7 = vpop.xlane.xlu2 %1467 }
 0x26d   : > { %v8029_v61 = vpop.eup %6970 }
 0x26e   : > { %v1625_v2 = vpop.f32.mrf.mxu2  ;;  %v1499_v12 = vsel %vm1089_vm4, %v8029_v61, 0.0 }
 0x26f   : > { %1645 = vmax.xlane.f32.xlu2 %v1644_v46  ;;  %1500 = vadd.xlane.f32.xlu0 %v1499_v12  ;;  %v8037_v56 = vsel %vm1006_vm6, -1e+09, %v1625_v2 }
 0x270   : > { %v1647_v17 = vsel %vm1089_vm4, %v8037_v56, -inf }
 0x272   : > { %v1471_v2 = vpop.xlane.xlu2 %1470 }
 0x276   : > { %v1627_v10 = vpop.f32.mrf.mxu2 }
 0x277   : > { %1648 = vmax.xlane.f32.xlu0 %v1647_v17  ;;  %v8043_v23 = vsel %vm1007_vm7, -1e+09, %v1627_v10 }
 0x278   : > { %v1650_v26 = vsel %vm1089_vm4, %v8043_v23, -inf }
 0x279   : > { %1651 = vmax.xlane.f32.xlu2 %v1650_v26 }
 0x27a   : > { %v8085_v46 = vpop.xlane.xlu1 %1473 }
 0x27e   : > { %v1630_v47 = vpop.f32.mrf.mxu2 }
 0x27f   : > { %v8049_v32 = vsel %vm1008_vm8, -1e+09, %v1630_v47 }
 0x280   : > { %v1653_v35 = vsel %vm1089_vm4, %v8049_v32, -inf }
 0x281   : > { %1654 = vmax.xlane.f32.xlu2 %v1653_v35 }
 0x282   : > { %v8087_v12 = vpop.xlane.xlu0 %1476 }
 0x286   : > { %v1632_v30 = vpop.f32.mrf.mxu2 }
 0x287   : > { %v8059_v38 = vsel %vm1009_vm9, -1e+09, %v1632_v30 }
 0x288   : > { %v1656_v59 = vsel %vm1089_vm4, %v8059_v38, -inf }
 0x289   : > { %1844 = vmax.xlane.f32.xlu2 %v1843_v29  ;;  %1657 = vmax.xlane.f32.xlu0 %v1656_v59 }
 0x28a   : > { %v8097_v63 = vpop.xlane.xlu1 %1838 }
 0x28e   : > { %v2003_v57 = vpop.f32.mrf.mxu2 }
 0x28f   : > { %v8071_v48 = vsel %vm1004_vm3, -1e+09, %v2003_v57 }
 0x290   : > { %v2024_v25 = vsel %vm1089_vm4, %v8071_v48, -inf }
 0x291   : > { %2025 = vmax.xlane.f32.xlu1 %v2024_v25  ;;  %1847 = vmax.xlane.f32.xlu2 %v1846_v3 }
 0x292   : > { %v8095_v47 = vpop.xlane.xlu2 %1841 }
 0x296   : > { %v2005_v55 = vpop.f32.mrf.mxu2 }
 0x297   : > { %v8081_v37 = vsel %vm1005_vm5, -1e+09, %v2005_v55 }
 0x298   : > { %v2027_v27 = vsel %vm1089_vm4, %v8081_v37, -inf }
 0x299   : > { %2028 = vmax.xlane.f32.xlu0 %v2027_v27 }
 0x29e   : > { %v2008_v10 = vpop.f32.mrf.mxu2 }
 0x29f   : > { %v8091_v17 = vsel %vm1006_vm6, -1e+09, %v2008_v10 }
 0x2a0   : > { %v2030_v26 = vsel %vm1089_vm4, %v8091_v17, -inf }
 0x2a1   : > { %2031 = vmax.xlane.f32.xlu0 %v2030_v26 }
 0x2a4   : > { %v1278_v35 = vpop.xlane.xlu0 %1277 }
 0x2a5   : > { %v1294_v30 = vsub.f32 %v7944_v62, %v1278_v35  ;;  %v1481_v35 = vsub.f32 %v7905_v60, %v1471_v2 }
 0x2a6   : > { %v2010_v29 = vpop.f32.mrf.mxu2 }
 0x2a7   : > { %v1300_v59 = vmul.f32 1.442695, %v1294_v30  ;;  %v8102_v51 = vsel %vm1007_vm7, -1e+09, %v2010_v29 }
 0x2a8   : > { %v2033_v57 = vsel %vm1089_vm4, %v8102_v51, -inf }
 0x2a9   : > { %6972 = vpow2.f32 %v1300_v59  ;;  %2034 = vmax.xlane.f32.xlu1 %v2033_v57  ;;  %v1490_v57 = vmul.f32 1.442695, %v1481_v35  ;;  %v8135_v35 = vpack.c.bf16 %v7746_v18, %v7744_v20 }
 0x2aa   : > { %v1128_v25 = vpop.xlane.xlu2 %1127 }
 0x2ab   : > { %6974 = vrcp.f32 %v1128_v25 }
 0x2ac   : > { %v1281_v3 = vpop.xlane.xlu1 %1280 }
 0x2ad   : > { %v1295_v55 = vsub.f32 %v7955_v54, %v1281_v3 }
 0x2ae   : > { %v2013_v27 = vpop.f32.mrf.mxu2 }
 0x2af   : > { %v8107_v10 = vpop.eup %6972  ;;  %v1302_v62 = vmul.f32 1.442695, %v1295_v55  ;;  %v8111_v26 = vsel %vm1008_vm8, -1e+09, %v2013_v27 }
 0x2b0   : > { %v2036_v30 = vsel %vm1089_vm4, %v8111_v26, -inf  ;;  %v1312_v29 = vsel %vm1089_vm4, %v8107_v10, 0.0 }
 0x2b1   : > { %v6975_v59 = vpop.eup %6974  ;;  %6976 = vpow2.f32 %v1302_v62  ;;  %2037 = vmax.xlane.f32.xlu1 %v2036_v30  ;;  %1313 = vadd.xlane.f32.xlu0 %v1312_v29 }
 0x2b2   : > { %v1150_v54 = vmul.f32 %v6975_v59, %v7949_v41 }
 0x2b4   : > { %1156 = vst.msk [vmem:[%s7431_s3] sm:$0xff] %vm1089_vm4, %v1150_v54  ;;  %v1131_v25 = vpop.xlane.xlu1 %1130  ;;  %v8121_v3 = vpop.xlane.xlu2 %1283 }
 0x2b5   : > { %6978 = vrcp.f32 %v1131_v25 }
 0x2b6   : > { %v2015_v60 = vpop.f32.mrf.mxu2  ;;  %6980 = vpow2.f32 %v1490_v57 }
 0x2b7   : > { %v8123_v2 = vpop.eup %6976  ;;  %v8127_v55 = vsel %vm1009_vm9, -1e+09, %v2015_v60  ;;  %v8144_v60 = vpack.c.bf16 %v7727_v0, %v7725_v50 }
 0x2b8   : > { %v1315_v27 = vsel %vm1089_vm4, %v8123_v2, 0.0  ;;  %v2039_v41 = vsel %vm1089_vm4, %v8127_v55, -inf }
 0x2b9   : > { %1316 = vadd.xlane.f32.xlu1 %v1315_v27  ;;  %2040 = vmax.xlane.f32.xlu2 %v2039_v41  ;;  %v1921_v27 = vunpack.c.l.b16 %v7741_v15  ;;  %v1922_v41 = vunpack.c.l.b16 %v8135_v35 }
 0x2bb   : > { %v6979_v62 = vpop.eup %6978 }
 0x2bc   : > { %v1151_v30 = vmul.f32 %v6979_v62, %v7962_v11  ;;  %v1134_v29 = vpop.xlane.xlu2 %1133  ;;  %v8138_v59 = vpop.eup %6980  ;;  %v1919_v62 = vunpack.c.l.b16 %v7718_v44 }
 0x2bd   : > { %6982 = vrcp.f32 %v1134_v29  ;;  %v1826_v11 = vpop.f32.mrf.mxu0  ;;  %v1505_v50 = vsel %vm1089_vm4, %v8138_v59, 0.0  ;;  %v1926_v29 = vpack.c.b16 %v1922_v41, %v1921_v27 }
 0x2be   : > { %1157 = vst.msk [vmem:[%s7431_s3 + $0x8] sm:$0xff] %vm1089_vm4, %v1151_v30  ;;  %v1162_v57 = vpack.c.bf16 %v1151_v30, %v1150_v54  ;;  %v2368_v25 = vpop.f32.mrf.mxu2  ;;  %v1920_v30 = vunpack.c.l.b16 %v8144_v60 }
 0x2bf   : > { %v8150_v20 = vsel %vm1004_vm3, -1e+09, %v2368_v25 }
 0x2c0   : > { %9674 = vst [vmem:[#allocation17_spill] sm:$0xff] %v8150_v20  ;;  %5689 = vmatmul.msk.bf16.vlgmr.msrb.gmra.mxu1 %vm1089_vm4, %v1162_v57  ;;  %v2389_v18 = vsel %vm1089_vm4, %v8150_v20, -inf }
 0x2c1   : > { %1945 = vmatpush.bf16.msrb.mxu1 %v7760_v19  ;;  %2390 = vmax.xlane.f32.xlu0 %v2389_v18  ;;  %v8164_v19 = vsel %vm1008_vm8, -1e+09, %v1826_v11 }
 0x2c2   : > { %1506 = vadd.xlane.f32.xlu2 %v1505_v50  ;;  %v1137_v0 = vpop.xlane.xlu0 %1136  ;;  %v1925_v50 = vpack.c.b16 %v1920_v30, %v1919_v62 }
 0x2c3   : > { %v6983_v54 = vpop.eup %6982  ;;  %6984 = vrcp.f32 %v1137_v0 }
 0x2c4   : > { %v1287_v57 = vpop.xlane.xlu2 %1286  ;;  %v1152_v25 = vmul.f32 %v6983_v54, %v7973_v42  ;;  %v1849_v42 = vsel %vm1089_vm4, %v8164_v19, -inf }
 0x2c5   : > { %v1297_v34 = vsub.f32 %v7984_v36, %v1287_v57  ;;  %1946 = vmatpush.bf16.msrb.mxu1 %v1926_v29  ;;  %v1828_v41 = vpop.f32.mrf.mxu0 }
 0x2c6   : > { %1158 = vst.msk [vmem:[%s7431_s3 + $0x10] sm:$0xff] %vm1089_vm4, %v1152_v25  ;;  %v8168_v28 = vpop.f32.mrf.mxu2  ;;  %v8180_v62 = vsel %vm1009_vm9, -1e+09, %v1828_v41 }
 0x2c7   : > { %v1306_v18 = vmul.f32 1.442695, %v1297_v34 }
 0x2c9   : > { %v6985_v20 = vpop.eup %6984  ;;  %6986 = vpow2.f32 %v1306_v18  ;;  %1947 = vmatpush.bf16.msrb.mxu1 %v1925_v50 }
 0x2ca   : > { %1850 = vmax.xlane.f32.xlu2 %v1849_v42  ;;  %v1290_v36 = vpop.xlane.xlu0 %1289  ;;  %v1153_v27 = vmul.f32 %v6985_v20, %v7979_v31 }
 0x2cb   : > { %v1298_v11 = vsub.f32 %v7992_v53, %v1290_v36  ;;  %v1852_v53 = vsel %vm1089_vm4, %v8180_v62, -inf }
 0x2cc   : > { %v8174_v0 = vpop.xlane.xlu1 %1292  ;;  %1159 = vst.msk [vmem:[%s7431_s3 + $0x18] sm:$0xff] %vm1089_vm4, %v1153_v27  ;;  %v1163_v34 = vpack.c.bf16 %v1153_v27, %v1152_v25 }
 0x2cd   : > { %v1308_v54 = vmul.f32 1.442695, %v1298_v11 }
 0x2ce   : > { %v2373_v20 = vpop.f32.mrf.mxu2 }
 0x2cf   : > { %v8182_v30 = vpop.eup %6986  ;;  %6988 = vpow2.f32 %v1308_v54  ;;  %v8202_v54 = vsel %vm1006_vm6, -1e+09, %v2373_v20 }
 0x2d0   : > { %5690 = vmatmul.msk.bf16.gmra.mxu1 %vm1089_vm4, %v1163_v34  ;;  %v1321_v31 = vsel %vm1089_vm4, %v8182_v30, 0.0 }
 0x2d1   : > { %1322 = vadd.xlane.f32.xlu0 %v1321_v31 }
 0x2d2   : > { %1853 = vmax.xlane.f32.xlu2 %v1852_v53  ;;  %2102 = vrot.lane.b32.xlu1 %v1926_v29, %s7276_s0  ;;  %v1140_v57 = vpop.xlane.xlu0 %1139 }
 0x2d3   : > { %6990 = vrcp.f32 %v1140_v57 }
 0x2d4   : > { %v1143_v25 = vpop.xlane.xlu1 %1142 }
 0x2d5   : > { %v8190_v18 = vpop.eup %6988  ;;  %6992 = vrcp.f32 %v1143_v25 }
 0x2d6   : > { %v1324_v42 = vsel %vm1089_vm4, %v8190_v18, 0.0  ;;  %v8195_v34 = vpop.f32.mrf.mxu2 }
 0x2d9   : > { %v6991_v36 = vpop.eup %6990 }
 0x2da   : > { %1325 = vadd.xlane.f32.xlu2 %v1324_v42  ;;  %v1498_v27 = vpop.xlane.xlu2 %1497  ;;  %v1154_v41 = vmul.f32 %v6991_v36, %v8003_v40  ;;  %v2395_v40 = vsel %vm1089_vm4, %v8202_v54, -inf }
 0x2db   : > { %v6993_v11 = vpop.eup %6992  ;;  %6994 = vrcp.f32 %v1498_v27 }
 0x2dc   : > { %v1155_v29 = vmul.f32 %v6993_v11, %v8008_v49  ;;  %1160 = vst.msk [vmem:[%s7431_s3 + $0x20] sm:$0xff] %vm1089_vm4, %v1154_v41 }
 0x2de   : > { %1161 = vst.msk [vmem:[%s7431_s3 + $0x28] sm:$0xff] %vm1089_vm4, %v1155_v29  ;;  %v1164_v31 = vpack.c.bf16 %v1155_v29, %v1154_v41  ;;  %v8214_v36 = vpop.f32.mrf.mxu2  ;;  %v1296_v41 = vsub.f32 %v7968_v4, %v8121_v3  ;;  %v2285_v3 = vunpack.c.h.b16 %v8144_v60 }
 0x2e0   : > { %5691 = vmatmul.msk.bf16.gmra.mxu1 %vm1089_vm4, %v1164_v31  ;;  %v8225_v31 = vpop.f32.mrf.mxu0 }
 0x2e1   : > { %v6995_v53 = vpop.eup %6994 }
 0x2e2   : > { %v1520_v57 = vmul.f32 %v6995_v53, %v8015_v52  ;;  %2396 = vmax.xlane.f32.xlu2 %v2395_v40  ;;  %v1501_v49 = vpop.xlane.xlu0 %1500  ;;  %v1646_v25 = vpop.xlane.xlu2 %1645  ;;  %v1304_v53 = vmul.f32 1.442695, %v1296_v41  ;;  %v2286_v40 = vunpack.c.h.b16 %v7741_v15  ;;  %v1299_v41 = vsub.f32 %v7999_v16, %v8174_v0 }
 0x2e3   : > { %6996 = vrcp.f32 %v1501_v49  ;;  %v1660_v42 = vsub.f32 %v8027_v5, %v1646_v25  ;;  %v2287_v49 = vunpack.c.h.b16 %v8135_v35  ;;  %v8267_v16 = vsel %vm1005_vm5, -1e+09, %v8168_v28 }
 0x2e4   : > { %5707 = vst.msk [vmem:[%s7431_s3 + $0x60] sm:$0xff] %vm1089_vm4, %v1520_v57 }
 0x2e5   : > { %v1667_v20 = vmul.f32 1.442695, %v1660_v42  ;;  %2100 = vrot.lane.b32.xlu0 %v1925_v50, %s7276_s0 }
 0x2e6   : > { %v2380_v4 = vpop.f32.mrf.mxu2 }
 0x2e7   : > { %6998 = vpow2.f32 %v1667_v20  ;;  %v8239_v25 = vsel %vm1009_vm9, -1e+09, %v2380_v4 }
 0x2e8   : > { %7000 = vpow2.f32 %v1304_v53  ;;  %v2404_v42 = vsel %vm1089_vm4, %v8239_v25, -inf  ;;  %v2189_v60 = vpop.f32.mrf.mxu0  ;;  %v1480_v53 = vsub.f32 %v7897_v9, %v8073_v7  ;;  %v2392_v9 = vsel %vm1089_vm4, %v8267_v16, -inf }
 0x2e9   : > { %v6997_v27 = vpop.eup %6996 }
 0x2ea   : > { %v1521_v52 = vmul.f32 %v6997_v27, %v8029_v61  ;;  %v2284_v61 = vunpack.c.h.b16 %v7718_v44  ;;  %v1488_v0 = vmul.f32 1.442695, %v1480_v53 }
 0x2ec   : > { %5708 = vst.msk [vmem:[%s7431_s3 + $0x68] sm:$0xff] %vm1089_vm4, %v1521_v52  ;;  %v1533_v11 = vpack.c.bf16 %v1521_v52, %v1520_v57  ;;  %v8221_v29 = vpop.xlane.xlu2 %1651  ;;  %v8235_v57 = vpack.c.b16 %v2287_v49, %v2286_v40  ;;  %v8245_v20 = vpack.c.b16 %v2285_v3, %v2284_v61  ;;  %v8256_v52 = vsel %vm1005_vm5, -1e+09, %v2189_v60 }
 0x2ed   : > { %v8223_v5 = vpop.eup %6998  ;;  %v2211_v40 = vsel %vm1089_vm4, %v8256_v52, -inf  ;;  %v1483_v49 = vsub.f32 %v7919_v45, %v8087_v12  ;;  %v1482_v61 = vsub.f32 %v7911_v13, %v8085_v46  ;;  %v1643_v12 = vpop.xlane.xlu1 %1642 }
 0x2ee   : > { %v1680_v50 = vsel %vm1089_vm4, %v8223_v5, 0.0  ;;  %v8247_v44 = vpop.eup %7000  ;;  %v1659_v13 = vsub.f32 %v8019_v1, %v1643_v12  ;;  %v1855_v1 = vsub.f32 %v7925_v21, %v8097_v63 }
 0x2ef   : > { %1681 = vadd.xlane.f32.xlu2 %v1680_v50  ;;  %v1310_v50 = vmul.f32 1.442695, %v1299_v41  ;;  %v1494_v14 = vmul.f32 1.442695, %v1483_v49  ;;  %v1492_v45 = vmul.f32 1.442695, %v1482_v61 }
 0x2f0   : > { %5713 = vmatmul.msk.bf16.vlgmr.msra.gmra.mxu1 %vm1089_vm4, %v1533_v11  ;;  %v8258_v11 = vpop.xlane.xlu0 %1648 }
 0x2f1   : > { %2310 = vmatpush.bf16.msra.mxu1 %v7758_v39 }
 0x2f4   : > { %v1655_v15 = vpop.xlane.xlu2 %1654 }
 0x2f5   : > { %v1663_v35 = vsub.f32 %v8049_v32, %v1655_v15  ;;  %2311 = vmatpush.bf16.msra.mxu1 %v8235_v57  ;;  %v1318_v32 = vsel %vm1089_vm4, %v8247_v44, 0.0 }
 0x2f7   : > { %2405 = vmax.xlane.f32.xlu2 %v2404_v42  ;;  %v1673_v27 = vmul.f32 1.442695, %v1663_v35 }
 0x2f9   : > { %2312 = vmatpush.bf16.msra.mxu1 %v8245_v20  ;;  %7002 = vpow2.f32 %v1673_v27 }
 0x2fa   : > { %7004 = vpow2.f32 %v1310_v50 }
 0x2fb   : > { %7006 = vpow2.f32 %v1488_v0 }
 0x2fc   : > { %1319 = vadd.xlane.f32.xlu1 %v1318_v32  ;;  %v8275_v7 = vpop.xlane.xlu0 %1657  ;;  %7008 = vpow2.f32 %v1494_v14  ;;  %v1665_v32 = vmul.f32 1.442695, %v1659_v13  ;;  %v8313_v21 = vpop.xlane.xlu2 %1844 }
 0x2fd   : > { %7010 = vpow2.f32 %v1492_v45  ;;  %v1861_v45 = vmul.f32 1.442695, %v1855_v1 }
 0x2ff   : > { %2212 = vmax.xlane.f32.xlu2 %v2211_v40  ;;  %v8271_v4 = vpop.eup %7002 }
 0x300   : > { %v1689_v28 = vsel %vm1089_vm4, %v8271_v4, 0.0  ;;  %v8281_v3 = vpop.eup %7004 }
 0x301   : > { %v8283_v15 = vpop.eup %7006  ;;  %v1327_v35 = vsel %vm1089_vm4, %v8281_v3, 0.0 }
 0x302   : > { %v1502_v60 = vsel %vm1089_vm4, %v8283_v15, 0.0  ;;  %v8291_v41 = vpop.eup %7008 }
 0x303   : > { %v8293_v53 = vpop.eup %7010  ;;  %v1511_v50 = vsel %vm1089_vm4, %v8291_v41, 0.0 }
 0x304   : > { %2393 = vmax.xlane.f32.xlu1 %v2392_v9  ;;  %v8297_v40 = vpop.xlane.xlu1 %2025  ;;  %v1508_v49 = vsel %vm1089_vm4, %v8293_v53, 0.0 }
 0x307   : > { %1690 = vadd.xlane.f32.xlu2 %v1689_v28  ;;  %v8311_v28 = vsel %vm1007_vm7, -1e+09, %v8195_v34 }
 0x308   : > { %v2398_v12 = vsel %vm1089_vm4, %v8311_v28, -inf }
 0x30c   : > { %v2029_v42 = vpop.xlane.xlu0 %2028  ;;  %1328 = vadd.xlane.f32.xlu1 %v1327_v35  ;;  %v1662_v35 = vsub.f32 %v8043_v23, %v8221_v29  ;;  %v8337_v29 = vpop.xlane.xlu2 %1847 }
 0x30d   : > { %v2043_v46 = vsub.f32 %v8081_v37, %v2029_v42 }
 0x30f   : > { %v2050_v27 = vmul.f32 1.442695, %v2043_v46  ;;  %1503 = vadd.xlane.f32.xlu0 %v1502_v60 }
 0x311   : > { %7012 = vpow2.f32 %v2050_v27  ;;  %v1671_v27 = vmul.f32 1.442695, %v1662_v35 }
 0x312   : > { %7014 = vpow2.f32 %v1665_v32 }
 0x314   : > { %v2032_v0 = vpop.xlane.xlu0 %2031  ;;  %1512 = vadd.xlane.f32.xlu1 %v1511_v50  ;;  %v1664_v50 = vsub.f32 %v8059_v38, %v8275_v7 }
 0x315   : > { %v2044_v37 = vsub.f32 %v8091_v17, %v2032_v0  ;;  %v1661_v17 = vsub.f32 %v8037_v56, %v8258_v11  ;;  %v8331_v11 = vsel %vm1008_vm8, -1e+09, %v8214_v36 }
 0x316   : > { %v2401_v32 = vsel %vm1089_vm4, %v8331_v11, -inf }
 0x317   : > { %v8304_v9 = vpop.eup %7012  ;;  %v2052_v61 = vmul.f32 1.442695, %v2044_v37  ;;  %1509 = vadd.xlane.f32.xlu0 %v1508_v49  ;;  %v1669_v13 = vmul.f32 1.442695, %v1661_v17 }
 0x318   : > { %v2063_v14 = vsel %vm1089_vm4, %v8304_v9, 0.0  ;;  %v8317_v63 = vpop.eup %7014 }
 0x319   : > { %7016 = vpow2.f32 %v2052_v61  ;;  %2064 = vadd.xlane.f32.xlu2 %v2063_v14  ;;  %v1677_v46 = vsel %vm1089_vm4, %v8317_v63, 0.0 }
 0x31a   : > { %7018 = vpow2.f32 %v1861_v45  ;;  %v1675_v45 = vmul.f32 1.442695, %v1664_v50 }
 0x31c   : > { %v2035_v42 = vpop.xlane.xlu1 %2034  ;;  %2399 = vmax.xlane.f32.xlu1 %v2398_v12 }
 0x31d   : > { %v2045_v34 = vsub.f32 %v8102_v51, %v2035_v42 }
 0x31f   : > { %v8326_v60 = vpop.eup %7016  ;;  %v2054_v56 = vmul.f32 1.442695, %v2045_v34  ;;  %1678 = vadd.xlane.f32.xlu0 %v1677_v46 }
 0x320   : > { %v2066_v23 = vsel %vm1089_vm4, %v8326_v60, 0.0  ;;  %v8335_v51 = vpop.eup %7018 }
 0x321   : > { %7020 = vpow2.f32 %v2054_v56  ;;  %2067 = vadd.xlane.f32.xlu2 %v2066_v23  ;;  %v1873_v37 = vsel %vm1089_vm4, %v8335_v51, 0.0 }
 0x322   : > { %7022 = vpow2.f32 %v1669_v13 }
 0x323   : > { %7024 = vpow2.f32 %v1671_v27  ;;  %v2042_v27 = vsub.f32 %v8071_v48, %v8297_v40 }
 0x324   : > { %v2038_v36 = vpop.xlane.xlu1 %2037  ;;  %v1314_v0 = vpop.xlane.xlu0 %1313  ;;  %2402 = vmax.xlane.f32.xlu1 %v2401_v32 }
 0x325   : > { %v2046_v1 = vsub.f32 %v8111_v26, %v2038_v36  ;;  %7026 = vrcp.f32 %v1314_v0  ;;  %v1856_v26 = vsub.f32 %v7933_v24, %v8095_v47  ;;  %v8368_v24 = vsel %vm1004_vm3, -1e+09, %v8225_v31  ;;  %v2192_v31 = vpop.f32.mrf.mxu0 }
 0x326   : > { %v2208_v32 = vsel %vm1089_vm4, %v8368_v24, -inf  ;;  %v2048_v36 = vmul.f32 1.442695, %v2042_v27 }
 0x327   : > { %v8346_v49 = vpop.eup %7020  ;;  %v2056_v61 = vmul.f32 1.442695, %v2046_v1  ;;  %1874 = vadd.xlane.f32.xlu0 %v1873_v37  ;;  %v1863_v13 = vmul.f32 1.442695, %v1856_v26 }
 0x328   : > { %v8348_v14 = vpop.eup %7022  ;;  %v2069_v38 = vsel %vm1089_vm4, %v8346_v49, 0.0 }
 0x329   : > { %7028 = vpow2.f32 %v2056_v61  ;;  %2070 = vadd.xlane.f32.xlu2 %v2069_v38  ;;  %v8352_v7 = vpop.eup %7024  ;;  %v1683_v12 = vsel %vm1089_vm4, %v8348_v14, 0.0 }
 0x32a   : > { %7030 = vpow2.f32 %v1675_v45  ;;  %v1686_v46 = vsel %vm1089_vm4, %v8352_v7, 0.0 }
 0x32b   : > { %v7027_v17 = vpop.eup %7026 }
 0x32c   : > { %v1336_v35 = vmul.f32 %v7027_v17, %v8107_v10  ;;  %v1317_v42 = vpop.xlane.xlu1 %1316  ;;  %1684 = vadd.xlane.f32.xlu1 %v1683_v12  ;;  %v2041_v34 = vpop.xlane.xlu2 %2040 }
 0x32d   : > { %7032 = vrcp.f32 %v1317_v42  ;;  %v2047_v61 = vsub.f32 %v8127_v55, %v2041_v34  ;;  %v2194_v17 = vpop.f32.mrf.mxu0 }
 0x32e   : > { %5695 = vst.msk [vmem:[%s7431_s3 + $0x30] sm:$0xff] %vm1089_vm4, %v1336_v35  ;;  %7034 = vpow2.f32 %v1863_v13 }
 0x32f   : > { %v8363_v56 = vpop.eup %7028  ;;  %1687 = vadd.xlane.f32.xlu0 %v1686_v46  ;;  %v2058_v12 = vmul.f32 1.442695, %v2047_v61 }
 0x330   : > { %v2072_v47 = vsel %vm1089_vm4, %v8363_v56, 0.0  ;;  %v8372_v10 = vpop.eup %7030 }
 0x331   : > { %2073 = vadd.xlane.f32.xlu2 %v2072_v47  ;;  %v1692_v1 = vsel %vm1089_vm4, %v8372_v10, 0.0 }
 0x333   : > { %v7033_v23 = vpop.eup %7032 }
 0x334   : > { %v1337_v50 = vmul.f32 %v7033_v23, %v8123_v2  ;;  %2209 = vmax.xlane.f32.xlu1 %v2208_v32  ;;  %v8383_v48 = vpop.eup %7034  ;;  %v8389_v2 = vsel %vm1006_vm6, -1e+09, %v2192_v31  ;;  %v2391_v45 = vpop.xlane.xlu0 %2390 }
 0x335   : > { %v1507_v6 = vpop.xlane.xlu2 %1506  ;;  %v1876_v40 = vsel %vm1089_vm4, %v8383_v48, 0.0 }
 0x336   : > { %5696 = vst.msk [vmem:[%s7431_s3 + $0x38] sm:$0xff] %vm1089_vm4, %v1337_v50  ;;  %v1349_v0 = vpack.c.bf16 %v1337_v50, %v1336_v35  ;;  %7036 = vrcp.f32 %v1507_v6 }
 0x337   : > { %1693 = vadd.xlane.f32.xlu0 %v1692_v1  ;;  %7038 = vpow2.f32 %v2048_v36  ;;  %v9676_v1 = vld [vmem:[#allocation15_spill] sm:$0xff] }
 0x338   : > { %5701 = vmatmul.msk.bf16.vlgmr.msrb.gmra.mxu3 %vm1089_vm4, %v1349_v0  ;;  %7040 = vpow2.f32 %v2058_v12 }
 0x339   : > { %2123 = vmatpush.bf16.msrb.mxu3 %v7937_v33  ;;  %v2214_v33 = vsel %vm1089_vm4, %v8389_v2, -inf }
 0x33c   : > { %v7037_v37 = vpop.eup %7036  ;;  %1877 = vadd.xlane.f32.xlu1 %v1876_v40 }
 0x33d   : > { %v8395_v38 = vmul.f32 %v7037_v37, %v8138_v59  ;;  %v8397_v26 = vpop.xlane.xlu2 %1850  ;;  %v8404_v22 = vpop.eup %7038  ;;  %v8410_v59 = vsel %vm1007_vm7, -1e+09, %v2194_v17 }
 0x33e   : > { %v2060_v55 = vsel %vm1089_vm4, %v8404_v22, 0.0  ;;  %v2217_v13 = vsel %vm1089_vm4, %v8410_v59, -inf  ;;  %v8418_v58 = vpop.eup %7040 }
 0x33f   : > { %5710 = vst.msk [vmem:[%s7431_s3 + $0x78] sm:$0xff] %vm1089_vm4, %v8395_v38  ;;  %2215 = vmax.xlane.f32.xlu0 %v2214_v33  ;;  %v2075_v23 = vsel %vm1089_vm4, %v8418_v58, 0.0 }
 0x344   : > { %v2103_v35 = vpop.permute.xlu1 %2102  ;;  %2061 = vadd.xlane.f32.xlu1 %v2060_v55  ;;  %v1323_v42 = vpop.xlane.xlu0 %1322 }
 0x345   : > { %7042 = vrcp.f32 %v1323_v42  ;;  %v8412_v34 = vpop.xlane.xlu2 %1853  ;;  %2124 = vmatpush.bf16.msrb.mxu3 %v2103_v35 }
 0x347   : > { %2218 = vmax.xlane.f32.xlu0 %v2217_v13 }
 0x349   : > { %2467 = vrot.lane.b32.xlu2 %v8235_v57, %s7276_s0 }
 0x34b   : > { %v7043_v46 = vpop.eup %7042 }
 0x34c   : > { %v1339_v47 = vmul.f32 %v7043_v46, %v8182_v30  ;;  %v9675_v30 = vld [vmem:[#allocation17_spill] sm:$0xff] }
 0x34d   : > { %v1326_v27 = vpop.xlane.xlu2 %1325  ;;  %v2407_v31 = vsub.f32 %v9675_v30, %v2391_v45 }
 0x34e   : > { %7044 = vrcp.f32 %v1326_v27  ;;  %5698 = vst.msk [vmem:[%s7431_s3 + $0x48] sm:$0xff] %vm1089_vm4, %v1339_v47 }
 0x34f   : > { %2076 = vadd.xlane.f32.xlu0 %v2075_v23  ;;  %v2413_v0 = vmul.f32 1.442695, %v2407_v31 }
 0x354   : > { %v7045_v32 = vpop.eup %7044 }
 0x355   : > { %v8426_v50 = vmul.f32 %v7045_v32, %v8190_v18  ;;  %v8431_v57 = vpop.xlane.xlu2 %2396  ;;  %v1857_v18 = vsub.f32 %v9676_v1, %v8313_v21  ;;  %v1859_v1 = vsub.f32 %v8164_v19, %v8397_v26 }
 0x357   : > { %v2101_v6 = vpop.permute.xlu0 %2100  ;;  %5699 = vst.msk [vmem:[%s7431_s3 + $0x50] sm:$0xff] %vm1089_vm4, %v8426_v50  ;;  %v1865_v33 = vmul.f32 1.442695, %v1857_v18 }
 0x358   : > { %2125 = vmatpush.bf16.msrb.mxu3 %v2101_v6 }
 0x35d   : > { %2469 = vrot.lane.b32.xlu1 %v7758_v39, %s7276_s0 }
 0x362   : > { %v1682_v36 = vpop.xlane.xlu2 %1681 }
 0x363   : > { %7046 = vrcp.f32 %v1682_v36 }
 0x364   : > { %7048 = vpow2.f32 %v2413_v0 }
 0x365   : > { %7050 = vpow2.f32 %v1865_v33 }
 0x369   : > { %v7047_v40 = vpop.eup %7046 }
 0x36a   : > { %v8439_v37 = vmul.f32 %v7047_v40, %v8223_v5  ;;  %v2406_v61 = vpop.xlane.xlu2 %2405  ;;  %v8444_v39 = vpop.eup %7048  ;;  %v9677_v5 = vld [vmem:[#allocation16_spill] sm:$0xff] }
 0x36b   : > { %v2425_v17 = vsel %vm1089_vm4, %v8444_v39, 0.0  ;;  %v8450_v12 = vpop.eup %7050  ;;  %v1858_v55 = vsub.f32 %v9677_v5, %v8337_v29  ;;  %v2412_v26 = vsub.f32 %v8239_v25, %v2406_v61 }
 0x36c   : > { %5720 = vst.msk [vmem:[%s7431_s3 + $0x98] sm:$0xff] %vm1089_vm4, %v8439_v37  ;;  %v1879_v23 = vsel %vm1089_vm4, %v8450_v12, 0.0 }
 0x36d   : > { %v1867_v27 = vmul.f32 1.442695, %v1858_v55  ;;  %v2423_v25 = vmul.f32 1.442695, %v2412_v26 }
 0x36f   : > { %v1320_v45 = vpop.xlane.xlu1 %1319 }
 0x370   : > { %7052 = vrcp.f32 %v1320_v45  ;;  %v2197_v45 = vpop.f32.mrf.mxu0 }
 0x372   : > { %2426 = vadd.xlane.f32.xlu2 %v2425_v17  ;;  %v8448_v21 = vpop.xlane.xlu2 %2212  ;;  %v1869_v17 = vmul.f32 1.442695, %v1859_v1 }
 0x373   : > { %v2227_v26 = vsub.f32 %v8256_v52, %v8448_v21 }
 0x375   : > { %v2234_v21 = vmul.f32 1.442695, %v2227_v26 }
 0x376   : > { %v7053_v35 = vpop.eup %7052 }
 0x377   : > { %v2394_v42 = vpop.xlane.xlu1 %2393  ;;  %v1338_v13 = vmul.f32 %v7053_v35, %v8247_v44 }
 0x378   : > { %v2408_v46 = vsub.f32 %v8267_v16, %v2394_v42  ;;  %v8485_v42 = vsel %vm1008_vm8, -1e+09, %v2197_v45 }
 0x379   : > { %5697 = vst.msk [vmem:[%s7431_s3 + $0x40] sm:$0xff] %vm1089_vm4, %v1338_v13  ;;  %v1350_v32 = vpack.c.bf16 %v1339_v47, %v1338_v13  ;;  %v2220_v8 = vsel %vm1089_vm4, %v8485_v42, -inf }
 0x37a   : > { %v2415_v6 = vmul.f32 1.442695, %v2408_v46  ;;  %1880 = vadd.xlane.f32.xlu2 %v1879_v23  ;;  %v1691_v30 = vpop.xlane.xlu2 %1690 }
 0x37b   : > { %5702 = vmatmul.msk.bf16.gmra.mxu3 %vm1089_vm4, %v1350_v32  ;;  %7054 = vrcp.f32 %v1691_v30 }
 0x37c   : > { %7056 = vpow2.f32 %v2415_v6 }
 0x37d   : > { %7058 = vpow2.f32 %v1867_v27 }
 0x37f   : > { %v1329_v29 = vpop.xlane.xlu1 %1328 }
 0x380   : > { %7060 = vrcp.f32 %v1329_v29 }
 0x381   : > { %v7055_v44 = vpop.eup %7054 }
 0x382   : > { %v8461_v16 = vpop.eup %7056  ;;  %v8464_v31 = vmul.f32 %v7055_v44, %v8271_v4  ;;  %v1504_v36 = vpop.xlane.xlu0 %1503 }
 0x383   : > { %v8466_v47 = vpop.eup %7058  ;;  %7062 = vrcp.f32 %v1504_v36  ;;  %v2428_v0 = vsel %vm1089_vm4, %v8461_v16, 0.0 }
 0x384   : > { %5723 = vst.msk [vmem:[%s7431_s3 + $0xb0] sm:$0xff] %vm1089_vm4, %v8464_v31  ;;  %2429 = vadd.xlane.f32.xlu0 %v2428_v0  ;;  %v1882_v4 = vsel %vm1089_vm4, %v8466_v47, 0.0 }
 0x386   : > { %v7061_v18 = vpop.eup %7060 }
 0x387   : > { %v1513_v40 = vpop.xlane.xlu1 %1512  ;;  %1883 = vadd.xlane.f32.xlu1 %v1882_v4  ;;  %v1341_v33 = vmul.f32 %v7061_v18, %v8281_v3 }
 0x388   : > { %7064 = vrcp.f32 %v1513_v40 }
 0x389   : > { %v7063_v5 = vpop.eup %7062  ;;  %5700 = vst.msk [vmem:[%s7431_s3 + $0x58] sm:$0xff] %vm1089_vm4, %v1341_v33  ;;  %v1351_v19 = vpack.c.bf16 %v1341_v33, %v8426_v50 }
 0x38a   : > { %v1522_v55 = vmul.f32 %v7063_v5, %v8283_v15  ;;  %v1510_v35 = vpop.xlane.xlu0 %1509  ;;  %v2199_v5 = vpop.f32.mrf.mxu0 }
 0x38b   : > { %7066 = vrcp.f32 %v1510_v35  ;;  %5703 = vmatmul.msk.bf16.gmra.mxu3 %vm1089_vm4, %v1351_v19 }
 0x38c   : > { %7068 = vpow2.f32 %v1869_v17  ;;  %5709 = vst.msk [vmem:[%s7431_s3 + $0x70] sm:$0xff] %vm1089_vm4, %v1522_v55  ;;  %v2065_v3 = vpop.xlane.xlu2 %2064  ;;  %v1534_v13 = vpack.c.bf16 %v8395_v38, %v1522_v55 }
 0x38d   : > { %7070 = vrcp.f32 %v2065_v3 }
 0x38e   : > { %v7065_v50 = vpop.eup %7064  ;;  %5714 = vmatmul.msk.bf16.gmra.mxu1 %vm1089_vm4, %v1534_v13  ;;  %7072 = vpow2.f32 %v2423_v25 }
 0x38f   : > { %v1525_v15 = vmul.f32 %v7065_v50, %v8291_v41  ;;  %v2400_v61 = vpop.xlane.xlu1 %2399  ;;  %2221 = vmax.xlane.f32.xlu1 %v2220_v8 }
 0x390   : > { %v2410_v46 = vsub.f32 %v8311_v28, %v2400_v61 }
 0x391   : > { %v7067_v27 = vpop.eup %7066  ;;  %5712 = vst.msk [vmem:[%s7431_s3 + $0x88] sm:$0xff] %vm1089_vm4, %v1525_v15 }
 0x392   : > { %v8498_v38 = vpop.eup %7068  ;;  %v1524_v23 = vmul.f32 %v7067_v27, %v8293_v53  ;;  %v2419_v32 = vmul.f32 1.442695, %v2410_v46  ;;  %v1679_v6 = vpop.xlane.xlu0 %1678 }
 0x393   : > { %v7071_v30 = vpop.eup %7070  ;;  %7074 = vrcp.f32 %v1679_v6  ;;  %v1885_v28 = vsel %vm1089_vm4, %v8498_v38, 0.0 }
 0x394   : > { %5711 = vst.msk [vmem:[%s7431_s3 + $0x80] sm:$0xff] %vm1089_vm4, %v1524_v23  ;;  %v8504_v41 = vmul.f32 %v7071_v30, %v8304_v9  ;;  %7076 = vpow2.f32 %v2419_v32  ;;  %v2068_v29 = vpop.xlane.xlu2 %2067  ;;  %v8511_v44 = vpop.eup %7072  ;;  %v1535_v17 = vpack.c.bf16 %v1525_v15, %v1524_v23  ;;  %v2409_v32 = vsub.f32 %v8202_v54, %v8431_v57 }
 0x395   : > { %7078 = vrcp.f32 %v2068_v29 }
 0x396   : > { %5744 = vst.msk [vmem:[%s7431_s3 + $0xf8] sm:$0xff] %vm1089_vm4, %v8504_v41  ;;  %v2417_v29 = vmul.f32 1.442695, %v2409_v32 }
 0x397   : > { %v2403_v53 = vpop.xlane.xlu1 %2402  ;;  %1886 = vadd.xlane.f32.xlu1 %v1885_v28 }
 0x398   : > { %2465 = vrot.lane.b32.xlu0 %v8245_v20, %s7276_s0  ;;  %v2411_v1 = vsub.f32 %v8331_v11, %v2403_v53  ;;  %v2440_v11 = vsel %vm1089_vm4, %v8511_v44, 0.0 }
 0x399   : > { %v7075_v36 = vpop.eup %7074 }
 0x39a   : > { %v8515_v9 = vpop.eup %7076  ;;  %v1701_v0 = vmul.f32 %v7075_v36, %v8317_v63  ;;  %v1875_v18 = vpop.xlane.xlu0 %1874  ;;  %v2421_v63 = vmul.f32 1.442695, %v2411_v1 }
 0x39b   : > { %v7079_v4 = vpop.eup %7078  ;;  %7080 = vrcp.f32 %v1875_v18  ;;  %v2434_v40 = vsel %vm1089_vm4, %v8515_v9, 0.0  ;;  %v1860_v18 = vsub.f32 %v8180_v62, %v8412_v34 }
 0x39c   : > { %5719 = vst.msk [vmem:[%s7431_s3 + $0x90] sm:$0xff] %vm1089_vm4, %v1701_v0  ;;  %v1714_v33 = vpack.c.bf16 %v8439_v37, %v1701_v0  ;;  %v8525_v20 = vmul.f32 %v7079_v4, %v8326_v60  ;;  %2435 = vadd.xlane.f32.xlu2 %v2434_v40  ;;  %v2071_v45 = vpop.xlane.xlu2 %2070  ;;  %v8536_v60 = vsel %vm1009_vm9, -1e+09, %v2199_v5 }
 0x39d   : > { %7082 = vrcp.f32 %v2071_v45  ;;  %v2223_v13 = vsel %vm1089_vm4, %v8536_v60, -inf  ;;  %v1871_v40 = vmul.f32 1.442695, %v1860_v18 }
 0x39e   : > { %5745 = vst.msk [vmem:[%s7431_s3 + $0x100] sm:$0xff] %vm1089_vm4, %v8525_v20  ;;  %5715 = vmatmul.msk.bf16.gmra.mxu1 %vm1089_vm4, %v1535_v17  ;;  %5725 = vmatmul.msk.bf16.vlgmr.msra.gmra.mxu3 %vm1089_vm4, %v1714_v33 }
 0x39f   : > { %v1685_v37 = vpop.xlane.xlu1 %1684  ;;  %2441 = vadd.xlane.f32.xlu1 %v2440_v11 }
 0x3a0   : > { %7084 = vrcp.f32 %v1685_v37 }
 0x3a1   : > { %v7081_v19 = vpop.eup %7080  ;;  %7086 = vpow2.f32 %v2421_v63 }
 0x3a2   : > { %v1897_v55 = vmul.f32 %v7081_v19, %v8335_v51  ;;  %v1688_v35 = vpop.xlane.xlu0 %1687 }
 0x3a3   : > { %v7083_v3 = vpop.eup %7082  ;;  %7088 = vrcp.f32 %v1688_v35 }
 0x3a4   : > { %5731 = vst.msk [vmem:[%s7431_s3 + $0xc0] sm:$0xff] %vm1089_vm4, %v1897_v55  ;;  %v8546_v43 = vmul.f32 %v7083_v3, %v8346_v49  ;;  %2224 = vmax.xlane.f32.xlu2 %v2223_v13  ;;  %v2074_v50 = vpop.xlane.xlu2 %2073 }
 0x3a5   : > { %7090 = vrcp.f32 %v2074_v50 }
 0x3a6   : > { %v7085_v52 = vpop.eup %7084  ;;  %5746 = vst.msk [vmem:[%s7431_s3 + $0x108] sm:$0xff] %vm1089_vm4, %v8546_v43  ;;  %7092 = vpow2.f32 %v2234_v21  ;;  %v2098_v50 = vpack.c.bf16 %v8546_v43, %v8525_v20 }
 0x3a7   : > { %v1703_v51 = vmul.f32 %v7085_v52, %v8348_v14  ;;  %v2210_v25 = vpop.xlane.xlu1 %2209  ;;  %v8552_v8 = vpop.eup %7086 }
 0x3a8   : > { %v2437_v27 = vsel %vm1089_vm4, %v8552_v8, 0.0  ;;  %v2226_v17 = vsub.f32 %v8368_v24, %v2210_v25 }
 0x3a9   : > { %v7089_v15 = vpop.eup %7088  ;;  %5721 = vst.msk [vmem:[%s7431_s3 + $0xa0] sm:$0xff] %vm1089_vm4, %v1703_v51 }
 0x3aa   : > { %v1704_v49 = vmul.f32 %v7089_v15, %v8352_v7  ;;  %v1694_v61 = vpop.xlane.xlu0 %1693  ;;  %v2232_v63 = vmul.f32 1.442695, %v2226_v17 }
 0x3ab   : > { %v7091_v46 = vpop.eup %7090  ;;  %7094 = vrcp.f32 %v1694_v61 }
 0x3ac   : > { %5722 = vst.msk [vmem:[%s7431_s3 + $0xa8] sm:$0xff] %vm1089_vm4, %v1704_v49  ;;  %v8562_v14 = vmul.f32 %v7091_v46, %v8363_v56  ;;  %2438 = vadd.xlane.f32.xlu2 %v2437_v27  ;;  %v1715_v23 = vpack.c.bf16 %v1704_v49, %v1703_v51  ;;  %v8570_v6 = vpop.eup %7092  ;;  %v2468_v13 = vpop.permute.xlu2 %2467 }
 0x3ad   : > { %v2247_v54 = vsel %vm1089_vm4, %v8570_v6, 0.0 }
 0x3ae   : > { %5747 = vst.msk [vmem:[%s7431_s3 + $0x110] sm:$0xff] %vm1089_vm4, %v8562_v14  ;;  %5726 = vmatmul.msk.bf16.gmra.mxu3 %vm1089_vm4, %v1715_v23 }
 0x3af   : > { %v1878_v7 = vpop.xlane.xlu1 %1877 }
 0x3b0   : > { %7096 = vrcp.f32 %v1878_v7 }
 0x3b1   : > { %v7095_v30 = vpop.eup %7094  ;;  %7098 = vpow2.f32 %v2417_v29 }
 0x3b2   : > { %v1706_v56 = vmul.f32 %v7095_v30, %v8372_v10  ;;  %v2216_v28 = vpop.xlane.xlu0 %2215 }
 0x3b3   : > { %v2228_v53 = vsub.f32 %v8389_v2, %v2216_v28 }
 0x3b4   : > { %5724 = vst.msk [vmem:[%s7431_s3 + $0xb8] sm:$0xff] %vm1089_vm4, %v1706_v56  ;;  %2248 = vadd.xlane.f32.xlu2 %v2247_v54  ;;  %v1716_v33 = vpack.c.bf16 %v1706_v56, %v8464_v31 }
 0x3b5   : > { %v2236_v57 = vmul.f32 1.442695, %v2228_v53 }
 0x3b6   : > { %v7097_v36 = vpop.eup %7096 }
 0x3b7   : > { %v1898_v0 = vmul.f32 %v7097_v36, %v8383_v48  ;;  %7100 = vpow2.f32 %v2236_v57  ;;  %v2062_v1 = vpop.xlane.xlu1 %2061  ;;  %v8584_v4 = vpop.eup %7098 }
 0x3b8   : > { %7102 = vrcp.f32 %v2062_v1  ;;  %v2431_v31 = vsel %vm1089_vm4, %v8584_v4, 0.0 }
 0x3b9   : > { %5732 = vst.msk [vmem:[%s7431_s3 + $0xc8] sm:$0xff] %vm1089_vm4, %v1898_v0  ;;  %v1910_v10 = vpack.c.bf16 %v1898_v0, %v1897_v55  ;;  %7104 = vpow2.f32 %v1871_v40 }
 0x3ba   : > { %v2219_v2 = vpop.xlane.xlu0 %2218 }
 0x3bb   : > { %5737 = vmatmul.msk.bf16.vlgmr.msrb.gmra.mxu1 %vm1089_vm4, %v1910_v10  ;;  %v2229_v37 = vsub.f32 %v8410_v59, %v2219_v2  ;;  %v8619_v51 = vpop.f32.mrf.mxu3 }
 0x3bd   : > { %v8587_v45 = vpop.eup %7100  ;;  %v2238_v55 = vmul.f32 1.442695, %v2229_v37 }
 0x3be   : > { %v7103_v48 = vpop.eup %7102  ;;  %5727 = vmatmul.msk.bf16.gmra.mxu3 %vm1089_vm4, %v1716_v33  ;;  %v2250_v62 = vsel %vm1089_vm4, %v8587_v45, 0.0 }
 0x3bf   : > { %v2084_v34 = vmul.f32 %v7103_v48, %v8404_v22  ;;  %2251 = vadd.xlane.f32.xlu1 %v2250_v62  ;;  %v8598_v11 = vpop.eup %7104 }
 0x3c0   : > { %v1888_v19 = vsel %vm1089_vm4, %v8598_v11, 0.0 }
 0x3c1   : > { %5743 = vst.msk [vmem:[%s7431_s3 + $0xf0] sm:$0xff] %vm1089_vm4, %v2084_v34  ;;  %v2097_v26 = vpack.c.bf16 %v8504_v41, %v2084_v34 }
 0x3c2   : > { %v2077_v5 = vpop.xlane.xlu0 %2076  ;;  %2432 = vadd.xlane.f32.xlu0 %v2431_v31 }
 0x3c3   : > { %7106 = vrcp.f32 %v2077_v5  ;;  %v1381_v43 = vpop.f32.mrf.mxu3 }
 0x3c4   : > { %7108 = vpow2.f32 %v2232_v63  ;;  %v6896_v5 = vpack.i.bf16 %v1381_v43, %v8619_v51  ;;  %v8692_v43 = vpop.f32.mrf.mxu1 }
 0x3c5   : > { %7110 = vpow2.f32 %v2238_v55 }
 0x3c9   : > { %v7107_v22 = vpop.eup %7106 }
 0x3ca   : > { %v2089_v24 = vmul.f32 %v7107_v22, %v8418_v58  ;;  %1889 = vadd.xlane.f32.xlu0 %v1888_v19  ;;  %v8607_v35 = vpop.eup %7108 }
 0x3cb   : > { %v2244_v59 = vsel %vm1089_vm4, %v8607_v35, 0.0  ;;  %v8612_v58 = vpop.eup %7110 }
 0x3cc   : > { %5748 = vst.msk [vmem:[%s7431_s3 + $0x118] sm:$0xff] %vm1089_vm4, %v2089_v24  ;;  %v2253_v41 = vsel %vm1089_vm4, %v8612_v58, 0.0  ;;  %v2099_v25 = vpack.c.bf16 %v2089_v24, %v8562_v14 }
 0x3ce   : > { %5749 = vmatmul.msk.bf16.vlgmr.msrb.gmra.mxu3 %vm1089_vm4, %v2097_v26 }
 0x3cf   : > { %v2470_v3 = vpop.permute.xlu1 %2469 }
 0x3d0   : > { %2488 = vmatpush.bf16.msra.mxu3 %v2470_v3 }
 0x3d2   : > { %2245 = vadd.xlane.f32.xlu0 %v2244_v59 }
 0x3d4   : > { %2489 = vmatpush.bf16.msra.mxu3 %v2468_v13 }
 0x3da   : > { %2254 = vadd.xlane.f32.xlu0 %v2253_v41 }
 0x3de   : > { %5750 = vmatmul.msk.bf16.gmra.mxu3 %vm1089_vm4, %v2098_v50 }
 0x3e5   : > { %v2427_v52 = vpop.xlane.xlu2 %2426 }
 0x3e6   : > { %7112 = vrcp.f32 %v2427_v52 }
 0x3ec   : > { %v7113_v21 = vpop.eup %7112 }
 0x3ed   : > { %v2449_v15 = vmul.f32 %v7113_v21, %v8444_v39  ;;  %v1881_v49 = vpop.xlane.xlu2 %1880 }
 0x3ee   : > { %7114 = vrcp.f32 %v1881_v49  ;;  %5751 = vmatmul.msk.bf16.gmra.mxu3 %vm1089_vm4, %v2099_v25 }
 0x3ef   : > { %5767 = vst.msk [vmem:[%s7431_s3 + $0x150] sm:$0xff] %vm1089_vm4, %v2449_v15 }
 0x3f4   : > { %v7115_v61 = vpop.eup %7114 }
 0x3f5   : > { %v1899_v20 = vmul.f32 %v7115_v61, %v8450_v12 }
 0x3f7   : > { %5733 = vst.msk [vmem:[%s7431_s3 + $0xd0] sm:$0xff] %vm1089_vm4, %v1899_v20  ;;  %v2430_v46 = vpop.xlane.xlu0 %2429 }
 0x3f8   : > { %7116 = vrcp.f32 %v2430_v46  ;;  %v6631_v46 = vld [vmem:[%s7409_s26 + $0x38] sm:$0xff] }
 0x3f9   : > { %2831 = vmatpush.bf16.msrb.mxu0 %v6631_v46 }
 0x3fa   : > { %v1884_v27 = vpop.xlane.xlu1 %1883 }
 0x3fb   : > { %7118 = vrcp.f32 %v1884_v27 }
 0x3fe   : > { %v7117_v14 = vpop.eup %7116  ;;  %v8629_v39 = vpop.f32.mrf.mxu3 }
 0x3ff   : > { %v2450_v23 = vmul.f32 %v7117_v14, %v8461_v16 }
 0x401   : > { %v7119_v32 = vpop.eup %7118  ;;  %5768 = vst.msk [vmem:[%s7431_s3 + $0x158] sm:$0xff] %vm1089_vm4, %v2450_v23  ;;  %v2462_v54 = vpack.c.bf16 %v2450_v23, %v2449_v15  ;;  %v6630_v23 = vld [vmem:[%s7409_s26 + $0x30] sm:$0xff] }
 0x402   : > { %v1900_v7 = vmul.f32 %v7119_v32, %v8466_v47  ;;  %v2222_v30 = vpop.xlane.xlu1 %2221  ;;  %2832 = vmatpush.bf16.msrb.mxu0 %v6630_v23  ;;  %v6633_v23 = vld [vmem:[%s7409_s26 + $0x48] sm:$0xff] }
 0x403   : > { %v2230_v12 = vsub.f32 %v8485_v42, %v2222_v30  ;;  %v6629_v30 = vld [vmem:[%s7409_s26 + $0x28] sm:$0xff] }
 0x404   : > { %5734 = vst.msk [vmem:[%s7431_s3 + $0xd8] sm:$0xff] %vm1089_vm4, %v1900_v7  ;;  %v1911_v29 = vpack.c.bf16 %v1900_v7, %v1899_v20  ;;  %v1203_v7 = vpop.f32.mrf.mxu1 }
 0x405   : > { %v2240_v56 = vmul.f32 1.442695, %v2230_v12 }
 0x406   : > { %v8638_v28 = vpop.f32.mrf.mxu3  ;;  %5738 = vmatmul.msk.bf16.gmra.mxu1 %vm1089_vm4, %v1911_v29  ;;  %2833 = vmatpush.bf16.msrb.mxu0 %v6629_v30 }
 0x407   : > { %7120 = vpow2.f32 %v2240_v56  ;;  %v6628_v56 = vld [vmem:[%s7409_s26 + $0x20] sm:$0xff] }
 0x40a   : > { %v2466_v53 = vpop.permute.xlu0 %2465  ;;  %v1887_v16 = vpop.xlane.xlu1 %1886  ;;  %2834 = vmatpush.bf16.msrb.mxu0 %v6628_v56 }
 0x40b   : > { %7122 = vrcp.f32 %v1887_v16  ;;  %2490 = vmatpush.bf16.msra.mxu3 %v2466_v53  ;;  %v6627_v53 = vld [vmem:[%s7409_s26 + $0x18] sm:$0xff] }
 0x40d   : > { %v8641_v57 = vpop.eup %7120 }
 0x40e   : > { %5773 = vmatmul.msk.bf16.vlgmr.msra.gmra.mxu3 %vm1089_vm4, %v2462_v54  ;;  %v2256_v47 = vsel %vm1089_vm4, %v8641_v57, 0.0  ;;  %v8646_v42 = vpop.f32.mrf.mxu3  ;;  %2835 = vmatpush.bf16.msrb.mxu0 %v6627_v53 }
 0x40f   : > { %2257 = vadd.xlane.f32.xlu2 %v2256_v47  ;;  %v2436_v36 = vpop.xlane.xlu2 %2435  ;;  %v6626_v47 = vld [vmem:[%s7409_s26 + $0x10] sm:$0xff] }
 0x410   : > { %7124 = vrcp.f32 %v2436_v36 }
 0x411   : > { %v7123_v0 = vpop.eup %7122 }
 0x412   : > { %v1901_v1 = vmul.f32 %v7123_v0, %v8498_v38  ;;  %v2442_v18 = vpop.xlane.xlu1 %2441  ;;  %2836 = vmatpush.bf16.msrb.mxu0 %v6626_v47  ;;  %v6625_v0 = vld [vmem:[%s7409_s26 + $0x8] sm:$0xff] }
 0x413   : > { %7126 = vrcp.f32 %v2442_v18  ;;  %v6921_v18 = vpack.i.bf16 %v8638_v28, %v8629_v39 }
 0x414   : > { %5735 = vst.msk [vmem:[%s7431_s3 + $0xe0] sm:$0xff] %vm1089_vm4, %v1901_v1 }
 0x416   : > { %v7125_v10 = vpop.eup %7124  ;;  %v8655_v62 = vpop.f32.mrf.mxu3  ;;  %2837 = vmatpush.bf16.msrb.mxu0 %v6625_v0 }
 0x417   : > { %v2452_v2 = vmul.f32 %v7125_v10, %v8515_v9  ;;  %v2225_v40 = vpop.xlane.xlu2 %2224 }
 0x418   : > { %v2231_v33 = vsub.f32 %v8536_v60, %v2225_v40  ;;  %v6624_v40 = vld [vmem:[%s7409_s26] sm:$0xff] }
 0x419   : > { %v7127_v48 = vpop.eup %7126  ;;  %5770 = vst.msk [vmem:[%s7431_s3 + $0x168] sm:$0xff] %vm1089_vm4, %v2452_v2 }
 0x41a   : > { %v2454_v34 = vmul.f32 %v7127_v48, %v8511_v44  ;;  %v2242_v17 = vmul.f32 1.442695, %v2231_v33  ;;  %2838 = vmatpush.bf16.msrb.mxu0 %v6624_v40  ;;  %v6941_v40 = vpack.i.bf16 %v8655_v62, %v8646_v42  ;;  %v6653_v62 = vld [vmem:[%s7409_s26 + $0xe8] sm:$0xff] }
 0x41c   : > { %5772 = vst.msk [vmem:[%s7431_s3 + $0x178] sm:$0xff] %vm1089_vm4, %v2454_v34  ;;  %7128 = vpow2.f32 %v2242_v17 }
 0x41f   : > { %v2439_v38 = vpop.xlane.xlu2 %2438 }
 0x420   : > { %7130 = vrcp.f32 %v2439_v38 }
 0x421   : > { %v8660_v31 = vpop.f32.mrf.mxu3 }
 0x422   : > { %v8662_v9 = vpop.eup %7128 }
 0x423   : > { %v2259_v60 = vsel %vm1089_vm4, %v8662_v9, 0.0 }
 0x424   : > { %2260 = vadd.xlane.f32.xlu1 %v2259_v60  ;;  %v6647_v60 = vld [vmem:[%s7409_s26 + $0xb8] sm:$0xff] }
 0x425   : > { %2879 = vmatpush.bf16.msrb.mxu2 %v6647_v60 }
 0x426   : > { %v7131_v63 = vpop.eup %7130 }
 0x427   : > { %v2453_v44 = vmul.f32 %v7131_v63, %v8552_v8  ;;  %6897 = vrot.lane.b32.xlu2 %v6896_v5, %s7276_s0  ;;  %v2249_v37 = vpop.xlane.xlu2 %2248  ;;  %v6639_v5 = vld [vmem:[%s7409_s26 + $0x78] sm:$0xff]  ;;  %v6646_v63 = vld [vmem:[%s7409_s26 + $0xb0] sm:$0xff] }
 0x428   : > { %7132 = vrcp.f32 %v2249_v37  ;;  %2855 = vmatpush.bf16.msrb.mxu1 %v6639_v5 }
 0x429   : > { %5771 = vst.msk [vmem:[%s7431_s3 + $0x170] sm:$0xff] %vm1089_vm4, %v2453_v44  ;;  %v1746_v22 = vpop.f32.mrf.mxu3  ;;  %2880 = vmatpush.bf16.msrb.mxu2 %v6646_v63 }
 0x42a   : > { %v6911_v54 = vpack.i.bf16 %v1746_v22, %v8660_v31  ;;  %v6645_v22 = vld [vmem:[%s7409_s26 + $0xa8] sm:$0xff] }
 0x42d   : > { %2881 = vmatpush.bf16.msrb.mxu2 %v6645_v22 }
 0x42e   : > { %v7133_v19 = vpop.eup %7132 }
 0x42f   : > { %v2269_v24 = vmul.f32 %v7133_v19, %v8570_v6 }
 0x431   : > { %5756 = vst.msk [vmem:[%s7431_s3 + $0x128] sm:$0xff] %vm1089_vm4, %v2269_v24  ;;  %v8674_v26 = vpop.f32.mrf.mxu3 }
 0x432   : > { %v2252_v55 = vpop.xlane.xlu1 %2251 }
 0x433   : > { %7134 = vrcp.f32 %v2252_v55 }
 0x435   : > { %v2433_v3 = vpop.xlane.xlu0 %2432 }
 0x436   : > { %7136 = vrcp.f32 %v2433_v3 }
 0x439   : > { %v7135_v8 = vpop.eup %7134  ;;  %v8676_v59 = vpop.f32.mrf.mxu3 }
 0x43a   : > { %v2270_v13 = vmul.f32 %v7135_v8, %v8587_v45  ;;  %v6931_v48 = vpack.i.bf16 %v8676_v59, %v8674_v26 }
 0x43c   : > { %v7137_v41 = vpop.eup %7136  ;;  %5757 = vst.msk [vmem:[%s7431_s3 + $0x130] sm:$0xff] %vm1089_vm4, %v2270_v13 }
 0x43d   : > { %v2451_v50 = vmul.f32 %v7137_v41, %v8584_v4  ;;  %v1890_v6 = vpop.xlane.xlu0 %1889 }
 0x43e   : > { %7138 = vrcp.f32 %v1890_v6 }
 0x43f   : > { %5769 = vst.msk [vmem:[%s7431_s3 + $0x160] sm:$0xff] %vm1089_vm4, %v2451_v50  ;;  %v2463_v52 = vpack.c.bf16 %v2452_v2, %v2451_v50 }
 0x441   : > { %v8684_v21 = vpop.f32.mrf.mxu3  ;;  %5774 = vmatmul.msk.bf16.gmra.mxu3 %vm1089_vm4, %v2463_v52 }
 0x444   : > { %v7139_v51 = vpop.eup %7138 }
 0x445   : > { %v1902_v25 = vmul.f32 %v7139_v51, %v8598_v11  ;;  %v2246_v45 = vpop.xlane.xlu0 %2245  ;;  %v2464_v11 = vpack.c.bf16 %v2454_v34, %v2453_v44  ;;  %v6638_v44 = vld [vmem:[%s7409_s26 + $0x70] sm:$0xff] }
 0x446   : > { %7140 = vrcp.f32 %v2246_v45  ;;  %2856 = vmatpush.bf16.msrb.mxu1 %v6638_v44 }
 0x447   : > { %5736 = vst.msk [vmem:[%s7431_s3 + $0xe8] sm:$0xff] %vm1089_vm4, %v1902_v25  ;;  %v1912_v4 = vpack.c.bf16 %v1902_v25, %v1901_v1 }
 0x449   : > { %v1756_v15 = vpop.f32.mrf.mxu3  ;;  %5739 = vmatmul.msk.bf16.gmra.mxu1 %vm1089_vm4, %v1912_v4 }
 0x44a   : > { %v6951_v38 = vpack.i.bf16 %v1756_v15, %v8684_v21  ;;  %v6637_v15 = vld [vmem:[%s7409_s26 + $0x68] sm:$0xff] }
 0x44b   : > { %2857 = vmatpush.bf16.msrb.mxu1 %v6637_v15  ;;  %v6649_v15 = vld [vmem:[%s7409_s26 + $0xc8] sm:$0xff] }
 0x44c   : > { %v7141_v49 = vpop.eup %7140 }
 0x44d   : > { %v2268_v61 = vmul.f32 %v7141_v49, %v8607_v35  ;;  %v2255_v20 = vpop.xlane.xlu0 %2254  ;;  %v6643_v49 = vld [vmem:[%s7409_s26 + $0x98] sm:$0xff] }
 0x44e   : > { %7142 = vrcp.f32 %v2255_v20  ;;  %v6636_v20 = vld [vmem:[%s7409_s26 + $0x60] sm:$0xff] }
 0x44f   : > { %5755 = vst.msk [vmem:[%s7431_s3 + $0x120] sm:$0xff] %vm1089_vm4, %v2268_v61  ;;  %v2281_v35 = vpack.c.bf16 %v2269_v24, %v2268_v61  ;;  %2858 = vmatpush.bf16.msrb.mxu1 %v6636_v20 }
 0x451   : > { %v2127_v27 = vpop.f32.mrf.mxu3  ;;  %5775 = vmatmul.msk.bf16.gmra.mxu3 %vm1089_vm4, %v2464_v11  ;;  %v6641_v11 = vld [vmem:[%s7409_s26 + $0x88] sm:$0xff] }
 0x454   : > { %v7143_v14 = vpop.eup %7142 }
 0x455   : > { %v2271_v32 = vmul.f32 %v7143_v14, %v8612_v58  ;;  %v8707_v58 = vpop.f32.mrf.mxu1  ;;  %v6640_v14 = vld [vmem:[%s7409_s26 + $0x80] sm:$0xff] }
 0x457   : > { %5758 = vst.msk [vmem:[%s7431_s3 + $0x138] sm:$0xff] %vm1089_vm4, %v2271_v32  ;;  %v2282_v36 = vpack.c.bf16 %v2271_v32, %v2270_v13  ;;  %v6644_v13 = vld [vmem:[%s7409_s26 + $0xa0] sm:$0xff] }
 0x458   : > { %2882 = vmatpush.bf16.msrb.mxu2 %v6644_v13  ;;  %v6632_v32 = vld [vmem:[%s7409_s26 + $0x40] sm:$0xff] }
 0x459   : > { %v2129_v12 = vpop.f32.mrf.mxu3  ;;  %5761 = vmatmul.msk.bf16.vlgmr.msra.gmra.mxu1 %vm1089_vm4, %v2281_v35 }
 0x45a   : > { %v6901_v29 = vpack.i.bf16 %v2129_v12, %v2127_v27  ;;  %v6634_v27 = vld [vmem:[%s7409_s26 + $0x50] sm:$0xff] }
 0x45c   : > { %6902 = vrot.lane.b32.xlu0 %v6901_v29, %s7276_s0  ;;  %2883 = vmatpush.bf16.msrb.mxu2 %v6643_v49 }
 0x45d   : > { %v8716_v2 = vpop.f32.mrf.mxu1 }
 0x461   : > { %v2132_v16 = vpop.f32.mrf.mxu3 }
 0x464   : > { %6912 = vrot.lane.b32.xlu0 %v6911_v54, %s7276_s0 }
 0x465   : > { %v8724_v39 = vpop.f32.mrf.mxu1 }
 0x469   : > { %v2134_v1 = vpop.f32.mrf.mxu3  ;;  %5762 = vmatmul.msk.bf16.gmra.mxu1 %vm1089_vm4, %v2282_v36 }
 0x46a   : > { %v6916_v10 = vpack.i.bf16 %v2134_v1, %v2132_v16 }
 0x46c   : > { %6922 = vrot.lane.b32.xlu0 %v6921_v18, %s7276_s0  ;;  %6917 = vrot.lane.b32.xlu2 %v6916_v10, %s7276_s0  ;;  %v6655_v10 = vld [vmem:[%s7409_s26 + $0xf8] sm:$0xff] }
 0x46d   : > { %v8727_v17 = vpop.f32.mrf.mxu1  ;;  %2903 = vmatpush.bf16.msrb.mxu3 %v6655_v10 }
 0x471   : > { %v2137_v33 = vpop.f32.mrf.mxu3 }
 0x474   : > { %6932 = vrot.lane.b32.xlu2 %v6931_v48, %s7276_s0 }
 0x475   : > { %v8736_v19 = vpop.f32.mrf.mxu1 }
 0x479   : > { %v2139_v28 = vpop.f32.mrf.mxu3 }
 0x47a   : > { %v6936_v34 = vpack.i.bf16 %v2139_v28, %v2137_v33 }
 0x47c   : > { %6937 = vrot.lane.b32.xlu0 %v6936_v34, %s7276_s0 }
 0x482   : > { %v2258_v31 = vpop.xlane.xlu2 %2257 }
 0x483   : > { %7144 = vrcp.f32 %v2258_v31 }
 0x484   : > { %6952 = vrot.lane.b32.xlu0 %v6951_v38, %s7276_s0  ;;  %v6654_v38 = vld [vmem:[%s7409_s26 + $0xf0] sm:$0xff] }
 0x485   : > { %2904 = vmatpush.bf16.msrb.mxu3 %v6654_v38 }
 0x489   : > { %v7145_v37 = vpop.eup %7144  ;;  %2905 = vmatpush.bf16.msrb.mxu3 %v6653_v62 }
 0x48a   : > { %v2272_v24 = vmul.f32 %v7145_v37, %v8641_v57  ;;  %v6898_v26 = vpop.permute.xlu2 %6897  ;;  %v1568_v57 = vpop.f32.mrf.mxu1 }
 0x48b   : > { %v6900_v55 = vunpack.i.h.bf16 %v6898_v26  ;;  %v6899_v3 = vunpack.i.l.bf16 %v6898_v26  ;;  %v6652_v26 = vld [vmem:[%s7409_s26 + $0xe0] sm:$0xff] }
 0x48c   : > { %5759 = vst.msk [vmem:[%s7431_s3 + $0x140] sm:$0xff] %vm1089_vm4, %v2272_v24 }
 0x48d   : > { %v2603_v8 = vsel %vm1040_vm2, %v8692_v43, %v6899_v3  ;;  %v2604_v59 = vsel %vm1040_vm2, %v1203_v7, %v6900_v55  ;;  %v6642_v43 = vld [vmem:[%s7409_s26 + $0x90] sm:$0xff]  ;;  %2906 = vmatpush.bf16.msrb.mxu3 %v6652_v26 }
 0x48e   : > { %v2627_v41 = vpack.c.bf16 %v2604_v59, %v2603_v8  ;;  %2884 = vmatpush.bf16.msrb.mxu2 %v6642_v43 }
 0x490   : > { %2839 = vmatmul.bf16.vlgmr.msrb.gmra.mxu0 %v2627_v41 }
 0x491   : > { %v2492_v50 = vpop.f32.mrf.mxu3 }
 0x492   : > { %v8745_v51 = vpop.f32.mrf.mxu1  ;;  %2885 = vmatpush.bf16.msrb.mxu2 %v6641_v11  ;;  %v6648_v11 = vld [vmem:[%s7409_s26 + $0xc0] sm:$0xff] }
 0x496   : > { %2886 = vmatpush.bf16.msrb.mxu2 %v6640_v14 }
 0x497   : > { %v2261_v6 = vpop.xlane.xlu1 %2260 }
 0x498   : > { %7146 = vrcp.f32 %v2261_v6  ;;  %v6651_v6 = vld [vmem:[%s7409_s26 + $0xd8] sm:$0xff] }
 0x499   : > { %v2494_v52 = vpop.f32.mrf.mxu3  ;;  %2907 = vmatpush.bf16.msrb.mxu3 %v6651_v6 }
 0x49a   : > { %v6906_v21 = vpack.i.bf16 %v2494_v52, %v2492_v50  ;;  %v8754_v61 = vpop.f32.mrf.mxu1 }
 0x49c   : > { %6907 = vrot.lane.b32.xlu1 %v6906_v21, %s7276_s0 }
 0x49e   : > { %v7147_v25 = vpop.eup %7146 }
 0x49f   : > { %v2273_v45 = vmul.f32 %v7147_v25, %v8662_v9  ;;  %v6635_v9 = vld [vmem:[%s7409_s26 + $0x58] sm:$0xff] }
 0x4a0   : > { %2859 = vmatpush.bf16.msrb.mxu1 %v6635_v9 }
 0x4a1   : > { %5760 = vst.msk [vmem:[%s7431_s3 + $0x148] sm:$0xff] %vm1089_vm4, %v2273_v45  ;;  %v2283_v4 = vpack.c.bf16 %v2273_v45, %v2272_v24  ;;  %v6650_v45 = vld [vmem:[%s7409_s26 + $0xd0] sm:$0xff] }
 0x4a2   : > { %v8760_v46 = vpop.f32.mrf.mxu1  ;;  %2908 = vmatpush.bf16.msrb.mxu3 %v6650_v45 }
 0x4a3   : > { %5763 = vmatmul.msk.bf16.gmra.mxu1 %vm1089_vm4, %v2283_v4 }
 0x4a4   : > { %2860 = vmatpush.bf16.msrb.mxu1 %v6634_v27 }
 0x4a6   : > { %2909 = vmatpush.bf16.msrb.mxu3 %v6649_v15 }
 0x4a8   : > { %2861 = vmatpush.bf16.msrb.mxu1 %v6633_v23 }
 0x4aa   : > { %v8766_v35 = vpop.f32.mrf.mxu1  ;;  %2910 = vmatpush.bf16.msrb.mxu3 %v6648_v11 }
 0x4ac   : > { %2862 = vmatpush.bf16.msrb.mxu1 %v6632_v32 }
 0x4b2   : > { %v1949_v7 = vpop.f32.mrf.mxu1 }
 0x4ba   : > { %v1951_v12 = vpop.f32.mrf.mxu1 }
 0x4c2   : > { %v1954_v1 = vpop.f32.mrf.mxu1 }
 0x4c4   : > { %v2497_v30 = vpop.f32.mrf.mxu3 }
 0x4c6   : > { %v6918_v33 = vpop.permute.xlu2 %6917 }
 0x4c7   : > { %v6920_v63 = vunpack.i.h.bf16 %v6918_v33  ;;  %v6919_v44 = vunpack.i.l.bf16 %v6918_v33 }
 0x4ca   : > { %v1956_v22 = vpop.f32.mrf.mxu1 }
 0x4cb   : > { %v2618_v8 = vsel %vm1040_vm2, %v1956_v22, %v6920_v63 }
 0x4cc   : > { %v2499_v29 = vpop.f32.mrf.mxu3 }
 0x4cd   : > { %v6926_v56 = vpack.i.bf16 %v2499_v29, %v2497_v30 }
 0x4ce   : > { %v6903_v53 = vpop.permute.xlu0 %6902  ;;  %v6933_v59 = vpop.permute.xlu2 %6932 }
 0x4cf   : > { %v6905_v16 = vunpack.i.h.bf16 %v6903_v53  ;;  %v6904_v54 = vunpack.i.l.bf16 %v6903_v53  ;;  %6927 = vrot.lane.b32.xlu1 %v6926_v56, %s7276_s0  ;;  %v6935_v52 = vunpack.i.h.bf16 %v6933_v59  ;;  %v6934_v21 = vunpack.i.l.bf16 %v6933_v59 }
 0x4d1   : > { %v2615_v47 = vsel %vm1040_vm2, %v1949_v7, %v6904_v54  ;;  %v2616_v36 = vsel %vm1040_vm2, %v1951_v12, %v6905_v16  ;;  %v2611_v4 = vsel %vm1040_vm2, %v8745_v51, %v6934_v21 }
 0x4d2   : > { %v2629_v0 = vpack.c.bf16 %v2616_v36, %v2615_v47  ;;  %v1959_v25 = vpop.f32.mrf.mxu1 }
 0x4d4   : > { %v2502_v18 = vpop.f32.mrf.mxu3  ;;  %2887 = vmatmul.bf16.vlgmr.msrb.gmra.mxu2 %v2629_v0 }
 0x4d6   : > { %v6913_v48 = vpop.permute.xlu0 %6912 }
 0x4d7   : > { %v6915_v28 = vunpack.i.h.bf16 %v6913_v48  ;;  %v6914_v34 = vunpack.i.l.bf16 %v6913_v48  ;;  %6942 = vrot.lane.b32.xlu1 %v6941_v40, %s7276_s0 }
 0x4d9   : > { %v2609_v31 = vsel %vm1040_vm2, %v8736_v19, %v6914_v34  ;;  %v2610_v60 = vsel %vm1040_vm2, %v1568_v57, %v6915_v28  ;;  %v2617_v19 = vsel %vm1040_vm2, %v1954_v1, %v6919_v44 }
 0x4da   : > { %v2628_v5 = vpack.c.bf16 %v2610_v60, %v2609_v31  ;;  %v2633_v57 = vpack.c.bf16 %v2618_v8, %v2617_v19  ;;  %v1961_v9 = vpop.f32.mrf.mxu1  ;;  %v7174_v19 = vld [vmem:[#allocation2] sm:$0xff] }
 0x4dc   : > { %v2504_v42 = vpop.f32.mrf.mxu3  ;;  %2863 = vmatmul.bf16.vlgmr.msrb.gmra.mxu1 %v2628_v5 }
 0x4dd   : > { %v6946_v37 = vpack.i.bf16 %v2504_v42, %v2502_v18 }
 0x4de   : > { %v6923_v24 = vpop.permute.xlu0 %6922 }
 0x4df   : > { %v6925_v55 = vunpack.i.h.bf16 %v6923_v24  ;;  %v6924_v3 = vunpack.i.l.bf16 %v6923_v24  ;;  %6947 = vrot.lane.b32.xlu2 %v6946_v37, %s7276_s0 }
 0x4e1   : > { %v2605_v13 = vsel %vm1040_vm2, %v8707_v58, %v6924_v3  ;;  %v2606_v41 = vsel %vm1040_vm2, %v8716_v2, %v6925_v55  ;;  %v2612_v58 = vsel %vm1040_vm2, %v8754_v61, %v6935_v52 }
 0x4e2   : > { %v2631_v50 = vpack.c.bf16 %v2606_v41, %v2605_v13  ;;  %v2632_v2 = vpack.c.bf16 %v2612_v58, %v2611_v4  ;;  %v2314_v29 = vpop.f32.mrf.mxu1 }
 0x4e4   : > { %2844 = vmatmul.bf16.gmra.mxu0 %v2631_v50  ;;  %2892 = vmatmul.bf16.gmra.mxu2 %v2633_v57  ;;  %v7175_v57 = vld [vmem:[#allocation2 + $0x8] sm:$0xff] }
 0x4ea   : > { %v2316_v54 = vpop.f32.mrf.mxu1 }
 0x4ec   : > { %2868 = vmatmul.bf16.gmra.mxu1 %v2632_v2 }
 0x4ee   : > { %v6938_v49 = vpop.permute.xlu0 %6937 }
 0x4ef   : > { %v6940_v20 = vunpack.i.h.bf16 %v6938_v49  ;;  %v6939_v43 = vunpack.i.l.bf16 %v6938_v49 }
 0x4f1   : > { %v2619_v27 = vsel %vm1040_vm2, %v1959_v25, %v6939_v43  ;;  %v2620_v14 = vsel %vm1040_vm2, %v1961_v9, %v6940_v20  ;;  %v7176_v9 = vld [vmem:[#allocation2 + $0x10] sm:$0xff] }
 0x4f2   : > { %v2637_v23 = vpack.c.bf16 %v2620_v14, %v2619_v27  ;;  %v2319_v1 = vpop.f32.mrf.mxu1 }
 0x4f4   : > { %2897 = vmatmul.bf16.gmra.mxu2 %v2637_v23 }
 0x4f6   : > { %v6953_v51 = vpop.permute.xlu0 %6952 }
 0x4f7   : > { %v6955_v32 = vunpack.i.h.bf16 %v6953_v51  ;;  %v6954_v61 = vunpack.i.l.bf16 %v6953_v51 }
 0x4f9   : > { %v2613_v7 = vsel %vm1040_vm2, %v8760_v46, %v6954_v61  ;;  %v2614_v30 = vsel %vm1040_vm2, %v8766_v35, %v6955_v32  ;;  %v7177_v61 = vld [vmem:[#allocation2 + $0x18] sm:$0xff] }
 0x4fa   : > { %v2636_v12 = vpack.c.bf16 %v2614_v30, %v2613_v7  ;;  %v2321_v18 = vpop.f32.mrf.mxu1 }
 0x4fc   : > { %2873 = vmatmul.bf16.gmra.mxu1 %v2636_v12 }
 0x50d   : > { %v2840_v55 = vpop.f32.mrf.mxu0 }
 0x50e   : > { %v6908_v56 = vpop.permute.xlu1 %6907  ;;  %v2841_v8 = vadd.f32 %v7174_v19, %v2840_v55 }
 0x50f   : > { %v6910_v53 = vunpack.i.h.bf16 %v6908_v56  ;;  %v6909_v16 = vunpack.i.l.bf16 %v6908_v56 }
 0x511   : > { %v2621_v47 = vsel %vm1040_vm2, %v2314_v29, %v6909_v16  ;;  %v2622_v36 = vsel %vm1040_vm2, %v2316_v54, %v6910_v53  ;;  %v7178_v16 = vld [vmem:[#allocation2 + $0x20] sm:$0xff] }
 0x512   : > { %v2630_v0 = vpack.c.bf16 %v2622_v36, %v2621_v47 }
 0x514   : > { %2911 = vmatmul.bf16.vlgmr.msrb.gmra.mxu3 %v2630_v0 }
 0x515   : > { %v2842_v13 = vpop.f32.mrf.mxu0 }
 0x516   : > { %v2843_v6 = vadd.f32 %v7175_v57, %v2842_v13 }
 0x520   : > { %v2324_v28 = vpop.f32.mrf.mxu1 }
 0x528   : > { %v2326_v37 = vpop.f32.mrf.mxu1 }
 0x539   : > { %v6948_v60 = vpop.permute.xlu2 %6947 }
 0x53a   : > { %v6950_v42 = vunpack.i.h.bf16 %v6948_v60  ;;  %v6949_v62 = vunpack.i.l.bf16 %v6948_v60 }
 0x53c   : > { %v2625_v22 = vsel %vm1040_vm2, %v2324_v28, %v6949_v62  ;;  %v2626_v24 = vsel %vm1040_vm2, %v2326_v37, %v6950_v42  ;;  %v7277_v37 = vmov 32.0  }
 0x53d   : > { %v2638_v26 = vpack.c.bf16 %v2626_v24, %v2625_v22  ;;  %7148 = vrcp.f32 %v7277_v37 }
 0x541   : > { %v6928_v10 = vpop.permute.xlu1 %6927 }
 0x542   : > { %v6930_v46 = vunpack.i.h.bf16 %v6928_v10  ;;  %v6929_v40 = vunpack.i.l.bf16 %v6928_v10 }
 0x543   : > { %v7149_v22 = vpop.eup %7148 }
 0x544   : > { %v2623_v35 = vsel %vm1040_vm2, %v2319_v1, %v6929_v40  ;;  %v2624_v33 = vsel %vm1040_vm2, %v2321_v18, %v6930_v46  ;;  %v2946_v24 = vmul.f32 32.0, %v7149_v22  ;;  %vm2950_vm10 = vweird.f32 %v7149_v22 }
 0x545   : > { %v2634_v48 = vpack.c.bf16 %v2624_v33, %v2623_v35  ;;  %v7179_v35 = vld [vmem:[#allocation2 + $0x28] sm:$0xff] }
 0x547   : > { %2916 = vmatmul.bf16.gmra.mxu3 %v2634_v48 }
 0x549   : > { %v6943_v34 = vpop.permute.xlu1 %6942 }
 0x54a   : > { %v6945_v38 = vunpack.i.h.bf16 %v6943_v34  ;;  %v6944_v31 = vunpack.i.l.bf16 %v6943_v34 }
 0x54c   : > { %v2607_v5 = vsel %vm1040_vm2, %v8724_v39, %v6944_v31  ;;  %v2608_v63 = vsel %vm1040_vm2, %v8727_v17, %v6945_v38 }
 0x54d   : > { %v2635_v44 = vpack.c.bf16 %v2608_v63, %v2607_v5 }
 0x54f   : > { %2849 = vmatmul.bf16.gmra.mxu0 %v2635_v44 }
 0x557   : > { %2921 = vmatmul.bf16.gmra.mxu3 %v2638_v26  ;;  %v2888_v39 = vpop.f32.mrf.mxu2  ;;  %v2947_v26 = vsub.f32 1.0, %v2946_v24 }
 0x559   : > { %v2864_v3 = vpop.f32.mrf.mxu1  ;;  %v2948_v55 = vmul.f32 %v7149_v22, %v2947_v26 }
 0x55a   : > { %v2865_v59 = vadd.f32 %v2864_v3, %v2841_v8 }
 0x55b   : > { %v2949_v3 = vadd.f32 %v7149_v22, %v2948_v55 }
 0x55c   : > { %v2889_v41 = vadd.f32 %v2888_v39, %v2865_v59 }
 0x55d   : > { %v8824_v19 = vsel %vm2950_vm10, %v7149_v22, %v2949_v3 }
 0x55f   : > { %v2890_v45 = vpop.f32.mrf.mxu2 }
 0x561   : > { %v2866_v17 = vpop.f32.mrf.mxu1  ;;  %v2845_v49 = vpop.f32.mrf.mxu0 }
 0x562   : > { %v2867_v21 = vadd.f32 %v2866_v17, %v2843_v6  ;;  %v2846_v11 = vadd.f32 %v7176_v9, %v2845_v49 }
 0x564   : > { %v2891_v4 = vadd.f32 %v2890_v45, %v2867_v21 }
 0x567   : > { %v2893_v43 = vpop.f32.mrf.mxu2 }
 0x569   : > { %v2869_v20 = vpop.f32.mrf.mxu1  ;;  %v2847_v27 = vpop.f32.mrf.mxu0 }
 0x56a   : > { %v2870_v14 = vadd.f32 %v2869_v20, %v2846_v11  ;;  %v2848_v7 = vadd.f32 %v7177_v61, %v2847_v27 }
 0x56c   : > { %v2894_v51 = vadd.f32 %v2893_v43, %v2870_v14 }
 0x56f   : > { %v2895_v12 = vpop.f32.mrf.mxu2 }
 0x571   : > { %v2871_v23 = vpop.f32.mrf.mxu1 }
 0x572   : > { %v2872_v56 = vadd.f32 %v2871_v23, %v2848_v7 }
 0x574   : > { %v2896_v47 = vadd.f32 %v2895_v12, %v2872_v56  ;;  %v5970_v12 = vld [vmem:[%s7414_s22 + $0x80] sm:$0xf]  ;;  %v6672_v56 = vld [vmem:[%s7414_s22 + $0x84] sm:$0xf] }
 0x577   : > { %v2898_v46 = vpop.f32.mrf.mxu2 }
 0x579   : > { %v2874_v36 = vpop.f32.mrf.mxu1 }
 0x57f   : > { %v2900_v5 = vpop.f32.mrf.mxu2 }
 0x581   : > { %v2876_v38 = vpop.f32.mrf.mxu1 }
 0x597   : > { %v2912_v50 = vpop.f32.mrf.mxu3 }
 0x598   : > { %v8812_v52 = vadd.f32 %v2912_v50, %v2889_v41 }
 0x59a   : > { %v2927_v25 = vsel %vm566_vm1, %v8812_v52, 0.0 }
 0x59b   : > { %2928 = vadd.xlane.f32.xlu1 %v2927_v25 }
 0x59f   : > { %v2914_v58 = vpop.f32.mrf.mxu3 }
 0x5a0   : > { %v8816_v2 = vadd.f32 %v2914_v58, %v2891_v4 }
 0x5a2   : > { %v2930_v15 = vsel %vm566_vm1, %v8816_v2, 0.0 }
 0x5a3   : > { %2931 = vadd.xlane.f32.xlu2 %v2930_v15 }
 0x5ca   : > { %v2917_v32 = vpop.f32.mrf.mxu3 }
 0x5cb   : > { %v2918_v30 = vadd.f32 %v2917_v32, %v2894_v51 }
 0x5cc   : > { %v2850_v29 = vpop.f32.mrf.mxu0 }
 0x5cd   : > { %v2933_v53 = vsel %vm566_vm1, %v2918_v30, 0.0  ;;  %v2851_v54 = vadd.f32 %v7178_v16, %v2850_v29  ;;  %v6680_v29 = vld [vmem:[%s7414_s22 + $0xbc] sm:$0xf0]  ;;  %v5972_v16 = vld [vmem:[%s7414_s22 + $0xc0] sm:$0xf0] }
 0x5ce   : > { %2934 = vadd.xlane.f32.xlu0 %v2933_v53  ;;  %v5971_v53 = vor.u32 %v6680_v29, %v5970_v12  ;;  %v5994_v12 = vld [vmem:[%s7414_s22 + $0x98] sm:$0xf] }
 0x5cf   : > { %v2875_v18 = vadd.f32 %v2874_v36, %v2851_v54  ;;  %v5978_v54 = vld [vmem:[%s7414_s22 + $0x88] sm:$0xf]  ;;  %v5975_v36 = vor.u32 %v6672_v56, %v5972_v16  ;;  %v6683_v29 = vld [vmem:[%s7414_s22 + $0xd4] sm:$0xf0]  ;;  %v5986_v56 = vld [vmem:[%s7414_s22 + $0x90] sm:$0xf] }
 0x5d0   : > { %3532 = vmatpush.bf16.msra.mxu0 %v5971_v53  ;;  %v5995_v16 = vor.u32 %v6683_v29, %v5994_v12  ;;  %v6002_v12 = vld [vmem:[%s7414_s22 + $0xa0] sm:$0xf] }
 0x5d1   : > { %v2899_v48 = vadd.f32 %v2898_v46, %v2875_v18  ;;  %v5980_v18 = vld [vmem:[%s7414_s22 + $0xc8] sm:$0xf0]  ;;  %3556 = vmatpush.bf16.msra.mxu1 %v5975_v36  ;;  %v5906_v46 = vld [vmem:[%s7414_s22] sm:$0xf] }
 0x5d2   : > { %v2919_v0 = vpop.f32.mrf.mxu3 }
 0x5d3   : > { %v2920_v1 = vadd.f32 %v2919_v0, %v2896_v47  ;;  %v6681_v47 = vld [vmem:[%s7414_s22 + $0xc4] sm:$0xf0] }
 0x5d4   : > { %v2852_v40 = vpop.f32.mrf.mxu0  ;;  %v5979_v0 = vor.u32 %v6681_v47, %v5978_v54  ;;  %v6682_v54 = vld [vmem:[%s7414_s22 + $0xcc] sm:$0xf0]  ;;  %v6675_v47 = vld [vmem:[%s7414_s22 + $0x9c] sm:$0xf] }
 0x5d5   : > { %v2936_v10 = vsel %vm566_vm1, %v2920_v1, 0.0  ;;  %v2853_v33 = vadd.f32 %v7179_v35, %v2852_v40  ;;  %v6664_v40 = vld [vmem:[%s7414_s22 + $0x3c] sm:$0xf0]  ;;  %v6656_v35 = vld [vmem:[%s7414_s22 + $0x4] sm:$0xf] }
 0x5d6   : > { %2937 = vadd.xlane.f32.xlu1 %v2936_v10  ;;  %3580 = vmatpush.bf16.msra.mxu2 %v5979_v0 }
 0x5d7   : > { %v2877_v31 = vadd.f32 %v2876_v38, %v2853_v33  ;;  %v5907_v33 = vor.u32 %v6664_v40, %v5906_v46 }
 0x5d9   : > { %v2901_v63 = vadd.f32 %v2900_v5, %v2877_v31  ;;  %v6657_v5 = vld [vmem:[%s7414_s22 + $0xc] sm:$0xf]  ;;  %3533 = vmatpush.bf16.msra.mxu0 %v5907_v33  ;;  %v5922_v33 = vld [vmem:[%s7414_s22 + $0x10] sm:$0xf] }
 0x5da   : > { %v2922_v28 = vpop.f32.mrf.mxu3 }
 0x5db   : > { %v2923_v34 = vadd.f32 %v2922_v28, %v2899_v48  ;;  %v5908_v48 = vld [vmem:[%s7414_s22 + $0x40] sm:$0xf0]  ;;  %v5914_v28 = vld [vmem:[%s7414_s22 + $0x8] sm:$0xf] }
 0x5dc   : > { %v5911_v31 = vor.u32 %v6656_v35, %v5908_v48  ;;  %v5988_v35 = vld [vmem:[%s7414_s22 + $0xd0] sm:$0xf0]  ;;  %v6666_v48 = vld [vmem:[%s7414_s22 + $0x4c] sm:$0xf0] }
 0x5dd   : > { %v2939_v60 = vsel %vm566_vm1, %v2923_v34, 0.0 }
 0x5de   : > { %2940 = vadd.xlane.f32.xlu2 %v2939_v60  ;;  %3557 = vmatpush.bf16.msra.mxu1 %v5911_v31  ;;  %v5924_v31 = vld [vmem:[%s7414_s22 + $0x50] sm:$0xf0] }
 0x5e2   : > { %v2924_v44 = vpop.f32.mrf.mxu3 }
 0x5e3   : > { %v2925_v42 = vadd.f32 %v2924_v44, %v2901_v63  ;;  %v5916_v63 = vld [vmem:[%s7414_s22 + $0x48] sm:$0xf0] }
 0x5e5   : > { %v2942_v62 = vsel %vm566_vm1, %v2925_v42, 0.0 }
 0x5e6   : > { %2943 = vadd.xlane.f32.xlu0 %v2942_v62 }
 0x60e   : > { %v2929_v8 = vpop.xlane.xlu1 %2928 }
 0x60f   : > { %v2952_v59 = vmul.f32 %v8824_v19, %v2929_v8 }
 0x611   : > { %v8828_v39 = vsub.f32 %v8812_v52, %v2952_v59 }
 0x613   : > { %v2964_v13 = vmul.f32 %v8828_v39, %v8828_v39 }
 0x615   : > { %v2970_v41 = vsel %vm566_vm1, %v2964_v13, 0.0 }
 0x616   : > { %v2932_v17 = vpop.xlane.xlu2 %2931  ;;  %2971 = vadd.xlane.f32.xlu1 %v2970_v41 }
 0x617   : > { %v2953_v50 = vmul.f32 %v8824_v19, %v2932_v17 }
 0x619   : > { %v8835_v57 = vsub.f32 %v8816_v2, %v2953_v50 }
 0x61b   : > { %v2965_v6 = vmul.f32 %v8835_v57, %v8835_v57 }
 0x61d   : > { %v2973_v21 = vsel %vm566_vm1, %v2965_v6, 0.0 }
 0x61e   : > { %2974 = vadd.xlane.f32.xlu2 %v2973_v21 }
 0x641   : > { %v2935_v52 = vpop.xlane.xlu0 %2934 }
 0x642   : > { %v2954_v25 = vmul.f32 %v8824_v19, %v2935_v52 }
 0x644   : > { %v8841_v45 = vsub.f32 %v2918_v30, %v2954_v25 }
 0x646   : > { %v2966_v4 = vmul.f32 %v8841_v45, %v8841_v45 }
 0x648   : > { %v2976_v58 = vsel %vm566_vm1, %v2966_v4, 0.0 }
 0x649   : > { %v2938_v15 = vpop.xlane.xlu1 %2937  ;;  %2977 = vadd.xlane.f32.xlu0 %v2976_v58 }
 0x64a   : > { %v2955_v2 = vmul.f32 %v8824_v19, %v2938_v15 }
 0x64c   : > { %v8847_v49 = vsub.f32 %v2920_v1, %v2955_v2  ;;  %v6673_v1 = vld [vmem:[%s7414_s22 + $0x8c] sm:$0xf] }
 0x64d   : > { %v5983_v10 = vor.u32 %v6673_v1, %v5980_v18  ;;  %v5987_v1 = vor.u32 %v6682_v54, %v5986_v56  ;;  %v5996_v18 = vld [vmem:[%s7414_s22 + $0xd8] sm:$0xf0]  ;;  %v6684_v56 = vld [vmem:[%s7414_s22 + $0xdc] sm:$0xf0] }
 0x64e   : > { %v2967_v20 = vmul.f32 %v8847_v49, %v8847_v49  ;;  %v5999_v40 = vor.u32 %v6675_v47, %v5996_v18  ;;  %v6003_v54 = vor.u32 %v6684_v56, %v6002_v12  ;;  %v5938_v18 = vld [vmem:[%s7414_s22 + $0x20] sm:$0xf]  ;;  %v6694_v12 = vld [vmem:[%s7424_s1 + $0x30] sm:$0xff] }
 0x64f   : > { %3604 = vmatpush.bf16.msra.mxu3 %v5983_v10  ;;  %v6674_v10 = vld [vmem:[%s7414_s22 + $0x94] sm:$0xf]  ;;  %3628 = vmatpush.bf16.msrb.mxu0 %v5987_v1 }
 0x650   : > { %v2979_v43 = vsel %vm566_vm1, %v2967_v20, 0.0  ;;  %v6710_v56 = vld [vmem:[%s7424_s1 + $0xb0] sm:$0xff] }
 0x651   : > { %2980 = vadd.xlane.f32.xlu1 %v2979_v43  ;;  %v2941_v9 = vpop.xlane.xlu2 %2940 }
 0x652   : > { %v2956_v11 = vmul.f32 %v8824_v19, %v2941_v9 }
 0x654   : > { %v8853_v27 = vsub.f32 %v2923_v34, %v2956_v11  ;;  %v6665_v34 = vld [vmem:[%s7414_s22 + $0x44] sm:$0xf0] }
 0x655   : > { %v5915_v60 = vor.u32 %v6665_v34, %v5914_v28  ;;  %v5991_v28 = vor.u32 %v6674_v10, %v5988_v35  ;;  %v5923_v34 = vor.u32 %v6666_v48, %v5922_v33  ;;  %v6668_v10 = vld [vmem:[%s7414_s22 + $0x5c] sm:$0xf0]  ;;  %v5940_v35 = vld [vmem:[%s7414_s22 + $0x60] sm:$0xf0]  ;;  %v5946_v33 = vld [vmem:[%s7414_s22 + $0x28] sm:$0xf] }
 0x656   : > { %v2968_v14 = vmul.f32 %v8853_v27, %v8853_v27  ;;  %v6669_v48 = vld [vmem:[%s7414_s22 + $0x64] sm:$0xf0] }
 0x657   : > { %3581 = vmatpush.bf16.msra.mxu2 %v5915_v60  ;;  %3652 = vmatpush.bf16.msrb.mxu1 %v5991_v28 }
 0x658   : > { %v2982_v23 = vsel %vm566_vm1, %v2968_v14, 0.0  ;;  %3629 = vmatpush.bf16.msrb.mxu0 %v5923_v34  ;;  %v5947_v34 = vor.u32 %v6669_v48, %v5946_v33 }
 0x659   : > { %v2944_v51 = vpop.xlane.xlu0 %2943  ;;  %2983 = vadd.xlane.f32.xlu2 %v2982_v23 }
 0x65a   : > { %v2957_v32 = vmul.f32 %v8824_v19, %v2944_v51 }
 0x65b   : > { %3676 = vmatpush.bf16.msrb.mxu2 %v5995_v16  ;;  %v6012_v16 = vld [vmem:[%s7414_s22 + $0xe8] sm:$0xf0] }
 0x65c   : > { %v8859_v61 = vsub.f32 %v2925_v42, %v2957_v32  ;;  %v5919_v42 = vor.u32 %v6657_v5, %v5916_v63  ;;  %v5930_v5 = vld [vmem:[%s7414_s22 + $0x18] sm:$0xf] }
 0x65d   : > { %v6667_v63 = vld [vmem:[%s7414_s22 + $0x54] sm:$0xf0] }
 0x65e   : > { %v2969_v7 = vmul.f32 %v8859_v61, %v8859_v61  ;;  %3605 = vmatpush.bf16.msra.mxu3 %v5919_v42 }
 0x660   : > { %v2985_v30 = vsel %vm566_vm1, %v2969_v7, 0.0 }
 0x661   : > { %2986 = vadd.xlane.f32.xlu0 %v2985_v30 }
 0x662   : > { %3700 = vmatpush.bf16.msrb.mxu3 %v5999_v40  ;;  %v5939_v40 = vor.u32 %v6668_v10, %v5938_v18 }
 0x689   : > { %v2972_v38 = vpop.xlane.xlu1 %2971 }
 0x68a   : > { %v2988_v44 = vmul.f32 %v2972_v38, %v8824_v19  ;;  %v6658_v38 = vld [vmem:[%s7414_s22 + $0x14] sm:$0xf] }
 0x68b   : > { %v5927_v42 = vor.u32 %v6658_v38, %v5924_v31  ;;  %v6661_v38 = vld [vmem:[%s7414_s22 + $0x2c] sm:$0xf] }
 0x68c   : > { %v2994_v62 = vadd.f32 1e-05, %v2988_v44  ;;  %v6659_v44 = vld [vmem:[%s7414_s22 + $0x1c] sm:$0xf]  ;;  %v5948_v31 = vld [vmem:[%s7414_s22 + $0x68] sm:$0xf0] }
 0x68d   : > { %3653 = vmatpush.bf16.msrb.mxu1 %v5927_v42 }
 0x68e   : > { %7150 = vrsqrt.f32 %v2994_v62  ;;  %vm3006_vm12 = vweird.f32 %v2994_v62 }
 0x691   : > { %v2975_v37 = vpop.xlane.xlu2 %2974 }
 0x692   : > { %v2989_v22 = vmul.f32 %v2975_v37, %v8824_v19  ;;  %v5932_v37 = vld [vmem:[%s7414_s22 + $0x58] sm:$0xf0] }
 0x694   : > { %v7151_v24 = vpop.eup %7150  ;;  %v2995_v26 = vadd.f32 1e-05, %v2989_v22 }
 0x695   : > { %v3001_v55 = vmul.f32 %v7151_v24, %v2994_v62  ;;  %vm3007_vm11 = vweird.f32 %v7151_v24  ;;  %v5931_v62 = vor.u32 %v6667_v63, %v5930_v5  ;;  %v6026_v5 = vld [vmem:[%s7414_s22 + $0xb8] sm:$0xf] }
 0x696   : > { %7152 = vrsqrt.f32 %v2995_v26  ;;  %vm3008_vm14 = vmor %vm3006_vm12, %vm3007_vm11  ;;  %vm3016_vm15 = vweird.f32 %v2995_v26  ;;  %v6687_v63 = vld [vmem:[%s7414_s22 + $0xf4] sm:$0xf0] }
 0x697   : > { %v3002_v3 = vmul.f32 %v7151_v24, %v3001_v55  ;;  %v5935_v55 = vor.u32 %v6659_v44, %v5932_v37  ;;  %3677 = vmatpush.bf16.msrb.mxu2 %v5931_v62  ;;  %v6018_v44 = vld [vmem:[%s7414_s22 + $0xb0] sm:$0xf]  ;;  %v6027_v42 = vor.u32 %v6687_v63, %v6026_v5  ;;  %v6679_v37 = vld [vmem:[%s7414_s22 + $0xbc] sm:$0xf] }
 0x698   : > { %v6686_v62 = vld [vmem:[%s7414_s22 + $0xec] sm:$0xf0] }
 0x699   : > { %v3003_v8 = vmul.f32 0.5, %v3002_v3  ;;  %3701 = vmatpush.bf16.msrb.mxu3 %v5935_v55  ;;  %v6678_v55 = vld [vmem:[%s7414_s22 + $0xb4] sm:$0xf] }
 0x69b   : > { %v3004_v13 = vsub.f32 1.5, %v3003_v8 }
 0x69c   : > { %v7153_v59 = vpop.eup %7152 }
 0x69d   : > { %v3011_v41 = vmul.f32 %v7153_v59, %v2995_v26  ;;  %v3005_v50 = vmul.f32 %v7151_v24, %v3004_v13  ;;  %vm3017_vm13 = vweird.f32 %v7153_v59 }
 0x69e   : > { %vm3018_vm0 = vmor %vm3016_vm15, %vm3017_vm13 }
 0x69f   : > { %v3012_v17 = vmul.f32 %v7153_v59, %v3011_v41  ;;  %v3009_v52 = vsel %vm3008_vm14, %v7151_v24, %v3005_v50 }
 0x6a0   : > { %v8883_v58 = vmul.f32 %v3009_v52, %v8828_v39 }
 0x6a1   : > { %v3013_v6 = vmul.f32 0.5, %v3012_v17 }
 0x6a3   : > { %v3014_v21 = vsub.f32 1.5, %v3013_v6 }
 0x6a5   : > { %v3015_v25 = vmul.f32 %v7153_v59, %v3014_v21 }
 0x6a7   : > { %v3019_v4 = vsel %vm3018_vm0, %v7153_v59, %v3015_v25 }
 0x6a8   : > { %v8886_v15 = vmul.f32 %v3019_v4, %v8835_v57 }
 0x6aa   : > { %v8890_v2 = vpack.c.bf16 %v8886_v15, %v8883_v58 }
 0x6ac   : > { %6032 = vmatmul.msk.bf16.vlgmr.msra.gmra.mxu0 %vm566_vm1, %v8890_v2  ;;  %6035 = vmatmul.msk.bf16.vlgmr.msra.gmra.mxu1 %vm566_vm1, %v8890_v2 }
 0x6ad   : > { %6038 = vmatmul.msk.bf16.vlgmr.msra.gmra.mxu2 %vm566_vm1, %v8890_v2  ;;  %6041 = vmatmul.msk.bf16.vlgmr.msra.gmra.mxu3 %vm566_vm1, %v8890_v2 }
 0x6ae   : > { %3724 = vmatpush.bf16.msra.mxu0 %v6003_v54  ;;  %v6718_v54 = vld [vmem:[%s7424_s1 + $0xf0] sm:$0xff] }
 0x6b2   : > { %3725 = vmatpush.bf16.msra.mxu0 %v5939_v40  ;;  %v6700_v40 = vld [vmem:[%s7424_s1 + $0x60] sm:$0xff] }
 0x6bc   : > { %v2978_v39 = vpop.xlane.xlu0 %2977 }
 0x6bd   : > { %v2990_v57 = vmul.f32 %v2978_v39, %v8824_v19 }
 0x6bf   : > { %v2996_v20 = vadd.f32 1e-05, %v2990_v57 }
 0x6c1   : > { %7154 = vrsqrt.f32 %v2996_v20  ;;  %vm3026_vm3 = vweird.f32 %v2996_v20 }
 0x6c4   : > { %v2981_v43 = vpop.xlane.xlu1 %2980 }
 0x6c5   : > { %v2991_v9 = vmul.f32 %v2981_v43, %v8824_v19 }
 0x6c7   : > { %v8902_v11 = vpop.eup %7154  ;;  %v2997_v14 = vadd.f32 1e-05, %v2991_v9 }
 0x6c8   : > { %v3021_v23 = vmul.f32 %v8902_v11, %v2996_v20  ;;  %vm3027_vm2 = vweird.f32 %v8902_v11 }
 0x6c9   : > { %7156 = vrsqrt.f32 %v2997_v14  ;;  %vm3028_vm5 = vmor %vm3026_vm3, %vm3027_vm2  ;;  %vm3036_vm6 = vweird.f32 %v2997_v14 }
 0x6ca   : > { %v3022_v51 = vmul.f32 %v8902_v11, %v3021_v23 }
 0x6cc   : > { %v3023_v32 = vmul.f32 0.5, %v3022_v51  ;;  %v2984_v7 = vpop.xlane.xlu2 %2983 }
 0x6cd   : > { %v2992_v30 = vmul.f32 %v2984_v7, %v8824_v19 }
 0x6ce   : > { %v3024_v53 = vsub.f32 1.5, %v3023_v32 }
 0x6cf   : > { %v7157_v36 = vpop.eup %7156  ;;  %v8912_v0 = vadd.f32 1e-05, %v2992_v30 }
 0x6d0   : > { %v3031_v46 = vmul.f32 %v7157_v36, %v2997_v14  ;;  %v3025_v22 = vmul.f32 %v8902_v11, %v3024_v53  ;;  %vm3037_vm4 = vweird.f32 %v7157_v36  ;;  %v6677_v53 = vld [vmem:[%s7414_s22 + $0xac] sm:$0xf] }
 0x6d1   : > { %7158 = vrsqrt.f32 %v8912_v0  ;;  %vm3038_vm7 = vmor %vm3036_vm6, %vm3037_vm4  ;;  %vm3046_vm9 = vweird.f32 %v8912_v0  ;;  %v6015_v47 = vor.u32 %v6677_v53, %v6012_v16 }
 0x6d2   : > { %v3032_v60 = vmul.f32 %v7157_v36, %v3031_v46  ;;  %v3029_v41 = vsel %vm3028_vm5, %v8902_v11, %v3025_v22  ;;  %v6660_v46 = vld [vmem:[%s7414_s22 + $0x24] sm:$0xf]  ;;  %v6028_v22 = vld [vmem:[%s7414_s22 + $0xf8] sm:$0xf0] }
 0x6d3   : > { %v8932_v52 = vmul.f32 %v3029_v41, %v8841_v45  ;;  %3796 = vmatpush.bf16.msra.mxu3 %v6015_v47  ;;  %v5943_v28 = vor.u32 %v6660_v46, %v5940_v35  ;;  %v6662_v41 = vld [vmem:[%s7414_s22 + $0x34] sm:$0xf]  ;;  %v6693_v47 = vld [vmem:[%s7424_s1 + $0x28] sm:$0xff]  ;;  %v6692_v46 = vld [vmem:[%s7424_s1 + $0x20] sm:$0xff] }
 0x6d4   : > { %v3033_v24 = vmul.f32 0.5, %v3032_v60  ;;  %v2987_v26 = vpop.xlane.xlu0 %2986  ;;  %v5951_v60 = vor.u32 %v6661_v38, %v5948_v31  ;;  %v6708_v35 = vld [vmem:[%s7424_s1 + $0xa0] sm:$0xff]  ;;  %v6699_v38 = vld [vmem:[%s7424_s1 + $0x58] sm:$0xff] }
 0x6d5   : > { %v2993_v3 = vmul.f32 %v2987_v26, %v8824_v19  ;;  %v6031_v26 = vor.u32 %v6679_v37, %v6028_v22  ;;  %v6707_v31 = vld [vmem:[%s7424_s1 + $0x98] sm:$0xff] }
 0x6d6   : > { %v3034_v8 = vsub.f32 1.5, %v3033_v24  ;;  %v6019_v24 = vor.u32 %v6686_v62, %v6018_v44  ;;  %v6690_v44 = vld [vmem:[%s7424_s1 + $0x10] sm:$0xff] }
 0x6d7   : > { %v7159_v59 = vpop.eup %7158  ;;  %v2999_v13 = vadd.f32 1e-05, %v2993_v3  ;;  %3797 = vmatpush.bf16.msra.mxu3 %v5951_v60  ;;  %v6020_v3 = vld [vmem:[%s7414_s22 + $0xf0] sm:$0xf0]  ;;  %v6715_v60 = vld [vmem:[%s7424_s1 + $0xd8] sm:$0xff] }
 0x6d8   : > { %v3035_v17 = vmul.f32 %v7157_v36, %v3034_v8  ;;  %v3041_v50 = vmul.f32 %v7159_v59, %v8912_v0  ;;  %vm3047_vm8 = vweird.f32 %v7159_v59  ;;  %v6004_v0 = vld [vmem:[%s7414_s22 + $0xe0] sm:$0xf0]  ;;  %v6023_v8 = vor.u32 %v6678_v55, %v6020_v3  ;;  %v6706_v62 = vld [vmem:[%s7424_s1 + $0x90] sm:$0xff]  ;;  %v6705_v55 = vld [vmem:[%s7424_s1 + $0x88] sm:$0xff] }
 0x6d9   : > { %7160 = vrsqrt.f32 %v2999_v13  ;;  %vm3048_vm11 = vmor %vm3046_vm9, %vm3047_vm8  ;;  %vm3056_vm12 = vweird.f32 %v2999_v13  ;;  %v6713_v3 = vld [vmem:[%s7424_s1 + $0xc8] sm:$0xff] }
 0x6da   : > { %v3039_v6 = vsel %vm3038_vm7, %v7157_v36, %v3035_v17  ;;  %v3042_v21 = vmul.f32 %v7159_v59, %v3041_v50  ;;  %v6676_v36 = vld [vmem:[%s7414_s22 + $0xa4] sm:$0xf]  ;;  %v5956_v50 = vld [vmem:[%s7414_s22 + $0x70] sm:$0xf0] }
 0x6db   : > { %v8935_v25 = vmul.f32 %v3039_v6, %v8847_v49  ;;  %v6007_v1 = vor.u32 %v6676_v36, %v6004_v0  ;;  %v5962_v6 = vld [vmem:[%s7414_s22 + $0x38] sm:$0xf]  ;;  %v6701_v36 = vld [vmem:[%s7424_s1 + $0x68] sm:$0xff] }
 0x6dc   : > { %v3043_v4 = vmul.f32 0.5, %v3042_v21  ;;  %v6671_v21 = vld [vmem:[%s7414_s22 + $0x74] sm:$0xf0]  ;;  %v6709_v0 = vld [vmem:[%s7424_s1 + $0xa8] sm:$0xff] }
 0x6dd   : > { %v8939_v39 = vpack.c.bf16 %v8935_v25, %v8932_v52  ;;  %3748 = vmatpush.bf16.msra.mxu1 %v6007_v1  ;;  %v6717_v1 = vld [vmem:[%s7424_s1 + $0xe8] sm:$0xff] }
 0x6de   : > { %v3044_v20 = vsub.f32 1.5, %v3043_v4  ;;  %v5959_v4 = vor.u32 %v6662_v41, %v5956_v50  ;;  %v6696_v41 = vld [vmem:[%s7424_s1 + $0x40] sm:$0xff] }
 0x6df   : > { %v7161_v57 = vpop.eup %7160  ;;  %6033 = vmatmul.msk.bf16.gmra.mxu0 %vm566_vm1, %v8939_v39  ;;  %6036 = vmatmul.msk.bf16.gmra.mxu1 %vm566_vm1, %v8939_v39 }
 0x6e0   : > { %v3051_v43 = vmul.f32 %v7161_v57, %v2999_v13  ;;  %6039 = vmatmul.msk.bf16.gmra.mxu2 %vm566_vm1, %v8939_v39  ;;  %6042 = vmatmul.msk.bf16.gmra.mxu3 %vm566_vm1, %v8939_v39  ;;  %v3045_v49 = vmul.f32 %v7159_v59, %v3044_v20  ;;  %vm3057_vm10 = vweird.f32 %v7161_v57  ;;  %v6670_v13 = vld [vmem:[%s7414_s22 + $0x6c] sm:$0xf0]  ;;  %v6663_v20 = vld [vmem:[%s7414_s22 + $0x3c] sm:$0xf] }
 0x6e1   : > { %vm3058_vm13 = vmor %vm3056_vm12, %vm3057_vm10  ;;  %3749 = vmatpush.bf16.msra.mxu1 %v5943_v28  ;;  %v6716_v28 = vld [vmem:[%s7424_s1 + $0xe0] sm:$0xff] }
 0x6e2   : > { %v3052_v45 = vmul.f32 %v7161_v57, %v3051_v43  ;;  %v3049_v14 = vsel %vm3048_vm11, %v7159_v59, %v3045_v49  ;;  %v5954_v59 = vld [vmem:[%s7414_s22 + $0x30] sm:$0xf]  ;;  %v5964_v43 = vld [vmem:[%s7414_s22 + $0x78] sm:$0xf0] }
 0x6e3   : > { %v8951_v32 = vmul.f32 %v3049_v14, %v8853_v27  ;;  %v6010_v27 = vld [vmem:[%s7414_s22 + $0xa8] sm:$0xf]  ;;  %v5955_v17 = vor.u32 %v6670_v13, %v5954_v59  ;;  %v6703_v14 = vld [vmem:[%s7424_s1 + $0x78] sm:$0xff]  ;;  %v6688_v13 = vld [vmem:[%s7424_s1] sm:$0xff] }
 0x6e4   : > { %v3053_v9 = vmul.f32 0.5, %v3052_v45  ;;  %v5967_v45 = vor.u32 %v6663_v20, %v5964_v43 }
 0x6e6   : > { %v3054_v11 = vsub.f32 1.5, %v3053_v9 }
 0x6e8   : > { %v3055_v23 = vmul.f32 %v7161_v57, %v3054_v11  ;;  %v6695_v11 = vld [vmem:[%s7424_s1 + $0x38] sm:$0xff] }
 0x6ea   : > { %v3059_v51 = vsel %vm3058_vm13, %v7161_v57, %v3055_v23  ;;  %v5963_v57 = vor.u32 %v6671_v21, %v5962_v6  ;;  %v6711_v23 = vld [vmem:[%s7424_s1 + $0xb8] sm:$0xff]  ;;  %v6712_v21 = vld [vmem:[%s7424_s1 + $0xc0] sm:$0xff] }
 0x6eb   : > { %v8954_v7 = vmul.f32 %v3059_v51, %v8859_v61  ;;  %v6685_v61 = vld [vmem:[%s7414_s22 + $0xe4] sm:$0xf0]  ;;  %v6719_v51 = vld [vmem:[%s7424_s1 + $0xf8] sm:$0xff]  ;;  %s7200_s22 = scalar_lea.hbm %s9641_s7, 4608 }
 0x6ec   : > { %v6011_v29 = vor.u32 %v6685_v61, %v6010_v27 }
 0x6ed   : > { %v8958_v30 = vpack.c.bf16 %v8954_v7, %v8951_v32 }
 0x6ee   : > { %3772 = vmatpush.bf16.msra.mxu2 %v6011_v29  ;;  %v6702_v29 = vld [vmem:[%s7424_s1 + $0x70] sm:$0xff] }
 0x6ef   : > { %6034 = vmatmul.msk.bf16.gmra.mxu0 %vm566_vm1, %v8958_v30  ;;  %6037 = vmatmul.msk.bf16.gmra.mxu1 %vm566_vm1, %v8958_v30 }
 0x6f0   : > { %6040 = vmatmul.msk.bf16.gmra.mxu2 %vm566_vm1, %v8958_v30  ;;  %6043 = vmatmul.msk.bf16.gmra.mxu3 %vm566_vm1, %v8958_v30 }
 0x6f2   : > { %3773 = vmatpush.bf16.msra.mxu2 %v5947_v34  ;;  %v6691_v34 = vld [vmem:[%s7424_s1 + $0x18] sm:$0xff] }
 0x6ff   : > { %6044 = vmatmul.msk.bf16.vlgmr.msrb.gmra.mxu0 %vm566_vm1, %v8890_v2  ;;  %6047 = vmatmul.msk.bf16.vlgmr.msrb.gmra.mxu1 %vm566_vm1, %v8890_v2 }
 0x700   : > { %6050 = vmatmul.msk.bf16.vlgmr.msrb.gmra.mxu2 %vm566_vm1, %v8890_v2  ;;  %6053 = vmatmul.msk.bf16.vlgmr.msrb.gmra.mxu3 %vm566_vm1, %v8890_v2 }
 0x701   : > { %3868 = vmatpush.bf16.msrb.mxu2 %v6027_v42  ;;  %3820 = vmatpush.bf16.msrb.mxu0 %v6019_v24  ;;  %v6698_v42 = vld [vmem:[%s7424_s1 + $0x50] sm:$0xff]  ;;  %v6689_v24 = vld [vmem:[%s7424_s1 + $0x8] sm:$0xff] }
 0x702   : > { %3892 = vmatpush.bf16.msrb.mxu3 %v6031_v26  ;;  %3844 = vmatpush.bf16.msrb.mxu1 %v6023_v8  ;;  %v6697_v26 = vld [vmem:[%s7424_s1 + $0x48] sm:$0xff] }
 0x705   : > { %3821 = vmatpush.bf16.msrb.mxu0 %v5955_v17  ;;  %3869 = vmatpush.bf16.msrb.mxu2 %v5963_v57  ;;  %v6704_v17 = vld [vmem:[%s7424_s1 + $0x80] sm:$0xff] }
 0x706   : > { %3845 = vmatpush.bf16.msrb.mxu1 %v5959_v4  ;;  %3893 = vmatpush.bf16.msrb.mxu3 %v5967_v45 }
 0x70f   : > { %6045 = vmatmul.msk.bf16.gmra.mxu0 %vm566_vm1, %v8939_v39  ;;  %6048 = vmatmul.msk.bf16.gmra.mxu1 %vm566_vm1, %v8939_v39 }
 0x710   : > { %6051 = vmatmul.msk.bf16.gmra.mxu2 %vm566_vm1, %v8939_v39  ;;  %6054 = vmatmul.msk.bf16.gmra.mxu3 %vm566_vm1, %v8939_v39 }
 0x71f   : > { %6046 = vmatmul.msk.bf16.gmra.mxu0 %vm566_vm1, %v8958_v30  ;;  %6049 = vmatmul.msk.bf16.gmra.mxu1 %vm566_vm1, %v8958_v30 }
 0x720   : > { %6052 = vmatmul.msk.bf16.gmra.mxu2 %vm566_vm1, %v8958_v30  ;;  %6055 = vmatmul.msk.bf16.gmra.mxu3 %vm566_vm1, %v8958_v30 }
 0x729   : > { %v9040_v49 = vpop.f32.mrf.mxu0  ;;  %v9042_v9 = vpop.f32.mrf.mxu1 }
 0x72f   : > { %6056 = vmatmul.msk.bf16.vlgmr.msra.gmra.mxu0 %vm566_vm1, %v8890_v2  ;;  %6059 = vmatmul.msk.bf16.vlgmr.msra.gmra.mxu1 %vm566_vm1, %v8890_v2 }
 0x730   : > { %6062 = vmatmul.msk.bf16.vlgmr.msra.gmra.mxu2 %vm566_vm1, %v8890_v2  ;;  %6065 = vmatmul.msk.bf16.vlgmr.msra.gmra.mxu3 %vm566_vm1, %v8890_v2  ;;  %v9056_v27 = vpop.f32.mrf.mxu2  ;;  %v9058_v61 = vpop.f32.mrf.mxu3 }
 0x731   : > { %4822 = vmatpush.bf16.msra.mxu0 %v6695_v11  ;;  %4846 = vmatpush.bf16.msra.mxu1 %v6703_v14  ;;  %v9063_v53 = vpop.f32.mrf.mxu0  ;;  %v9065_v16 = vpop.f32.mrf.mxu1 }
 0x732   : > { %4870 = vmatpush.bf16.msra.mxu2 %v6711_v23  ;;  %4894 = vmatpush.bf16.msra.mxu3 %v6719_v51  ;;  %v6735_v51 = vld [vmem:[%s7424_s1 + $0x178] sm:$0xff] }
 0x735   : > { %4823 = vmatpush.bf16.msra.mxu0 %v6694_v12  ;;  %4847 = vmatpush.bf16.msra.mxu1 %v6702_v29  ;;  %v6743_v12 = vld [vmem:[%s7424_s1 + $0x1b8] sm:$0xff] }
 0x736   : > { %4871 = vmatpush.bf16.msra.mxu2 %v6710_v56  ;;  %4895 = vmatpush.bf16.msra.mxu3 %v6718_v54  ;;  %v6751_v29 = vld [vmem:[%s7424_s1 + $0x1f8] sm:$0xff] }
 0x738   : > { %v9072_v18 = vpop.f32.mrf.mxu2  ;;  %v9074_v10 = vpop.f32.mrf.mxu3 }
 0x739   : > { %4824 = vmatpush.bf16.msra.mxu0 %v6693_v47  ;;  %4848 = vmatpush.bf16.msra.mxu1 %v6701_v36  ;;  %v6726_v47 = vld [vmem:[%s7424_s1 + $0x130] sm:$0xff] }
 0x73a   : > { %4872 = vmatpush.bf16.msra.mxu2 %v6709_v0  ;;  %4896 = vmatpush.bf16.msra.mxu3 %v6717_v1  ;;  %v6734_v36 = vld [vmem:[%s7424_s1 + $0x170] sm:$0xff] }
 0x73b   : > { %v6742_v0 = vld [vmem:[%s7424_s1 + $0x1b0] sm:$0xff] }
 0x73d   : > { %4825 = vmatpush.bf16.msra.mxu0 %v6692_v46  ;;  %4849 = vmatpush.bf16.msra.mxu1 %v6700_v40  ;;  %v6725_v40 = vld [vmem:[%s7424_s1 + $0x128] sm:$0xff] }
 0x73e   : > { %4873 = vmatpush.bf16.msra.mxu2 %v6708_v35  ;;  %4897 = vmatpush.bf16.msra.mxu3 %v6716_v28  ;;  %v6733_v35 = vld [vmem:[%s7424_s1 + $0x168] sm:$0xff] }
 0x73f   : > { %6057 = vmatmul.msk.bf16.gmra.mxu0 %vm566_vm1, %v8939_v39  ;;  %6060 = vmatmul.msk.bf16.gmra.mxu1 %vm566_vm1, %v8939_v39  ;;  %v6741_v28 = vld [vmem:[%s7424_s1 + $0x1a8] sm:$0xff] }
 0x740   : > { %6063 = vmatmul.msk.bf16.gmra.mxu2 %vm566_vm1, %v8939_v39  ;;  %6066 = vmatmul.msk.bf16.gmra.mxu3 %vm566_vm1, %v8939_v39 }
 0x741   : > { %4826 = vmatpush.bf16.msra.mxu0 %v6691_v34  ;;  %4850 = vmatpush.bf16.msra.mxu1 %v6699_v38  ;;  %v6749_v34 = vld [vmem:[%s7424_s1 + $0x1e8] sm:$0xff]  ;;  %v3926_v38 = vmax.f32 %v9063_v53, 0.0  ;;  %v6724_v53 = vld [vmem:[%s7424_s1 + $0x120] sm:$0xff] }
 0x742   : > { %4874 = vmatpush.bf16.msra.mxu2 %v6707_v31  ;;  %4898 = vmatpush.bf16.msra.mxu3 %v6715_v60  ;;  %v3927_v31 = vmax.f32 %v9065_v16, 0.0  ;;  %v3928_v60 = vmax.f32 %v9072_v18, 0.0  ;;  %v6740_v16 = vld [vmem:[%s7424_s1 + $0x1a0] sm:$0xff]  ;;  %v3913_v18 = vmax.f32 %v9058_v61, 0.0  ;;  %v6731_v61 = vld [vmem:[%s7424_s1 + $0x158] sm:$0xff] }
 0x745   : > { %4827 = vmatpush.bf16.msra.mxu0 %v6690_v44  ;;  %4851 = vmatpush.bf16.msra.mxu1 %v6698_v42  ;;  %v3929_v44 = vmax.f32 %v9074_v10, 0.0  ;;  %v3910_v42 = vmax.f32 %v9040_v49, 0.0  ;;  %v6748_v49 = vld [vmem:[%s7424_s1 + $0x1e0] sm:$0xff] }
 0x746   : > { %4875 = vmatpush.bf16.msra.mxu2 %v6706_v62  ;;  %v3911_v62 = vmax.f32 %v9042_v9, 0.0 }
 0x747   : > { %v4006_v9 = vpack.c.bf16 %v3926_v38, %v3910_v42  ;;  %v6745_v38 = vld [vmem:[%s7424_s1 + $0x1c8] sm:$0xff] }
 0x749   : > { %4828 = vmatpush.bf16.msra.mxu0 %v6689_v24  ;;  %4852 = vmatpush.bf16.msra.mxu1 %v6697_v26  ;;  %v6732_v26 = vld [vmem:[%s7424_s1 + $0x160] sm:$0xff] }
 0x74a   : > { %4876 = vmatpush.bf16.msra.mxu2 %v6705_v55  ;;  %v3912_v55 = vmax.f32 %v9056_v27, 0.0  ;;  %v6723_v27 = vld [vmem:[%s7424_s1 + $0x118] sm:$0xff] }
 0x74d   : > { %4829 = vmatpush.bf16.msra.mxu0 %v6688_v13  ;;  %4853 = vmatpush.bf16.msra.mxu1 %v6696_v41  ;;  %v4007_v13 = vpack.c.bf16 %v3927_v31, %v3911_v62  ;;  %v4008_v41 = vpack.c.bf16 %v3928_v60, %v3912_v55  ;;  %v6728_v55 = vld [vmem:[%s7424_s1 + $0x140] sm:$0xff] }
 0x74e   : > { %4877 = vmatpush.bf16.msra.mxu2 %v6704_v17  ;;  %v4009_v17 = vpack.c.bf16 %v3929_v44, %v3913_v18 }
 0x74f   : > { %6058 = vmatmul.msk.bf16.gmra.mxu0 %vm566_vm1, %v8958_v30  ;;  %6061 = vmatmul.msk.bf16.gmra.mxu1 %vm566_vm1, %v8958_v30 }
 0x750   : > { %6064 = vmatmul.msk.bf16.gmra.mxu2 %vm566_vm1, %v8958_v30  ;;  %6067 = vmatmul.msk.bf16.gmra.mxu3 %vm566_vm1, %v8958_v30 }
 0x75c   : > { %v9079_v33 = vpop.f32.mrf.mxu0  ;;  %v9081_v48 = vpop.f32.mrf.mxu1 }
 0x75d   : > { %v3942_v62 = vmax.f32 %v9079_v33, 0.0 }
 0x75f   : > { %6068 = vmatmul.msk.bf16.vlgmr.msrb.gmra.mxu0 %vm566_vm1, %v8890_v2  ;;  %6071 = vmatmul.msk.bf16.vlgmr.msrb.gmra.mxu1 %vm566_vm1, %v8890_v2 }
 0x760   : > { %6074 = vmatmul.msk.bf16.vlgmr.msrb.gmra.mxu2 %vm566_vm1, %v8890_v2  ;;  %6077 = vmatmul.msk.bf16.vlgmr.msrb.gmra.mxu3 %vm566_vm1, %v8890_v2  ;;  %v6714_v2 = vld [vmem:[%s7424_s1 + $0xd0] sm:$0xff] }
 0x761   : > { %4899 = vmatpush.bf16.msra.mxu3 %v6714_v2  ;;  %4942 = vmatpush.bf16.msrb.mxu1 %v6735_v51 }
 0x762   : > { %4966 = vmatpush.bf16.msrb.mxu2 %v6743_v12 }
 0x763   : > { %v9096_v5 = vpop.f32.mrf.mxu2  ;;  %v9098_v63 = vpop.f32.mrf.mxu3 }
 0x764   : > { %v9103_v37 = vpop.f32.mrf.mxu0  ;;  %v9105_v22 = vpop.f32.mrf.mxu1  ;;  %v3944_v18 = vmax.f32 %v9096_v5, 0.0 }
 0x765   : > { %4900 = vmatpush.bf16.msra.mxu3 %v6713_v3  ;;  %4943 = vmatpush.bf16.msrb.mxu1 %v6734_v36  ;;  %v6738_v36 = vld [vmem:[%s7424_s1 + $0x190] sm:$0xff]  ;;  %v3958_v31 = vmax.f32 %v9103_v37, 0.0  ;;  %v3959_v60 = vmax.f32 %v9105_v22, 0.0  ;;  %v6720_v37 = vld [vmem:[%s7424_s1 + $0x100] sm:$0xff] }
 0x766   : > { %4967 = vmatpush.bf16.msrb.mxu2 %v6742_v0  ;;  %v6736_v22 = vld [vmem:[%s7424_s1 + $0x180] sm:$0xff] }
 0x769   : > { %4901 = vmatpush.bf16.msra.mxu3 %v6712_v21  ;;  %4944 = vmatpush.bf16.msrb.mxu1 %v6733_v35  ;;  %v6739_v21 = vld [vmem:[%s7424_s1 + $0x198] sm:$0xff]  ;;  %v6721_v35 = vld [vmem:[%s7424_s1 + $0x108] sm:$0xff] }
 0x76a   : > { %4968 = vmatpush.bf16.msrb.mxu2 %v6741_v28  ;;  %v6729_v28 = vld [vmem:[%s7424_s1 + $0x148] sm:$0xff] }
 0x76b   : > { %v9112_v8 = vpop.f32.mrf.mxu2  ;;  %v9114_v59 = vpop.f32.mrf.mxu3 }
 0x76c   : > { %v9119_v50 = vpop.f32.mrf.mxu0  ;;  %v9121_v6 = vpop.f32.mrf.mxu1  ;;  %v3960_v44 = vmax.f32 %v9112_v8, 0.0  ;;  %v3961_v42 = vmax.f32 %v9114_v59, 0.0 }
 0x76d   : > { %4990 = vmatpush.bf16.msrb.mxu3 %v6751_v29  ;;  %4945 = vmatpush.bf16.msrb.mxu1 %v6732_v26  ;;  %v6722_v29 = vld [vmem:[%s7424_s1 + $0x110] sm:$0xff] }
 0x76e   : > { %4969 = vmatpush.bf16.msrb.mxu2 %v6740_v16 }
 0x76f   : > { %6069 = vmatmul.msk.bf16.gmra.mxu0 %vm566_vm1, %v8939_v39  ;;  %6072 = vmatmul.msk.bf16.gmra.mxu1 %vm566_vm1, %v8939_v39 }
 0x770   : > { %6075 = vmatmul.msk.bf16.gmra.mxu2 %vm566_vm1, %v8939_v39  ;;  %6078 = vmatmul.msk.bf16.gmra.mxu3 %vm566_vm1, %v8939_v39  ;;  %v6727_v39 = vld [vmem:[%s7424_s1 + $0x138] sm:$0xff] }
 0x771   : > { %4918 = vmatpush.bf16.msrb.mxu0 %v6727_v39  ;;  %v6747_v39 = vld [vmem:[%s7424_s1 + $0x1d8] sm:$0xff]  ;;  %4946 = vmatpush.bf16.msrb.mxu1 %v6731_v61 }
 0x772   : > { %4970 = vmatpush.bf16.msrb.mxu2 %v6739_v21 }
 0x773   : > { %v9132_v4 = vpop.f32.mrf.mxu2  ;;  %v9134_v57 = vpop.f32.mrf.mxu3 }
 0x774   : > { %v9136_v20 = vpop.f32.mrf.mxu0  ;;  %v9138_v43 = vpop.f32.mrf.mxu1 }
 0x775   : > { %4919 = vmatpush.bf16.msrb.mxu0 %v6726_v47  ;;  %v6730_v47 = vld [vmem:[%s7424_s1 + $0x150] sm:$0xff]  ;;  %v3990_v61 = vmax.f32 %v9136_v20, 0.0  ;;  %v3991_v21 = vmax.f32 %v9138_v43, 0.0  ;;  %v3976_v20 = vmax.f32 %v9132_v4, 0.0  ;;  %v3977_v43 = vmax.f32 %v9134_v57, 0.0  ;;  %v6783_v4 = vld [vmem:[%s7424_s1 + $0x2f8] sm:$0xff] }
 0x776   : > { %4947 = vmatpush.bf16.msrb.mxu1 %v6730_v47  ;;  %4971 = vmatpush.bf16.msrb.mxu2 %v6738_v36  ;;  %v3974_v47 = vmax.f32 %v9119_v50, 0.0  ;;  %v3975_v36 = vmax.f32 %v9121_v6, 0.0  ;;  %v6759_v6 = vld [vmem:[%s7424_s1 + $0x238] sm:$0xff] }
 0x779   : > { %4920 = vmatpush.bf16.msrb.mxu0 %v6725_v40  ;;  %v6746_v40 = vld [vmem:[%s7424_s1 + $0x1d0] sm:$0xff] }
 0x77a   : > { %4948 = vmatpush.bf16.msrb.mxu1 %v6729_v28 }
 0x77b   : > { %v9140_v45 = vpop.f32.mrf.mxu2  ;;  %v9142_v11 = vpop.f32.mrf.mxu3 }
 0x77c   : > { %v9144_v14 = vpop.f32.mrf.mxu0  ;;  %v9146_v23 = vpop.f32.mrf.mxu1 }
 0x77d   : > { %4921 = vmatpush.bf16.msrb.mxu0 %v6724_v53  ;;  %v3943_v53 = vmax.f32 %v9081_v48, 0.0  ;;  %v4024_v48 = vpack.c.bf16 %v3960_v44, %v3944_v18  ;;  %v6757_v18 = vld [vmem:[%s7424_s1 + $0x228] sm:$0xff] }
 0x77e   : > { %4949 = vmatpush.bf16.msrb.mxu1 %v6728_v55 }
 0x77f   : > { %6070 = vmatmul.msk.bf16.gmra.mxu0 %vm566_vm1, %v8958_v30  ;;  %6073 = vmatmul.msk.bf16.gmra.mxu1 %vm566_vm1, %v8958_v30  ;;  %v4023_v33 = vpack.c.bf16 %v3959_v60, %v3943_v53  ;;  %v6775_v60 = vld [vmem:[%s7424_s1 + $0x2b8] sm:$0xff]  ;;  %v6774_v53 = vld [vmem:[%s7424_s1 + $0x2b0] sm:$0xff] }
 0x780   : > { %6076 = vmatmul.msk.bf16.gmra.mxu2 %vm566_vm1, %v8958_v30  ;;  %6079 = vmatmul.msk.bf16.gmra.mxu3 %vm566_vm1, %v8958_v30  ;;  %v6750_v30 = vld [vmem:[%s7424_s1 + $0x1f0] sm:$0xff] }
 0x781   : > { %4991 = vmatpush.bf16.msrb.mxu3 %v6750_v30  ;;  %4922 = vmatpush.bf16.msrb.mxu0 %v6723_v27 }
 0x783   : > { %v9160_v56 = vpop.f32.mrf.mxu2  ;;  %v9162_v54 = vpop.f32.mrf.mxu3 }
 0x784   : > { %v9167_v1 = vpop.f32.mrf.mxu0  ;;  %v9169_v46 = vpop.f32.mrf.mxu1 }
 0x785   : > { %4992 = vmatpush.bf16.msrb.mxu3 %v6749_v34  ;;  %4923 = vmatpush.bf16.msrb.mxu0 %v6722_v29  ;;  %v6737_v34 = vld [vmem:[%s7424_s1 + $0x188] sm:$0xff]  ;;  %v3993_v29 = vmax.f32 %v9142_v11, 0.0  ;;  %v4038_v11 = vpack.c.bf16 %v3990_v61, %v3974_v47 }
 0x786   : > { %4972 = vmatpush.bf16.msrb.mxu2 %v6737_v34  ;;  %v4039_v34 = vpack.c.bf16 %v3991_v21, %v3975_v36  ;;  %v3914_v21 = vmax.f32 %v9144_v14, 0.0  ;;  %v6764_v36 = vld [vmem:[%s7424_s1 + $0x260] sm:$0xff] }
 0x787   : > { %v4041_v50 = vpack.c.bf16 %v3993_v29, %v3977_v43  ;;  %v6780_v14 = vld [vmem:[%s7424_s1 + $0x2e0] sm:$0xff] }
 0x789   : > { %4993 = vmatpush.bf16.msrb.mxu3 %v6748_v49  ;;  %4924 = vmatpush.bf16.msrb.mxu0 %v6721_v35  ;;  %v3945_v49 = vmax.f32 %v9098_v63, 0.0 }
 0x78a   : > { %4973 = vmatpush.bf16.msrb.mxu2 %v6736_v22  ;;  %v6782_v22 = vld [vmem:[%s7424_s1 + $0x2f0] sm:$0xff] }
 0x78b   : > { %v9182_v2 = vpop.f32.mrf.mxu2  ;;  %v9184_v24 = vpop.f32.mrf.mxu3 }
 0x78c   : > { %v9191_v10 = vpop.f32.mrf.mxu0  ;;  %v9193_v3 = vpop.f32.mrf.mxu1  ;;  %v3933_v61 = vmax.f32 %v9184_v24, 0.0 }
 0x78d   : > { %4994 = vmatpush.bf16.msrb.mxu3 %v6747_v39  ;;  %4925 = vmatpush.bf16.msrb.mxu0 %v6720_v37  ;;  %v3992_v39 = vmax.f32 %v9140_v45, 0.0 }
 0x78f   : > { %4830 = vmatmul.bf16.vlgmr.msra.gmra.mxu0 %v4006_v9  ;;  %4854 = vmatmul.bf16.vlgmr.msra.gmra.mxu1 %v4007_v13  ;;  %v6744_v9 = vld [vmem:[%s7424_s1 + $0x1c0] sm:$0xff]  ;;  %v4022_v13 = vpack.c.bf16 %v3958_v31, %v3942_v62  ;;  %v6767_v31 = vld [vmem:[%s7424_s1 + $0x278] sm:$0xff]  ;;  %v6766_v62 = vld [vmem:[%s7424_s1 + $0x270] sm:$0xff] }
 0x790   : > { %4878 = vmatmul.bf16.vlgmr.msra.gmra.mxu2 %v4008_v41  ;;  %4902 = vmatmul.bf16.vlgmr.msra.gmra.mxu3 %v4009_v17  ;;  %v4025_v41 = vpack.c.bf16 %v3961_v42, %v3945_v49  ;;  %v6758_v42 = vld [vmem:[%s7424_s1 + $0x230] sm:$0xff]  ;;  %v6765_v49 = vld [vmem:[%s7424_s1 + $0x268] sm:$0xff] }
 0x791   : > { %4995 = vmatpush.bf16.msrb.mxu3 %v6746_v40  ;;  %5014 = vmatpush.bf16.msra.mxu0 %v6759_v6  ;;  %v6779_v6 = vld [vmem:[%s7424_s1 + $0x2d8] sm:$0xff] }
 0x792   : > { %5038 = vmatpush.bf16.msra.mxu1 %v6767_v31  ;;  %5062 = vmatpush.bf16.msra.mxu2 %v6775_v60 }
 0x793   : > { %v9200_v51 = vpop.f32.mrf.mxu2  ;;  %v9202_v12 = vpop.f32.mrf.mxu3 }
 0x794   : > { %v9207_v0 = vpop.f32.mrf.mxu0  ;;  %v9209_v30 = vpop.f32.mrf.mxu1 }
 0x795   : > { %4996 = vmatpush.bf16.msrb.mxu3 %v6745_v38  ;;  %v4040_v38 = vpack.c.bf16 %v3992_v39, %v3976_v20  ;;  %5015 = vmatpush.bf16.msra.mxu0 %v6758_v42  ;;  %v3915_v39 = vmax.f32 %v9146_v23, 0.0  ;;  %v3916_v20 = vmax.f32 %v9160_v56, 0.0  ;;  %v6755_v56 = vld [vmem:[%s7424_s1 + $0x218] sm:$0xff]  ;;  %v6762_v42 = vld [vmem:[%s7424_s1 + $0x250] sm:$0xff] }
 0x796   : > { %5039 = vmatpush.bf16.msra.mxu1 %v6766_v62  ;;  %5063 = vmatpush.bf16.msra.mxu2 %v6774_v53  ;;  %v6770_v62 = vld [vmem:[%s7424_s1 + $0x290] sm:$0xff] }
 0x799   : > { %4997 = vmatpush.bf16.msrb.mxu3 %v6744_v9  ;;  %v6773_v9 = vld [vmem:[%s7424_s1 + $0x2a8] sm:$0xff]  ;;  %5016 = vmatpush.bf16.msra.mxu0 %v6757_v18  ;;  %v6778_v18 = vld [vmem:[%s7424_s1 + $0x2d0] sm:$0xff] }
 0x79a   : > { %5040 = vmatpush.bf16.msra.mxu1 %v6765_v49  ;;  %5064 = vmatpush.bf16.msra.mxu2 %v6773_v9  ;;  %v6753_v49 = vld [vmem:[%s7424_s1 + $0x208] sm:$0xff] }
 0x79b   : > { %v9222_v26 = vpop.f32.mrf.mxu2  ;;  %v9224_v16 = vpop.f32.mrf.mxu3  ;;  %v6761_v9 = vld [vmem:[%s7424_s1 + $0x248] sm:$0xff] }
 0x79c   : > { %v9231_v8 = vpop.f32.mrf.mxu0  ;;  %v9233_v59 = vpop.f32.mrf.mxu1 }
 0x79d   : > { %5086 = vmatpush.bf16.msra.mxu3 %v6783_v4  ;;  %v6754_v4 = vld [vmem:[%s7424_s1 + $0x210] sm:$0xff] }
 0x79e   : > { %5041 = vmatpush.bf16.msra.mxu1 %v6764_v36 }
 0x79f   : > { %4835 = vmatmul.bf16.gmra.mxu0 %v4022_v13  ;;  %4859 = vmatmul.bf16.gmra.mxu1 %v4023_v33  ;;  %v6781_v13 = vld [vmem:[%s7424_s1 + $0x2e8] sm:$0xff]  ;;  %v3930_v33 = vmax.f32 %v9167_v1, 0.0  ;;  %v6756_v1 = vld [vmem:[%s7424_s1 + $0x220] sm:$0xff] }
 0x7a0   : > { %4883 = vmatmul.bf16.gmra.mxu2 %v4024_v48  ;;  %4907 = vmatmul.bf16.gmra.mxu3 %v4025_v41  ;;  %v3931_v48 = vmax.f32 %v9169_v46, 0.0  ;;  %v3932_v41 = vmax.f32 %v9182_v2, 0.0  ;;  %v6772_v46 = vld [vmem:[%s7424_s1 + $0x2a0] sm:$0xff]  ;;  %v3917_v2 = vmax.f32 %v9162_v54, 0.0  ;;  %v6763_v54 = vld [vmem:[%s7424_s1 + $0x258] sm:$0xff] }
 0x7a1   : > { %5087 = vmatpush.bf16.msra.mxu3 %v6782_v22  ;;  %v4010_v23 = vpack.c.bf16 %v3930_v33, %v3914_v21  ;;  %5017 = vmatpush.bf16.msra.mxu0 %v6756_v1  ;;  %v6777_v33 = vld [vmem:[%s7424_s1 + $0x2c8] sm:$0xff]  ;;  %v3965_v21 = vmax.f32 %v9224_v16, 0.0  ;;  %v3947_v1 = vmax.f32 %v9193_v3, 0.0 }
 0x7a2   : > { %5065 = vmatpush.bf16.msra.mxu2 %v6772_v46  ;;  %5042 = vmatpush.bf16.msra.mxu1 %v6763_v54 }
 0x7a3   : > { %v9236_v5 = vpop.f32.mrf.mxu2  ;;  %v9238_v63 = vpop.f32.mrf.mxu3 }
 0x7a4   : > { %v9240_v17 = vpop.f32.mrf.mxu0  ;;  %v9242_v27 = vpop.f32.mrf.mxu1 }
 0x7a5   : > { %5088 = vmatpush.bf16.msra.mxu3 %v6781_v13  ;;  %5018 = vmatpush.bf16.msra.mxu0 %v6755_v56  ;;  %v6769_v13 = vld [vmem:[%s7424_s1 + $0x288] sm:$0xff]  ;;  %v3994_v54 = vmax.f32 %v9240_v17, 0.0  ;;  %v3980_v17 = vmax.f32 %v9236_v5, 0.0  ;;  %v6815_v5 = vld [vmem:[%s7424_s1 + $0x3f8] sm:$0xff] }
 0x7a6   : > { %5043 = vmatpush.bf16.msra.mxu1 %v6762_v42  ;;  %v3978_v42 = vmax.f32 %v9231_v8, 0.0 }
 0x7a9   : > { %5089 = vmatpush.bf16.msra.mxu3 %v6780_v14  ;;  %5019 = vmatpush.bf16.msra.mxu0 %v6754_v4  ;;  %v3949_v14 = vmax.f32 %v9202_v12, 0.0 }
 0x7aa   : > { %5044 = vmatpush.bf16.msra.mxu1 %v6761_v9 }
 0x7ab   : > { %v9250_v40 = vpop.f32.mrf.mxu2  ;;  %v9252_v35 = vpop.f32.mrf.mxu3 }
 0x7ac   : > { %v9256_v28 = vpop.f32.mrf.mxu0  ;;  %v9258_v45 = vpop.f32.mrf.mxu1  ;;  %v3997_v4 = vmax.f32 %v9252_v35, 0.0  ;;  %v4042_v35 = vpack.c.bf16 %v3994_v54, %v3978_v42 }
 0x7ad   : > { %5090 = vmatpush.bf16.msra.mxu3 %v6779_v6  ;;  %5020 = vmatpush.bf16.msra.mxu0 %v6753_v49  ;;  %v3996_v6 = vmax.f32 %v9250_v40, 0.0 }
 0x7af   : > { %4840 = vmatmul.bf16.gmra.mxu0 %v4038_v11  ;;  %4864 = vmatmul.bf16.gmra.mxu1 %v4039_v34  ;;  %v4011_v11 = vpack.c.bf16 %v3931_v48, %v3915_v39  ;;  %v4012_v34 = vpack.c.bf16 %v3932_v41, %v3916_v20  ;;  %v3962_v48 = vmax.f32 %v9207_v0, 0.0  ;;  %v3963_v41 = vmax.f32 %v9209_v30, 0.0  ;;  %v6752_v0 = vld [vmem:[%s7424_s1 + $0x200] sm:$0xff] }
 0x7b0   : > { %4888 = vmatmul.bf16.gmra.mxu2 %v4040_v38  ;;  %4912 = vmatmul.bf16.gmra.mxu3 %v4041_v50  ;;  %v4013_v38 = vpack.c.bf16 %v3933_v61, %v3917_v2  ;;  %v6771_v50 = vld [vmem:[%s7424_s1 + $0x298] sm:$0xff]  ;;  %v3964_v61 = vmax.f32 %v9222_v26, 0.0  ;;  %v3946_v39 = vmax.f32 %v9191_v10, 0.0  ;;  %v6760_v20 = vld [vmem:[%s7424_s1 + $0x240] sm:$0xff]  ;;  %v3948_v2 = vmax.f32 %v9200_v51, 0.0 }
 0x7b1   : > { %5066 = vmatpush.bf16.msra.mxu2 %v6771_v50  ;;  %5091 = vmatpush.bf16.msra.mxu3 %v6778_v18  ;;  %v6768_v30 = vld [vmem:[%s7424_s1 + $0x280] sm:$0xff]  ;;  %v4027_v10 = vpack.c.bf16 %v3963_v41, %v3947_v1  ;;  %v3995_v50 = vmax.f32 %v9242_v27, 0.0  ;;  %v3981_v27 = vmax.f32 %v9238_v63, 0.0  ;;  %v6807_v41 = vld [vmem:[%s7424_s1 + $0x3b8] sm:$0xff]  ;;  %v6806_v1 = vld [vmem:[%s7424_s1 + $0x3b0] sm:$0xff] }
 0x7b2   : > { %5021 = vmatpush.bf16.msra.mxu0 %v6752_v0  ;;  %5045 = vmatpush.bf16.msra.mxu1 %v6760_v20  ;;  %v4028_v3 = vpack.c.bf16 %v3964_v61, %v3948_v2  ;;  %v6789_v2 = vld [vmem:[%s7424_s1 + $0x328] sm:$0xff] }
 0x7b3   : > { %v9264_v57 = vpop.f32.mrf.mxu2  ;;  %v9266_v44 = vpop.f32.mrf.mxu3  ;;  %v4045_v8 = vpack.c.bf16 %v3997_v4, %v3981_v27 }
 0x7b4   : > { %v9271_v37 = vpop.f32.mrf.mxu0  ;;  %v9273_v55 = vpop.f32.mrf.mxu1 }
 0x7b5   : > { %5067 = vmatpush.bf16.msra.mxu2 %v6770_v62  ;;  %5092 = vmatpush.bf16.msra.mxu3 %v6777_v33  ;;  %v3979_v62 = vmax.f32 %v9233_v59, 0.0  ;;  %v4044_v33 = vpack.c.bf16 %v3996_v6, %v3980_v17  ;;  %v6791_v59 = vld [vmem:[%s7424_s1 + $0x338] sm:$0xff]  ;;  %v3919_v6 = vmax.f32 %v9258_v45, 0.0  ;;  %v3920_v17 = vmax.f32 %v9264_v57, 0.0 }
 0x7b6   : > { %v6787_v57 = vld [vmem:[%s7424_s1 + $0x318] sm:$0xff] }
 0x7b9   : > { %5068 = vmatpush.bf16.msra.mxu2 %v6769_v13  ;;  %v4043_v13 = vpack.c.bf16 %v3995_v50, %v3979_v62  ;;  %v3918_v50 = vmax.f32 %v9256_v28, 0.0  ;;  %v6796_v62 = vld [vmem:[%s7424_s1 + $0x360] sm:$0xff] }
 0x7ba   : > { %v6812_v28 = vld [vmem:[%s7424_s1 + $0x3e0] sm:$0xff] }
 0x7bb   : > { %v9286_v29 = vpop.f32.mrf.mxu2  ;;  %v9288_v47 = vpop.f32.mrf.mxu3 }
 0x7bc   : > { %v9295_v24 = vpop.f32.mrf.mxu0  ;;  %v9297_v43 = vpop.f32.mrf.mxu1  ;;  %v3937_v54 = vmax.f32 %v9288_v47, 0.0 }
 0x7bd   : > { %5069 = vmatpush.bf16.msra.mxu2 %v6768_v30  ;;  %v6814_v30 = vld [vmem:[%s7424_s1 + $0x3f0] sm:$0xff] }
 0x7bf   : > { %4926 = vmatmul.bf16.vlgmr.msrb.gmra.mxu0 %v4010_v23  ;;  %4950 = vmatmul.bf16.vlgmr.msrb.gmra.mxu1 %v4011_v11  ;;  %v6776_v23 = vld [vmem:[%s7424_s1 + $0x2c0] sm:$0xff]  ;;  %v4026_v11 = vpack.c.bf16 %v3962_v48, %v3946_v39  ;;  %v6799_v48 = vld [vmem:[%s7424_s1 + $0x378] sm:$0xff]  ;;  %v6798_v39 = vld [vmem:[%s7424_s1 + $0x370] sm:$0xff] }
 0x7c0   : > { %4974 = vmatmul.bf16.vlgmr.msrb.gmra.mxu2 %v4012_v34  ;;  %4998 = vmatmul.bf16.vlgmr.msrb.gmra.mxu3 %v4013_v38  ;;  %v4029_v34 = vpack.c.bf16 %v3965_v21, %v3949_v14  ;;  %v6790_v21 = vld [vmem:[%s7424_s1 + $0x330] sm:$0xff]  ;;  %v6797_v14 = vld [vmem:[%s7424_s1 + $0x368] sm:$0xff] }
 0x7c1   : > { %5093 = vmatpush.bf16.msra.mxu3 %v6776_v23  ;;  %5110 = vmatpush.bf16.msrb.mxu0 %v6791_v59  ;;  %v6805_v23 = vld [vmem:[%s7424_s1 + $0x3a8] sm:$0xff]  ;;  %v6811_v59 = vld [vmem:[%s7424_s1 + $0x3d8] sm:$0xff] }
 0x7c2   : > { %5134 = vmatpush.bf16.msrb.mxu1 %v6799_v48  ;;  %5158 = vmatpush.bf16.msrb.mxu2 %v6807_v41 }
 0x7c3   : > { %v9304_v31 = vpop.f32.mrf.mxu2  ;;  %v9306_v60 = vpop.f32.mrf.mxu3 }
 0x7c4   : > { %v9311_v53 = vpop.f32.mrf.mxu0  ;;  %v9313_v22 = vpop.f32.mrf.mxu1 }
 0x7c5   : > { %5182 = vmatpush.bf16.msrb.mxu3 %v6815_v5  ;;  %5111 = vmatpush.bf16.msrb.mxu0 %v6790_v21  ;;  %v6786_v5 = vld [vmem:[%s7424_s1 + $0x310] sm:$0xff] }
 0x7c6   : > { %5135 = vmatpush.bf16.msrb.mxu1 %v6798_v39  ;;  %5159 = vmatpush.bf16.msrb.mxu2 %v6806_v1  ;;  %v6794_v21 = vld [vmem:[%s7424_s1 + $0x350] sm:$0xff] }
 0x7c7   : > { %v6802_v39 = vld [vmem:[%s7424_s1 + $0x390] sm:$0xff] }
 0x7c9   : > { %5183 = vmatpush.bf16.msrb.mxu3 %v6814_v30  ;;  %5112 = vmatpush.bf16.msrb.mxu0 %v6789_v2  ;;  %v6810_v2 = vld [vmem:[%s7424_s1 + $0x3d0] sm:$0xff] }
 0x7ca   : > { %5136 = vmatpush.bf16.msrb.mxu1 %v6797_v14  ;;  %5160 = vmatpush.bf16.msrb.mxu2 %v6805_v23  ;;  %v6785_v14 = vld [vmem:[%s7424_s1 + $0x308] sm:$0xff] }
 0x7cb   : > { %v9326_v36 = vpop.f32.mrf.mxu2  ;;  %v9328_v46 = vpop.f32.mrf.mxu3  ;;  %v6793_v23 = vld [vmem:[%s7424_s1 + $0x348] sm:$0xff] }
 0x7cc   : > { %v9335_v26 = vpop.f32.mrf.mxu0  ;;  %v9337_v16 = vpop.f32.mrf.mxu1 }
 0x7ce   : > { %5137 = vmatpush.bf16.msrb.mxu1 %v6796_v62 }
 0x7cf   : > { %4931 = vmatmul.bf16.gmra.mxu0 %v4026_v11  ;;  %4955 = vmatmul.bf16.gmra.mxu1 %v4027_v10  ;;  %v6813_v11 = vld [vmem:[%s7424_s1 + $0x3e8] sm:$0xff]  ;;  %v3934_v10 = vmax.f32 %v9271_v37, 0.0  ;;  %v6788_v37 = vld [vmem:[%s7424_s1 + $0x320] sm:$0xff] }
 0x7d0   : > { %4979 = vmatmul.bf16.gmra.mxu2 %v4028_v3  ;;  %5003 = vmatmul.bf16.gmra.mxu3 %v4029_v34  ;;  %v3935_v3 = vmax.f32 %v9273_v55, 0.0  ;;  %v3936_v34 = vmax.f32 %v9286_v29, 0.0  ;;  %v6804_v55 = vld [vmem:[%s7424_s1 + $0x3a0] sm:$0xff]  ;;  %v3921_v29 = vmax.f32 %v9266_v44, 0.0  ;;  %v6795_v44 = vld [vmem:[%s7424_s1 + $0x358] sm:$0xff] }
 0x7d1   : > { %5184 = vmatpush.bf16.msrb.mxu3 %v6813_v11  ;;  %v4014_v45 = vpack.c.bf16 %v3934_v10, %v3918_v50  ;;  %5113 = vmatpush.bf16.msrb.mxu0 %v6788_v37  ;;  %v6801_v11 = vld [vmem:[%s7424_s1 + $0x388] sm:$0xff]  ;;  %v3969_v50 = vmax.f32 %v9328_v46, 0.0  ;;  %v3951_v37 = vmax.f32 %v9297_v43, 0.0 }
 0x7d2   : > { %5161 = vmatpush.bf16.msrb.mxu2 %v6804_v55  ;;  %5138 = vmatpush.bf16.msrb.mxu1 %v6795_v44  ;;  %v6809_v10 = vld [vmem:[%s7424_s1 + $0x3c8] sm:$0xff] }
 0x7d3   : > { %v9340_v51 = vpop.f32.mrf.mxu2  ;;  %v9342_v12 = vpop.f32.mrf.mxu3 }
 0x7d4   : > { %v9344_v38 = vpop.f32.mrf.mxu0  ;;  %v9346_v56 = vpop.f32.mrf.mxu1 }
 0x7d5   : > { %5185 = vmatpush.bf16.msrb.mxu3 %v6812_v28  ;;  %5114 = vmatpush.bf16.msrb.mxu0 %v6787_v57  ;;  %v3953_v28 = vmax.f32 %v9306_v60, 0.0  ;;  %v3998_v44 = vmax.f32 %v9344_v38, 0.0 }
 0x7d6   : > { %5139 = vmatpush.bf16.msrb.mxu1 %v6794_v21  ;;  %v3982_v21 = vmax.f32 %v9335_v26, 0.0 }
 0x7d9   : > { %5186 = vmatpush.bf16.msrb.mxu3 %v6811_v59  ;;  %5115 = vmatpush.bf16.msrb.mxu0 %v6786_v5 }
 0x7da   : > { %5140 = vmatpush.bf16.msrb.mxu1 %v6793_v23  ;;  %v3984_v23 = vmax.f32 %v9340_v51, 0.0 }
 0x7db   : > { %v9354_v18 = vpop.f32.mrf.mxu2  ;;  %v9356_v49 = vpop.f32.mrf.mxu3 }
 0x7dc   : > { %v9360_v9 = vpop.f32.mrf.mxu0  ;;  %v9362_v40 = vpop.f32.mrf.mxu1  ;;  %v4000_v59 = vmax.f32 %v9354_v18, 0.0  ;;  %v4001_v5 = vmax.f32 %v9356_v49, 0.0 }
 0x7dd   : > { %5187 = vmatpush.bf16.msrb.mxu3 %v6810_v2  ;;  %5116 = vmatpush.bf16.msrb.mxu0 %v6785_v14 }
 0x7df   : > { %4936 = vmatmul.bf16.gmra.mxu0 %v4042_v35  ;;  %4960 = vmatmul.bf16.gmra.mxu1 %v4043_v13  ;;  %v4015_v35 = vpack.c.bf16 %v3935_v3, %v3919_v6  ;;  %v4016_v13 = vpack.c.bf16 %v3936_v34, %v3920_v17  ;;  %v3966_v3 = vmax.f32 %v9311_v53, 0.0  ;;  %v3967_v34 = vmax.f32 %v9313_v22, 0.0  ;;  %v6784_v53 = vld [vmem:[%s7424_s1 + $0x300] sm:$0xff] }
 0x7e0   : > { %4984 = vmatmul.bf16.gmra.mxu2 %v4044_v33  ;;  %5008 = vmatmul.bf16.gmra.mxu3 %v4045_v8  ;;  %v4017_v33 = vpack.c.bf16 %v3937_v54, %v3921_v29  ;;  %v6803_v8 = vld [vmem:[%s7424_s1 + $0x398] sm:$0xff]  ;;  %v3968_v54 = vmax.f32 %v9326_v36, 0.0  ;;  %v3950_v6 = vmax.f32 %v9295_v24, 0.0  ;;  %v6792_v17 = vld [vmem:[%s7424_s1 + $0x340] sm:$0xff]  ;;  %v3952_v29 = vmax.f32 %v9304_v31, 0.0 }
 0x7e1   : > { %5162 = vmatpush.bf16.msrb.mxu2 %v6803_v8  ;;  %5188 = vmatpush.bf16.msrb.mxu3 %v6809_v10  ;;  %v6800_v22 = vld [vmem:[%s7424_s1 + $0x380] sm:$0xff]  ;;  %v4031_v24 = vpack.c.bf16 %v3967_v34, %v3951_v37  ;;  %v3999_v8 = vmax.f32 %v9346_v56, 0.0  ;;  %v4048_v34 = vpack.c.bf16 %v4000_v59, %v3984_v23 }
 0x7e2   : > { %5117 = vmatpush.bf16.msrb.mxu0 %v6784_v53  ;;  %5141 = vmatpush.bf16.msrb.mxu1 %v6792_v17  ;;  %v4032_v43 = vpack.c.bf16 %v3968_v54, %v3952_v29 }
 0x7e3   : > { %v9368_v63 = vpop.f32.mrf.mxu2  ;;  %v9370_v61 = vpop.f32.mrf.mxu3 }
 0x7e4   : > { %v9375_v0 = vpop.f32.mrf.mxu0  ;;  %v9377_v20 = vpop.f32.mrf.mxu1 }
 0x7e5   : > { %5163 = vmatpush.bf16.msrb.mxu2 %v6802_v39  ;;  %v3983_v39 = vmax.f32 %v9337_v16, 0.0  ;;  %v3938_v17 = vmax.f32 %v9375_v0, 0.0 }
 0x7e7   : > { %v4047_v56 = vpack.c.bf16 %v3999_v8, %v3983_v39 }
 0x7e9   : > { %5164 = vmatpush.bf16.msrb.mxu2 %v6801_v11  ;;  %v3985_v11 = vmax.f32 %v9342_v12, 0.0 }
 0x7eb   : > { %v9390_v4 = vpop.f32.mrf.mxu2  ;;  %v9392_v42 = vpop.f32.mrf.mxu3  ;;  %v4049_v49 = vpack.c.bf16 %v4001_v5, %v3985_v11 }
 0x7ec   : > { %v9399_v47 = vpop.f32.mrf.mxu0  ;;  %v9401_v27 = vpop.f32.mrf.mxu1  ;;  %v3941_v29 = vmax.f32 %v9392_v42, 0.0 }
 0x7ed   : > { %5165 = vmatpush.bf16.msrb.mxu2 %v6800_v22  ;;  %v3940_v22 = vmax.f32 %v9390_v4, 0.0 }
 0x7ef   : > { %5022 = vmatmul.bf16.vlgmr.msra.gmra.mxu0 %v4014_v45  ;;  %5046 = vmatmul.bf16.vlgmr.msra.gmra.mxu1 %v4015_v35  ;;  %v6808_v45 = vld [vmem:[%s7424_s1 + $0x3c0] sm:$0xff]  ;;  %v4030_v35 = vpack.c.bf16 %v3966_v3, %v3950_v6  ;;  %v4046_v3 = vpack.c.bf16 %v3998_v44, %v3982_v21  ;;  %s6819_s1 = smul.u32 48, %s7262_s28 }
 0x7f0   : > { %5070 = vmatmul.bf16.vlgmr.msra.gmra.mxu2 %v4016_v13  ;;  %5094 = vmatmul.bf16.vlgmr.msra.gmra.mxu3 %v4017_v33  ;;  %v4033_v13 = vpack.c.bf16 %v3969_v50, %v3953_v28  ;;  %v3922_v28 = vmax.f32 %v9360_v9, 0.0 }
 0x7f1   : > { %5189 = vmatpush.bf16.msrb.mxu3 %v6808_v45  ;;  %v3923_v45 = vmax.f32 %v9362_v40, 0.0  ;;  %s5371_s26 = sadd.s32 %s6820_s24, %s6819_s1 }
 0x7f2   : > { %v4018_v0 = vpack.c.bf16 %v3938_v17, %v3922_v28  ;;  %s6594_s30 = sshll.u32 %s5371_s26, 3 }
 0x7f3   : > { %v9408_v48 = vpop.f32.mrf.mxu2  ;;  %v9410_v41 = vpop.f32.mrf.mxu3  ;;  %s5373_s12 = scalar_lea.hbm %s9641_s7, %s6594_s30 }
 0x7f4   : > { %v9415_v1 = vpop.f32.mrf.mxu0  ;;  %v9417_v30 = vpop.f32.mrf.mxu1  ;;  %s5376_s20 = sshll.u32 %s5373_s12, 4  ;;  %s5377_s20 = int_to_ptr.hbm [resolvable:$true] %s5376_s20 }
 0x7f5   : > { %s7194_s9 = sshra.s32 %s5377_s20, 4  ;;  %s7195_s9 = int_to_ptr.hbm [resolvable:$true] %s7194_s9 }
 0x7f6   : > { %s7196_s16 = scalar_lea.hbm %s7195_s9, 384  ;;  %p7201_p5 = scmp.lt.s32.totalorder %s7195_s9, %s9641_s7 }
 0x7f7   : > { %p7197_p1 = scmp.ne.s32.totalorder %s7195_s9, %s7196_s16  ;;  %p7202_p6 = scmp.lt.s32.totalorder %s7200_s22, %s7196_s16 }
 0x7f9   : > { %p7198_p2 = pnand %p7197_p1, %p7371_p3  ;;  %p7203_p7 = por %p7202_p6, %p7201_p5 }
 0x7fb   : > { %v9430_v62 = vpop.f32.mrf.mxu2  ;;  %v9432_v55 = vpop.f32.mrf.mxu3  ;;  %p7199_p4 = pneg %p7198_p2 }
 0x7fc   : > { %v9439_v36 = vpop.f32.mrf.mxu0  ;;  %v9441_v46 = vpop.f32.mrf.mxu1 }
 0x7fd   : > { %p7204_p9 = pnand %p7203_p7, %p7199_p4 }
 0x7ff   : > { %5027 = vmatmul.bf16.gmra.mxu0 %v4030_v35  ;;  %5051 = vmatmul.bf16.gmra.mxu1 %v4031_v24 }
 0x800   : > { %5075 = vmatmul.bf16.gmra.mxu2 %v4032_v43  ;;  %5099 = vmatmul.bf16.gmra.mxu3 %v4033_v13  ;;  %v3924_v43 = vmax.f32 %v9368_v63, 0.0 }
 0x802   : > { %v4020_v4 = vpack.c.bf16 %v3940_v22, %v3924_v43  ;;  %v3987_v43 = vmax.f32 %v9441_v46, 0.0 }
 0x803   : > { %v9444_v31 = vpop.f32.mrf.mxu2  ;;  %v9446_v60 = vpop.f32.mrf.mxu3 }
 0x804   : > { %v9448_v33 = vpop.f32.mrf.mxu0  ;;  %v9450_v57 = vpop.f32.mrf.mxu1 }
 0x805   : > { %v4002_v28 = vmax.f32 %v9448_v33, 0.0 }
 0x80b   : > { %v9458_v2 = vpop.f32.mrf.mxu2  ;;  %v9460_v14 = vpop.f32.mrf.mxu3 }
 0x80c   : > { %v4831_v10 = vpop.f32.mrf.mxu0  ;;  %v4855_v38 = vpop.f32.mrf.mxu1 }
 0x80d   : > { %v4832_v18 = vadd.f32 %v4831_v10, %v8883_v58  ;;  %v3939_v58 = vmax.f32 %v9377_v20, 0.0 }
 0x80f   : > { %v4856_v54 = vadd.f32 %v4855_v38, %v4832_v18  ;;  %5032 = vmatmul.bf16.gmra.mxu0 %v4046_v3  ;;  %5056 = vmatmul.bf16.gmra.mxu1 %v4047_v56  ;;  %v4019_v59 = vpack.c.bf16 %v3939_v58, %v3923_v45  ;;  %v3971_v38 = vmax.f32 %v9417_v30, 0.0  ;;  %v3972_v3 = vmax.f32 %v9430_v62, 0.0 }
 0x810   : > { %5080 = vmatmul.bf16.gmra.mxu2 %v4048_v34  ;;  %5104 = vmatmul.bf16.gmra.mxu3 %v4049_v49  ;;  %v3973_v56 = vmax.f32 %v9432_v55, 0.0  ;;  %v3954_v18 = vmax.f32 %v9399_v47, 0.0  ;;  %v3955_v34 = vmax.f32 %v9401_v27, 0.0  ;;  %v4004_v45 = vmax.f32 %v9458_v2, 0.0 }
 0x813   : > { %v4879_v26 = vpop.f32.mrf.mxu2  ;;  %v4903_v16 = vpop.f32.mrf.mxu3 }
 0x814   : > { %v4880_v50 = vadd.f32 %v4879_v26, %v4856_v54  ;;  %v4833_v6 = vpop.f32.mrf.mxu0  ;;  %v4857_v51 = vpop.f32.mrf.mxu1  ;;  %v3956_v26 = vmax.f32 %v9408_v48, 0.0 }
 0x815   : > { %v4834_v12 = vadd.f32 %v4833_v6, %v8886_v15  ;;  %v3925_v15 = vmax.f32 %v9370_v61, 0.0 }
 0x816   : > { %v9466_v37 = vadd.f32 %v4903_v16, %v4880_v50  ;;  %v4036_v62 = vpack.c.bf16 %v3972_v3, %v3956_v26 }
 0x817   : > { %v4858_v53 = vadd.f32 %v4857_v51, %v4834_v12  ;;  %v4021_v5 = vpack.c.bf16 %v3941_v29, %v3925_v15  ;;  %v4035_v51 = vpack.c.bf16 %v3971_v38, %v3955_v34 }
 0x81b   : > { %v4881_v35 = vpop.f32.mrf.mxu2  ;;  %v4905_v24 = vpop.f32.mrf.mxu3 }
 0x81c   : > { %v4882_v13 = vadd.f32 %v4881_v35, %v4858_v53  ;;  %v4836_v44 = vpop.f32.mrf.mxu0  ;;  %v4860_v8 = vpop.f32.mrf.mxu1  ;;  %v4005_v35 = vmax.f32 %v9460_v14, 0.0 }
 0x81d   : > { %v4837_v20 = vadd.f32 %v4836_v44, %v8932_v52  ;;  %v3970_v52 = vmax.f32 %v9415_v1, 0.0  ;;  %v3988_v44 = vmax.f32 %v9444_v31, 0.0 }
 0x81e   : > { %v9477_v42 = vadd.f32 %v4905_v24, %v4882_v13  ;;  %v3986_v24 = vmax.f32 %v9439_v36, 0.0 }
 0x81f   : > { %v4861_v9 = vadd.f32 %v4860_v8, %v4837_v20  ;;  %5118 = vmatmul.bf16.vlgmr.msrb.gmra.mxu0 %v4018_v0  ;;  %5142 = vmatmul.bf16.vlgmr.msrb.gmra.mxu1 %v4019_v59  ;;  %v4034_v1 = vpack.c.bf16 %v3970_v52, %v3954_v18  ;;  %v4052_v2 = vpack.c.bf16 %v4004_v45, %v3988_v44 }
 0x820   : > { %5166 = vmatmul.bf16.vlgmr.msrb.gmra.mxu2 %v4020_v4  ;;  %5190 = vmatmul.bf16.vlgmr.msrb.gmra.mxu3 %v4021_v5  ;;  %v4050_v33 = vpack.c.bf16 %v4002_v28, %v3986_v24 }
 0x823   : > { %v4884_v40 = vpop.f32.mrf.mxu2  ;;  %v4908_v63 = vpop.f32.mrf.mxu3 }
 0x824   : > { %v4885_v21 = vadd.f32 %v4884_v40, %v4861_v9  ;;  %v4838_v61 = vpop.f32.mrf.mxu0  ;;  %v4862_v39 = vpop.f32.mrf.mxu1 }
 0x825   : > { %v4839_v23 = vadd.f32 %v4838_v61, %v8935_v25  ;;  %v3957_v25 = vmax.f32 %v9410_v41, 0.0 }
 0x826   : > { %v9480_v11 = vadd.f32 %v4908_v63, %v4885_v21 }
 0x827   : > { %v4863_v10 = vadd.f32 %v4862_v39, %v4839_v23  ;;  %v4037_v12 = vpack.c.bf16 %v3973_v56, %v3957_v25 }
 0x82b   : > { %v4886_v49 = vpop.f32.mrf.mxu2  ;;  %v4910_v54 = vpop.f32.mrf.mxu3 }
 0x82c   : > { %v4887_v16 = vadd.f32 %v4886_v49, %v4863_v10  ;;  %v4841_v50 = vpop.f32.mrf.mxu0  ;;  %v4865_v6 = vpop.f32.mrf.mxu1 }
 0x82d   : > { %v4842_v30 = vadd.f32 %v4841_v50, %v8951_v32  ;;  %v4003_v32 = vmax.f32 %v9450_v57, 0.0 }
 0x82e   : > { %v4911_v55 = vadd.f32 %v4910_v54, %v4887_v16 }
 0x82f   : > { %v4866_v53 = vadd.f32 %v4865_v6, %v4842_v30  ;;  %5123 = vmatmul.bf16.gmra.mxu0 %v4034_v1  ;;  %5147 = vmatmul.bf16.gmra.mxu1 %v4035_v51  ;;  %v4051_v20 = vpack.c.bf16 %v4003_v32, %v3987_v43 }
 0x830   : > { %5171 = vmatmul.bf16.gmra.mxu2 %v4036_v62  ;;  %5195 = vmatmul.bf16.gmra.mxu3 %v4037_v12 }
 0x833   : > { %v4889_v47 = vpop.f32.mrf.mxu2  ;;  %v4913_v27 = vpop.f32.mrf.mxu3 }
 0x834   : > { %v4890_v48 = vadd.f32 %v4889_v47, %v4866_v53  ;;  %v4843_v17 = vpop.f32.mrf.mxu0  ;;  %v4867_v41 = vpop.f32.mrf.mxu1 }
 0x835   : > { %v4844_v58 = vadd.f32 %v4843_v17, %v8954_v7  ;;  %v3989_v7 = vmax.f32 %v9446_v60, 0.0 }
 0x836   : > { %v4914_v22 = vadd.f32 %v4913_v27, %v4890_v48 }
 0x837   : > { %v4868_v29 = vadd.f32 %v4867_v41, %v4844_v58  ;;  %v4053_v4 = vpack.c.bf16 %v4005_v35, %v3989_v7 }
 0x83b   : > { %v4891_v15 = vpop.f32.mrf.mxu2  ;;  %v4915_v13 = vpop.f32.mrf.mxu3 }
 0x83c   : > { %v4892_v8 = vadd.f32 %v4891_v15, %v4868_v29  ;;  %v4927_v0 = vpop.f32.mrf.mxu0  ;;  %v4951_v59 = vpop.f32.mrf.mxu1 }
 0x83d   : > { %v4928_v57 = vadd.f32 %v4927_v0, %v9466_v37 }
 0x83e   : > { %v4916_v14 = vadd.f32 %v4915_v13, %v4892_v8 }
 0x83f   : > { %v4952_v5 = vadd.f32 %v4951_v59, %v4928_v57  ;;  %5128 = vmatmul.bf16.gmra.mxu0 %v4050_v33  ;;  %5152 = vmatmul.bf16.gmra.mxu1 %v4051_v20 }
 0x840   : > { %5176 = vmatmul.bf16.gmra.mxu2 %v4052_v2  ;;  %5200 = vmatmul.bf16.gmra.mxu3 %v4053_v4 }
 0x843   : > { %v4975_v36 = vpop.f32.mrf.mxu2  ;;  %v4999_v46 = vpop.f32.mrf.mxu3 }
 0x844   : > { %v4976_v31 = vadd.f32 %v4975_v36, %v4952_v5  ;;  %v4929_v9 = vpop.f32.mrf.mxu0  ;;  %v4953_v60 = vpop.f32.mrf.mxu1 }
 0x845   : > { %v4930_v40 = vadd.f32 %v4929_v9, %v9477_v42 }
 0x846   : > { %v5000_v63 = vadd.f32 %v4999_v46, %v4976_v31 }
 0x847   : > { %v4954_v21 = vadd.f32 %v4953_v60, %v4930_v40 }
 0x84b   : > { %v4977_v61 = vpop.f32.mrf.mxu2  ;;  %v5001_v39 = vpop.f32.mrf.mxu3 }
 0x84c   : > { %v4978_v37 = vadd.f32 %v4977_v61, %v4954_v21  ;;  %v4932_v23 = vpop.f32.mrf.mxu0  ;;  %v4956_v10 = vpop.f32.mrf.mxu1 }
 0x84d   : > { %v4933_v52 = vadd.f32 %v4932_v23, %v9480_v11 }
 0x84e   : > { %v5002_v38 = vadd.f32 %v5001_v39, %v4978_v37 }
 0x84f   : > { %v4957_v3 = vadd.f32 %v4956_v10, %v4933_v52 }
 0x853   : > { %v4980_v56 = vpop.f32.mrf.mxu2  ;;  %v5004_v18 = vpop.f32.mrf.mxu3 }
 0x854   : > { %v4981_v34 = vadd.f32 %v4980_v56, %v4957_v3  ;;  %v4934_v49 = vpop.f32.mrf.mxu0  ;;  %v4958_v54 = vpop.f32.mrf.mxu1 }
 0x855   : > { %v4935_v26 = vadd.f32 %v4934_v49, %v4911_v55 }
 0x856   : > { %v5005_v25 = vadd.f32 %v5004_v18, %v4981_v34 }
 0x857   : > { %v4959_v16 = vadd.f32 %v4958_v54, %v4935_v26 }
 0x85b   : > { %v4982_v42 = vpop.f32.mrf.mxu2  ;;  %v5006_v50 = vpop.f32.mrf.mxu3 }
 0x85c   : > { %v4983_v6 = vadd.f32 %v4982_v42, %v4959_v16  ;;  %v4937_v1 = vpop.f32.mrf.mxu0  ;;  %v4961_v51 = vpop.f32.mrf.mxu1 }
 0x85d   : > { %v4938_v30 = vadd.f32 %v4937_v1, %v4914_v22 }
 0x85e   : > { %v5007_v62 = vadd.f32 %v5006_v50, %v4983_v6 }
 0x85f   : > { %v4962_v12 = vadd.f32 %v4961_v51, %v4938_v30 }
 0x863   : > { %v4985_v53 = vpop.f32.mrf.mxu2  ;;  %v5009_v11 = vpop.f32.mrf.mxu3 }
 0x864   : > { %v4986_v47 = vadd.f32 %v4985_v53, %v4962_v12  ;;  %v4939_v27 = vpop.f32.mrf.mxu0  ;;  %v4963_v48 = vpop.f32.mrf.mxu1 }
 0x865   : > { %v4940_v17 = vadd.f32 %v4939_v27, %v4916_v14 }
 0x866   : > { %v9503_v41 = vadd.f32 %v5009_v11, %v4986_v47 }
 0x867   : > { %v4964_v58 = vadd.f32 %v4963_v48, %v4940_v17 }
 0x86b   : > { %v4987_v55 = vpop.f32.mrf.mxu2  ;;  %v5011_v29 = vpop.f32.mrf.mxu3 }
 0x86c   : > { %v4988_v28 = vadd.f32 %v4987_v55, %v4964_v58  ;;  %v5023_v32 = vpop.f32.mrf.mxu0  ;;  %v5047_v45 = vpop.f32.mrf.mxu1 }
 0x86d   : > { %v5024_v5 = vadd.f32 %v5023_v32, %v5000_v63 }
 0x86e   : > { %v9505_v35 = vadd.f32 %v5011_v29, %v4988_v28 }
 0x86f   : > { %v5048_v60 = vadd.f32 %v5047_v45, %v5024_v5 }
 0x873   : > { %v5071_v24 = vpop.f32.mrf.mxu2  ;;  %v5095_v22 = vpop.f32.mrf.mxu3 }
 0x874   : > { %v5025_v43 = vpop.f32.mrf.mxu0  ;;  %v5049_v15 = vpop.f32.mrf.mxu1  ;;  %v5072_v40 = vadd.f32 %v5071_v24, %v5048_v60 }
 0x875   : > { %v5026_v21 = vadd.f32 %v5025_v43, %v5002_v38 }
 0x876   : > { %v5096_v37 = vadd.f32 %v5095_v22, %v5072_v40 }
 0x877   : > { %v5050_v52 = vadd.f32 %v5049_v15, %v5026_v21 }
 0x87b   : > { %v5073_v13 = vpop.f32.mrf.mxu2  ;;  %v5097_v44 = vpop.f32.mrf.mxu3 }
 0x87c   : > { %v5028_v7 = vpop.f32.mrf.mxu0  ;;  %v5052_v8 = vpop.f32.mrf.mxu1  ;;  %v5074_v56 = vadd.f32 %v5073_v13, %v5050_v52 }
 0x87d   : > { %v5029_v18 = vadd.f32 %v5028_v7, %v5005_v25 }
 0x87e   : > { %v5098_v54 = vadd.f32 %v5097_v44, %v5074_v56 }
 0x87f   : > { %v5053_v50 = vadd.f32 %v5052_v8, %v5029_v18 }
 0x883   : > { %v5076_v0 = vpop.f32.mrf.mxu2  ;;  %v5100_v59 = vpop.f32.mrf.mxu3 }
 0x884   : > { %v5030_v33 = vpop.f32.mrf.mxu0  ;;  %v5054_v20 = vpop.f32.mrf.mxu1  ;;  %v5077_v1 = vadd.f32 %v5076_v0, %v5053_v50 }
 0x885   : > { %v5031_v30 = vadd.f32 %v5030_v33, %v5007_v62 }
 0x886   : > { %v5101_v11 = vadd.f32 %v5100_v59, %v5077_v1 }
 0x887   : > { %v5055_v17 = vadd.f32 %v5054_v20, %v5031_v30 }
 0x88b   : > { %v5078_v57 = vpop.f32.mrf.mxu2  ;;  %v5102_v2 = vpop.f32.mrf.mxu3 }
 0x88c   : > { %v5033_v4 = vpop.f32.mrf.mxu0  ;;  %v5057_v14 = vpop.f32.mrf.mxu1  ;;  %v5079_v29 = vadd.f32 %v5078_v57, %v5055_v17 }
 0x88d   : > { %v5034_v32 = vadd.f32 %v5033_v4, %v9503_v41 }
 0x88e   : > { %v5103_v62 = vadd.f32 %v5102_v2, %v5079_v29 }
 0x88f   : > { %v5058_v44 = vadd.f32 %v5057_v14, %v5034_v32 }
 0x893   : > { %v5081_v36 = vpop.f32.mrf.mxu2  ;;  %v5105_v46 = vpop.f32.mrf.mxu3 }
 0x894   : > { %v5035_v31 = vpop.f32.mrf.mxu0  ;;  %v5059_v9 = vpop.f32.mrf.mxu1  ;;  %v5082_v0 = vadd.f32 %v5081_v36, %v5058_v44 }
 0x895   : > { %v5036_v33 = vadd.f32 %v5035_v31, %v9505_v35 }
 0x896   : > { %v5106_v41 = vadd.f32 %v5105_v46, %v5082_v0 }
 0x897   : > { %v5060_v40 = vadd.f32 %v5059_v9, %v5036_v33 }
 0x89b   : > { %v5083_v61 = vpop.f32.mrf.mxu2  ;;  %v9507_v39 = vpop.f32.mrf.mxu3 }
 0x89c   : > { %v5119_v23 = vpop.f32.mrf.mxu0  ;;  %v5143_v10 = vpop.f32.mrf.mxu1 }
 0x89d   : > { %v5120_v3 = vadd.f32 %v5119_v23, %v5096_v37  ;;  %v5084_v23 = vadd.f32 %v5083_v61, %v5060_v40 }
 0x89f   : > { %v5144_v34 = vadd.f32 %v5143_v10, %v5120_v3  ;;  %v5108_v3 = vadd.f32 %v9507_v39, %v5084_v23 }
 0x8a3   : > { %v5167_v49 = vpop.f32.mrf.mxu2  ;;  %v5191_v63 = vpop.f32.mrf.mxu3 }
 0x8a4   : > { %v5168_v26 = vadd.f32 %v5167_v49, %v5144_v34  ;;  %v5121_v16 = vpop.f32.mrf.mxu0  ;;  %v5145_v42 = vpop.f32.mrf.mxu1 }
 0x8a5   : > { %v5122_v38 = vadd.f32 %v5121_v16, %v5098_v54 }
 0x8a6   : > { %v9509_v6 = vadd.f32 %v5191_v63, %v5168_v26 }
 0x8a7   : > { %v5146_v12 = vadd.f32 %v5145_v42, %v5122_v38 }
 0x8a8   : > { %v5206_v51 = vsel %vm566_vm1, %v9509_v6, 0.0 }
 0x8a9   : > { %5207 = vadd.xlane.f32.xlu1 %v5206_v51 }
 0x8ab   : > { %v5169_v53 = vpop.f32.mrf.mxu2  ;;  %v5193_v25 = vpop.f32.mrf.mxu3 }
 0x8ac   : > { %v5170_v47 = vadd.f32 %v5169_v53, %v5146_v12  ;;  %v5124_v27 = vpop.f32.mrf.mxu0  ;;  %v5148_v48 = vpop.f32.mrf.mxu1 }
 0x8ad   : > { %v5125_v55 = vadd.f32 %v5124_v27, %v5101_v11 }
 0x8ae   : > { %v5194_v58 = vadd.f32 %v5193_v25, %v5170_v47 }
 0x8af   : > { %v5149_v45 = vadd.f32 %v5148_v48, %v5125_v55 }
 0x8b0   : > { %v5209_v28 = vsel %vm566_vm1, %v5194_v58, 0.0 }
 0x8b1   : > { %5210 = vadd.xlane.f32.xlu2 %v5209_v28 }
 0x8b3   : > { %v5172_v24 = vpop.f32.mrf.mxu2  ;;  %v5196_v22 = vpop.f32.mrf.mxu3 }
 0x8b4   : > { %v5173_v43 = vadd.f32 %v5172_v24, %v5149_v45  ;;  %v5126_v15 = vpop.f32.mrf.mxu0  ;;  %v5150_v13 = vpop.f32.mrf.mxu1 }
 0x8b5   : > { %v5127_v8 = vadd.f32 %v5126_v15, %v5103_v62 }
 0x8b6   : > { %v5197_v7 = vadd.f32 %v5196_v22, %v5173_v43 }
 0x8b7   : > { %v5151_v20 = vadd.f32 %v5150_v13, %v5127_v8 }
 0x8b8   : > { %v5212_v59 = vsel %vm566_vm1, %v5197_v7, 0.0 }
 0x8b9   : > { %5213 = vadd.xlane.f32.xlu0 %v5212_v59 }
 0x8bb   : > { %v5174_v57 = vpop.f32.mrf.mxu2  ;;  %v5198_v5 = vpop.f32.mrf.mxu3 }
 0x8bc   : > { %v5175_v4 = vadd.f32 %v5174_v57, %v5151_v20  ;;  %v5129_v60 = vpop.f32.mrf.mxu0  ;;  %v5153_v37 = vpop.f32.mrf.mxu1 }
 0x8bd   : > { %v5130_v21 = vadd.f32 %v5129_v60, %v5106_v41 }
 0x8be   : > { %v5199_v2 = vadd.f32 %v5198_v5, %v5175_v4 }
 0x8bf   : > { %v5154_v36 = vadd.f32 %v5153_v37, %v5130_v21 }
 0x8c0   : > { %v5215_v14 = vsel %vm566_vm1, %v5199_v2, 0.0 }
 0x8c1   : > { %5216 = vadd.xlane.f32.xlu1 %v5215_v14 }
 0x8c3   : > { %v5177_v10 = vpop.f32.mrf.mxu2  ;;  %v5201_v52 = vpop.f32.mrf.mxu3 }
 0x8c4   : > { %v5178_v35 = vadd.f32 %v5177_v10, %v5154_v36  ;;  %v5131_v31 = vpop.f32.mrf.mxu0  ;;  %v5155_v34 = vpop.f32.mrf.mxu1 }
 0x8c5   : > { %v5132_v18 = vadd.f32 %v5131_v31, %v5108_v3 }
 0x8c6   : > { %v5202_v56 = vadd.f32 %v5201_v52, %v5178_v35 }
 0x8c7   : > { %v5156_v9 = vadd.f32 %v5155_v34, %v5132_v18 }
 0x8c8   : > { %v5218_v46 = vsel %vm566_vm1, %v5202_v56, 0.0 }
 0x8c9   : > { %5219 = vadd.xlane.f32.xlu2 %v5218_v46 }
 0x8cb   : > { %v5179_v49 = vpop.f32.mrf.mxu2  ;;  %v5203_v61 = vpop.f32.mrf.mxu3 }
 0x8cc   : > { %v5180_v63 = vadd.f32 %v5179_v49, %v5156_v9 }
 0x8ce   : > { %v5204_v54 = vadd.f32 %v5203_v61, %v5180_v63 }
 0x8d0   : > { %v5221_v26 = vsel %vm566_vm1, %v5204_v54, 0.0 }
 0x8d1   : > { %5222 = vadd.xlane.f32.xlu0 %v5221_v26 }
 0x91c   : > { %v5208_v16 = vpop.xlane.xlu1 %5207 }
 0x91d   : > { %v5224_v42 = vmul.f32 %v5208_v16, %v8824_v19 }
 0x91f   : > { %v9523_v39 = vsub.f32 %v9509_v6, %v5224_v42 }
 0x921   : > { %v5236_v50 = vmul.f32 %v9523_v39, %v9523_v39 }
 0x923   : > { %v5242_v38 = vsel %vm566_vm1, %v5236_v50, 0.0 }
 0x924   : > { %v5211_v1 = vpop.xlane.xlu2 %5210  ;;  %5243 = vadd.xlane.f32.xlu1 %v5242_v38 }
 0x925   : > { %v5225_v51 = vmul.f32 %v5211_v1, %v8824_v19 }
 0x927   : > { %v9529_v30 = vsub.f32 %v5194_v58, %v5225_v51 }
 0x929   : > { %v5237_v12 = vmul.f32 %v9529_v30, %v9529_v30 }
 0x92b   : > { %v5245_v53 = vsel %vm566_vm1, %v5237_v12, 0.0 }
 0x92c   : > { %v5214_v25 = vpop.xlane.xlu0 %5213  ;;  %5246 = vadd.xlane.f32.xlu2 %v5245_v53 }
 0x92d   : > { %v5226_v6 = vmul.f32 %v5214_v25, %v8824_v19 }
 0x92f   : > { %v9535_v11 = vsub.f32 %v5197_v7, %v5226_v6 }
 0x931   : > { %v5238_v47 = vmul.f32 %v9535_v11, %v9535_v11 }
 0x933   : > { %v5248_v27 = vsel %vm566_vm1, %v5238_v47, 0.0 }
 0x934   : > { %v5217_v48 = vpop.xlane.xlu1 %5216  ;;  %5249 = vadd.xlane.f32.xlu0 %v5248_v27 }
 0x935   : > { %v5227_v17 = vmul.f32 %v5217_v48, %v8824_v19 }
 0x937   : > { %v9541_v58 = vsub.f32 %v5199_v2, %v5227_v17 }
 0x939   : > { %v5239_v55 = vmul.f32 %v9541_v58, %v9541_v58 }
 0x93b   : > { %v5251_v29 = vsel %vm566_vm1, %v5239_v55, 0.0 }
 0x93c   : > { %5252 = vadd.xlane.f32.xlu1 %v5251_v29  ;;  %v5220_v28 = vpop.xlane.xlu2 %5219 }
 0x93d   : > { %v5228_v32 = vmul.f32 %v5220_v28, %v8824_v19 }
 0x93f   : > { %v9547_v45 = vsub.f32 %v5202_v56, %v5228_v32 }
 0x941   : > { %v5240_v24 = vmul.f32 %v9547_v45, %v9547_v45 }
 0x943   : > { %v5254_v22 = vsel %vm566_vm1, %v5240_v24, 0.0 }
 0x944   : > { %v5223_v62 = vpop.xlane.xlu0 %5222  ;;  %5255 = vadd.xlane.f32.xlu2 %v5254_v22 }
 0x945   : > { %v5229_v43 = vmul.f32 %v5223_v62, %v8824_v19 }
 0x947   : > { %v9553_v15 = vsub.f32 %v5204_v54, %v5229_v43 }
 0x949   : > { %v5241_v13 = vmul.f32 %v9553_v15, %v9553_v15 }
 0x94b   : > { %v5257_v44 = vsel %vm566_vm1, %v5241_v13, 0.0 }
 0x94c   : > { %5258 = vadd.xlane.f32.xlu0 %v5257_v44 }
 0x94d   : > { %7207 = shalt.err (!%p7204_p9)
}
 0x94e   : > { %s7278_s3 = smov 128   ;;  %s7279_s17 = smov 8  }
 0x94f   : > { %6821 = dma.vmem_to_hbm [thread:$0]  (%p7371_p3), %s5375_s15, 6144, %s5377_s20, %s5356_s23, %s7278_s3, %s7278_s3, %s7279_s17  }
 0x997   : > { %v5244_v7 = vpop.xlane.xlu1 %5243 }
 0x998   : > { %v5260_v8 = vmul.f32 %v5244_v7, %v8824_v19 }
 0x99a   : > { %v5266_v0 = vadd.f32 1e-05, %v5260_v8 }
 0x99c   : > { %7162 = vrsqrt.f32 %v5266_v0  ;;  %vm5278_vm15 = vweird.f32 %v5266_v0 }
 0x99f   : > { %v5247_v59 = vpop.xlane.xlu2 %5246 }
 0x9a0   : > { %v5261_v33 = vmul.f32 %v5247_v59, %v8824_v19 }
 0x9a2   : > { %v7163_v20 = vpop.eup %7162  ;;  %v5267_v57 = vadd.f32 1e-05, %v5261_v33 }
 0x9a3   : > { %v5273_v5 = vmul.f32 %v7163_v20, %v5266_v0  ;;  %vm5279_vm14 = vweird.f32 %v7163_v20 }
 0x9a4   : > { %7164 = vrsqrt.f32 %v5267_v57  ;;  %vm5280_vm0 = vmor %vm5278_vm15, %vm5279_vm14  ;;  %vm5288_vm3 = vweird.f32 %v5267_v57 }
 0x9a5   : > { %v5274_v41 = vmul.f32 %v7163_v20, %v5273_v5 }
 0x9a7   : > { %v5275_v4 = vmul.f32 0.5, %v5274_v41  ;;  %v5250_v60 = vpop.xlane.xlu0 %5249 }
 0x9a8   : > { %v5262_v40 = vmul.f32 %v5250_v60, %v8824_v19 }
 0x9a9   : > { %v5276_v2 = vsub.f32 1.5, %v5275_v4 }
 0x9aa   : > { %v7165_v21 = vpop.eup %7164  ;;  %v5268_v37 = vadd.f32 1e-05, %v5262_v40 }
 0x9ab   : > { %v5277_v23 = vmul.f32 %v7163_v20, %v5276_v2  ;;  %v5283_v14 = vmul.f32 %v7165_v21, %v5267_v57  ;;  %vm5289_vm2 = vweird.f32 %v7165_v21 }
 0x9ac   : > { %7166 = vrsqrt.f32 %v5268_v37  ;;  %vm5290_vm4 = vmor %vm5288_vm3, %vm5289_vm2  ;;  %vm5298_vm6 = vweird.f32 %v5268_v37 }
 0x9ad   : > { %v5281_v36 = vsel %vm5280_vm0, %v7163_v20, %v5277_v23  ;;  %v5284_v10 = vmul.f32 %v7165_v21, %v5283_v14 }
 0x9ae   : > { %v5332_v52 = vmul.f32 %v5281_v36, %v9523_v39 }
 0x9af   : > { %v5285_v3 = vmul.f32 0.5, %v5284_v10  ;;  %v5253_v35 = vpop.xlane.xlu1 %5252 }
 0x9b0   : > { %5338 = vst.msk [vmem:[#allocation2] sm:$0xff] %vm566_vm1, %v5332_v52  ;;  %v5263_v31 = vmul.f32 %v5253_v35, %v8824_v19 }
 0x9b1   : > { %5344 = vst.msk [vmem:[%s7429_s19] sm:$0xff] %vm566_vm1, %v5332_v52  ;;  %v5286_v56 = vsub.f32 1.5, %v5285_v3 }
 0x9b2   : > { %v7167_v18 = vpop.eup %7166  ;;  %v5269_v46 = vadd.f32 1e-05, %v5263_v31 }
 0x9b3   : > { %v5287_v34 = vmul.f32 %v7165_v21, %v5286_v56  ;;  %v5293_v9 = vmul.f32 %v7167_v18, %v5268_v37  ;;  %vm5299_vm5 = vweird.f32 %v7167_v18 }
 0x9b4   : > { %7168 = vrsqrt.f32 %v5269_v46  ;;  %vm5300_vm7 = vmor %vm5298_vm6, %vm5299_vm5  ;;  %vm5308_vm9 = vweird.f32 %v5269_v46 }
 0x9b5   : > { %v5291_v49 = vsel %vm5290_vm4, %v7165_v21, %v5287_v34  ;;  %v5294_v63 = vmul.f32 %v7167_v18, %v5293_v9 }
 0x9b6   : > { %v5333_v61 = vmul.f32 %v5291_v49, %v9529_v30 }
 0x9b7   : > { %v5295_v54 = vmul.f32 0.5, %v5294_v63  ;;  %v5256_v26 = vpop.xlane.xlu2 %5255 }
 0x9b8   : > { %5339 = vst.msk [vmem:[#allocation2 + $0x8] sm:$0xff] %vm566_vm1, %v5333_v61  ;;  %v5264_v16 = vmul.f32 %v5256_v26, %v8824_v19 }
 0x9b9   : > { %5345 = vst.msk [vmem:[%s7429_s19 + $0x8] sm:$0xff] %vm566_vm1, %v5333_v61  ;;  %v5296_v42 = vsub.f32 1.5, %v5295_v54 }
 0x9ba   : > { %v7169_v39 = vpop.eup %7168  ;;  %v5270_v50 = vadd.f32 1e-05, %v5264_v16 }
 0x9bb   : > { %v5297_v38 = vmul.f32 %v7167_v18, %v5296_v42  ;;  %v5303_v1 = vmul.f32 %v7169_v39, %v5269_v46  ;;  %vm5309_vm8 = vweird.f32 %v7169_v39 }
 0x9bc   : > { %7170 = vrsqrt.f32 %v5270_v50  ;;  %vm5310_vm10 = vmor %vm5308_vm9, %vm5309_vm8  ;;  %vm5318_vm12 = vweird.f32 %v5270_v50 }
 0x9bd   : > { %v5301_v51 = vsel %vm5300_vm7, %v7167_v18, %v5297_v38  ;;  %v5304_v30 = vmul.f32 %v7169_v39, %v5303_v1 }
 0x9be   : > { %v5334_v12 = vmul.f32 %v5301_v51, %v9535_v11 }
 0x9bf   : > { %v5305_v53 = vmul.f32 0.5, %v5304_v30  ;;  %v5259_v25 = vpop.xlane.xlu0 %5258 }
 0x9c0   : > { %5340 = vst.msk [vmem:[#allocation2 + $0x10] sm:$0xff] %vm566_vm1, %v5334_v12  ;;  %v5265_v6 = vmul.f32 %v5259_v25, %v8824_v19 }
 0x9c1   : > { %5346 = vst.msk [vmem:[%s7429_s19 + $0x10] sm:$0xff] %vm566_vm1, %v5334_v12  ;;  %v5306_v47 = vsub.f32 1.5, %v5305_v53 }
 0x9c2   : > { %v7171_v27 = vpop.eup %7170  ;;  %v5271_v48 = vadd.f32 1e-05, %v5265_v6 }
 0x9c3   : > { %v5307_v17 = vmul.f32 %v7169_v39, %v5306_v47  ;;  %v5313_v55 = vmul.f32 %v7171_v27, %v5270_v50  ;;  %vm5319_vm11 = vweird.f32 %v7171_v27 }
 0x9c4   : > { %7172 = vrsqrt.f32 %v5271_v48  ;;  %vm5320_vm13 = vmor %vm5318_vm12, %vm5319_vm11  ;;  %vm5328_vm15 = vweird.f32 %v5271_v48 }
 0x9c5   : > { %v5311_v29 = vsel %vm5310_vm10, %v7169_v39, %v5307_v17  ;;  %v5314_v11 = vmul.f32 %v7171_v27, %v5313_v55 }
 0x9c6   : > { %v5335_v28 = vmul.f32 %v5311_v29, %v9541_v58 }
 0x9c7   : > { %v5315_v32 = vmul.f32 0.5, %v5314_v11 }
 0x9c8   : > { %5341 = vst.msk [vmem:[#allocation2 + $0x18] sm:$0xff] %vm566_vm1, %v5335_v28 }
 0x9c9   : > { %5347 = vst.msk [vmem:[%s7429_s19 + $0x18] sm:$0xff] %vm566_vm1, %v5335_v28  ;;  %v5316_v19 = vsub.f32 1.5, %v5315_v32 }
 0x9ca   : > { %v7173_v24 = vpop.eup %7172 }
 0x9cb   : > { %v5317_v22 = vmul.f32 %v7171_v27, %v5316_v19  ;;  %v5323_v62 = vmul.f32 %v7173_v24, %v5271_v48  ;;  %vm5329_vm14 = vweird.f32 %v7173_v24 }
 0x9cc   : > { %vm5330_vm0 = vmor %vm5328_vm15, %vm5329_vm14 }
 0x9cd   : > { %v5321_v43 = vsel %vm5320_vm13, %v7171_v27, %v5317_v22  ;;  %v5324_v13 = vmul.f32 %v7173_v24, %v5323_v62 }
 0x9ce   : > { %v5336_v44 = vmul.f32 %v5321_v43, %v9547_v45 }
 0x9cf   : > { %v5325_v7 = vmul.f32 0.5, %v5324_v13 }
 0x9d0   : > { %5342 = vst.msk [vmem:[#allocation2 + $0x20] sm:$0xff] %vm566_vm1, %v5336_v44 }
 0x9d1   : > { %5348 = vst.msk [vmem:[%s7429_s19 + $0x20] sm:$0xff] %vm566_vm1, %v5336_v44  ;;  %v5326_v58 = vsub.f32 1.5, %v5325_v7 }
 0x9d3   : > { %v5327_v8 = vmul.f32 %v7173_v24, %v5326_v58 }
 0x9d5   : > { %v5331_v0 = vsel %vm5330_vm0, %v7173_v24, %v5327_v8 }
 0x9d6   : > { %v5337_v59 = vmul.f32 %v5331_v0, %v9553_v15 }
 0x9d8   : > { %5343 = vst.msk [vmem:[#allocation2 + $0x28] sm:$0xff] %vm566_vm1, %v5337_v59 }
 0x9d9   : > { %5349 = vst.msk [vmem:[%s7429_s19 + $0x28] sm:$0xff] %vm566_vm1, %v5337_v59 }
 0x9da PF: > { %s9679_s14 = sld [smem:[#allocation10_spill]] }
 0x9db   : > { %s9680_s18 = sld [smem:[#allocation6_spill]] }
 0x9e0   : > { %p6827_p3 = scmp.ge.s32.totalorder %s9679_s14, 2 }
 0x9e1   : > { %s5399_s0 = sand.u32 1, %s9680_s18  }
 0x9e2   : > { %p6824_p10 = pnand %p6827_p3, %p7380_p8  ;;  %s5400_s1 = scalar_lea.sflag [#allocation4], %s5399_s0 }
 0x9e4   : > { %p6825_p11 = pneg %p6824_p10 }
 0x9e6   : > { %7241 = dma.done.wait (%p6825_p11), %s5400_s1, 6144  }
 0x9e7   : > { %7243 = vsyncadd (%p6825_p11), %s5400_s1, 4294961152  ;;  %s21_s8 = sadd.s32 1, %s9679_s14   ;;  %s9682_s26 = sld [smem:[#allocation7_spill]] }
 0x9e8   : > { %p18_p12 = scmp.ge.s32.totalorder %s21_s8, 14   ;;  %s9683_s30 = sld [smem:[#allocation14_spill]] }
 0x9e9   : > { %s9684_s27 = sld [smem:[#allocation8_spill]]  ;;  %s9688_s24 = smov %s7250_s25 }
 0x9ea   : > { %s9685_s28 = sld [smem:[#allocation9_spill]] }
 0x9eb   : > { %s9686_s29 = sld [smem:[#allocation11_spill]] }
 0x9ec   : > { %s9687_s19 = sld [smem:[#allocation12_spill]] }
 0x9ed   : > { %s9689_s25 = smov %s9682_s26 }
 0x9ee   : > { %s9690_s26 = smov %s9683_s30  ;;  %20 = sbr.rel (!%p18_p12) target bundleno = 9 (0x9), region = 117 }
 0x9f2   : > { %s9691_s30 = smov %s9687_s19 }
 0x9f3   :  { %5406 = vsyncpa [#allocation4], 1 }
 0x9f4   :  { %5408 = vsyncpa [#allocation4 + $0x1], 1 }

</bundles_post_ra>
